<compile_context>
chip_gen: v6e
topology: v6e:2x2x1
jax: 0.10.0
libtpu: 0.0.40
codegen_flags: <defaults>
</compile_context>

<pallas_src>
from functools import partial

import jax
import jax.numpy as jnp
from jax.experimental import pallas as pl
from jax.experimental.pallas import tpu as pltpu


# ----------------------------- shared in-kernel math --------------------------

# Any value <= ~-1e4 zeroes out after exp(s - max); -1e9 stays comfortably
# finite in f32 (and even bf16), unlike the previous -1e30 magic constant.
_MASK_BIAS = -1e9


def _layernorm(x, w, b, eps=1e-5):
    # PyTorch LayerNorm: biased variance, eps inside the sqrt.
    mu = jnp.mean(x, axis=-1, keepdims=True)
    xc = x - mu
    var = jnp.mean(xc * xc, axis=-1, keepdims=True)
    return xc * jax.lax.rsqrt(var + eps) * w + b


def _block_diag_bias(batch, seq):
    """Additive (0 / -1e9) block-diagonal attention bias, built in-kernel."""
    n = batch * seq
    r = jax.lax.broadcasted_iota(jnp.int32, (n, n), 0)
    c = jax.lax.broadcasted_iota(jnp.int32, (n, n), 1)
    if (seq & (seq - 1)) == 0:                    # power-of-two S: segment id is a shift
        sh = seq.bit_length() - 1
        same = (r >> sh) == (c >> sh)
    else:                                         # generic: count segment boundaries
        seg_r = jnp.zeros((n, n), jnp.int32)
        seg_c = jnp.zeros((n, n), jnp.int32)
        for b in range(1, batch):
            seg_r = seg_r + (r >= b * seq).astype(jnp.int32)
            seg_c = seg_c + (c >= b * seq).astype(jnp.int32)
        same = seg_r == seg_c
    return jnp.where(same, 0.0, _MASK_BIAS).astype(jnp.float32)


def _encoder_layer(x, attn_bias, wqkv, bqkv, wo, bo, ln1w, ln1b,
                   w1, b1, w2, b2, ln2w, ln2b, *, nhead):
    """One post-LN TransformerEncoderLayer on the flattened (N=B*S, E) stream."""
    f32, bf16 = jnp.float32, jnp.bfloat16
    N, E = x.shape
    H = nhead
    D = E // H
    xb = x.astype(bf16)

    # Fused QKV projection (1/sqrt(D) already folded into the Q columns).
    qkv = jnp.dot(xb, wqkv, preferred_element_type=f32) + bqkv       # (N, 3E)
    qkv_t = qkv.T.reshape(3, H, D, N)                                # one transpose
    qh = jnp.swapaxes(qkv_t[0], 1, 2).astype(bf16)                   # (H, N, D)
    kh = qkv_t[1].astype(bf16)                                       # (H, D, N)
    vh = qkv_t[2].astype(bf16)                                       # (H, D, N)

    # Scores for every (batch, head) at once; cross-batch pairs masked additively.
    s = jnp.einsum('hqd,hdk->hqk', qh, kh, preferred_element_type=f32)
    s = s + attn_bias[None, :, :]
    s = s - jnp.max(s, axis=-1, keepdims=True)
    p = jnp.exp(s)
    p = p * pl.reciprocal(jnp.sum(p, axis=-1, keepdims=True), approx=True)

    # PV in the transposed layout; merging heads is reshape + ONE transpose.
    o_t = jnp.einsum('hdk,hqk->hdq', vh, p.astype(bf16),
                     preferred_element_type=f32)                     # (H, D, N)
    o = o_t.reshape(E, N).T                                          # (N, E)

    attn = jnp.dot(o.astype(bf16), wo, preferred_element_type=f32) + bo
    x = _layernorm(x + attn, ln1w, ln1b)

    h1 = jnp.maximum(jnp.dot(x.astype(bf16), w1, preferred_element_type=f32) + b1, 0.0)
    ff = jnp.dot(h1.astype(bf16), w2, preferred_element_type=f32) + b2
    return _layernorm(x + ff, ln2w, ln2b)


# ----------------------------- kernels -----------------------------------------


def _fused_kernel(nhead, seq_len, num_layers,
                  x0_ref, wqkv_ref, bqkv_ref, wo_ref, bo_ref,
                  ln1w_ref, ln1b_ref, w1_ref, b1_ref, w2_ref, b2_ref,
                  ln2w_ref, ln2b_ref, fcw_ref, fcb_ref, out_ref):
    """Small-config path: everything resident in VMEM, no grid, layers unrolled."""
    N, _ = x0_ref.shape
    bias = _block_diag_bias(N // seq_len, seq_len)
    x = x0_ref[...]
    for l in range(num_layers):            # static Python loop == fully unrolled
        x = _encoder_layer(x, bias,
                           wqkv_ref[l], bqkv_ref[l], wo_ref[l], bo_ref[l],
                           ln1w_ref[l], ln1b_ref[l], w1_ref[l], b1_ref[l],
                           w2_ref[l], b2_ref[l], ln2w_ref[l], ln2b_ref[l],
                           nhead=nhead)
    logits = jnp.dot(x.astype(jnp.bfloat16), fcw_ref[...],
                     preferred_element_type=jnp.float32)
    out_ref[...] = logits + fcb_ref[...]


def _streamed_kernel(nhead, seq_len,
                     x0_ref, wqkv_ref, bqkv_ref, wo_ref, bo_ref,
                     ln1w_ref, ln1b_ref, w1_ref, b1_ref, w2_ref, b2_ref,
                     ln2w_ref, ln2b_ref, fcw_hbm, fcb_ref,
                     out_ref,
                     x_scr, fcw_vmem, fc_sem):
    """Grid axis 0 = encoder layer; activations stay resident in VMEM scratch."""
    l = pl.program_id(0)
    is_last = l == pl.num_programs(0) - 1

    @pl.when(l == 0)
    def _():
        x_scr[...] = x0_ref[...]

    # Stream the grid-invariant fc weight exactly once, single-buffered,
    # overlapped with the last layer's compute (instead of a double-buffered
    # pipelined input).  TODO(synk): at realistic (E, V) tile this over
    # lane-dense vocab-column slabs instead of one (E, V) buffer.
    @pl.when(is_last)
    def _():
        pltpu.make_async_copy(fcw_hbm, fcw_vmem, fc_sem).start()

    N, _ = x_scr.shape
    bias = _block_diag_bias(N // seq_len, seq_len)

    x = _encoder_layer(x_scr[...], bias,
                       wqkv_ref[...], bqkv_ref[...], wo_ref[...], bo_ref[...],
                       ln1w_ref[...], ln1b_ref[...], w1_ref[...], b1_ref[...],
                       w2_ref[...], b2_ref[...], ln2w_ref[...], ln2b_ref[...],
                       nhead=nhead)
    x_scr[...] = x

    @pl.when(is_last)
    def _():
        pltpu.make_async_copy(fcw_hbm, fcw_vmem, fc_sem).wait()
        logits = jnp.dot(x.astype(jnp.bfloat16), fcw_vmem[...],
                         preferred_element_type=jnp.float32)
        out_ref[...] = logits + fcb_ref[...]


# ----------------------------- wrapper -----------------------------------------

_LAYER_KEYS = ('wqkv', 'bqkv', 'wo', 'bo', 'ln1w', 'ln1b',
               'w1', 'b1', 'w2', 'b2', 'ln2w', 'ln2b')


def masked_lm_forward(input_ids, params, *, nhead, mode="auto"):
    B, S = input_ids.shape
    E = params['embedding'].shape[1]
    V = params['fc_w'].shape[1]
    L = params['wqkv'].shape[0]
    N = B * S

    # Embedding gathers + positional embedding add (glue, plain JAX).
    tok = params['embedding'][input_ids]                       # (B, S, E)
    pos = params['pos_embedding'][:S][None, :, :]              # (1, S, E)
    x0 = (tok + pos).astype(jnp.float32).reshape(N, E)
    # TODO(synk): dropout -> identity (eval mode).

    layer_args = tuple(params[k] for k in _LAYER_KEYS)
    fc_w, fc_b = params['fc_w'], params['fc_b']

    nbytes = lambda a: a.size * a.dtype.itemsize
    per_layer = sum(nbytes(a) for a in layer_args) // L
    fc_bytes = nbytes(fc_w) + nbytes(fc_b)
    act_bytes = N * E * 4
    out_bytes = N * V * 4

    if mode == "auto":
        mode = ("fused"
                if L * per_layer + fc_bytes + 4 * act_bytes + out_bytes <= (8 << 20)
                else "streamed")

    if mode == "fused":
        vmem_limit = min(128 << 20,
                         L * per_layer + fc_bytes + 2 * act_bytes + out_bytes
                         + (16 << 20))
        logits = pl.pallas_call(
            partial(_fused_kernel, nhead, S, L),
            out_shape=jax.ShapeDtypeStruct((N, V), jnp.float32),
            compiler_params=pltpu.CompilerParams(vmem_limit_bytes=vmem_limit),
        )(x0, *layer_args, fc_w, fc_b)
        return logits.reshape(B, S, V)

    # ---- streamed path: grid over layers, per-layer weight slabs pipelined ----
    def full_spec(shape):                       # same block every grid step
        nd = len(shape)
        return pl.BlockSpec(shape, lambda l, _n=nd: (0,) * _n)

    def layer_spec(shape):                      # one layer-slab per grid step
        nd = len(shape)
        return pl.BlockSpec((None,) + shape, lambda l, _n=nd: (l,) + (0,) * _n)

    in_specs = ([full_spec((N, E))]
                + [layer_spec(a.shape[1:]) for a in layer_args]
                + [pl.BlockSpec(memory_space=pl.ANY),      # fc_w stays in HBM
                   full_spec((1, V))])

    vmem_limit = min(128 << 20,
                     3 * per_layer + fc_bytes + 4 * act_bytes + 2 * out_bytes
                     + (16 << 20))

    grid_spec = pltpu.PrefetchScalarGridSpec(
        num_scalar_prefetch=0,
        grid=(L,),
        in_specs=in_specs,
        out_specs=full_spec((N, V)),
        scratch_shapes=[
            pltpu.VMEM((N, E), jnp.float32),           # resident activations
            pltpu.VMEM(fc_w.shape, fc_w.dtype),        # single-buffered fc weight
            pltpu.SemaphoreType.DMA(()),
        ],
    )

    # TODO(synk): at realistic sizes add a "parallel" batch/token grid axis for
    # v7x's second TensorCore and use int8 (v5e/v6e) / fp8 (v7x) FFN weights.
    logits = pl.pallas_call(
        partial(_streamed_kernel, nhead, S),
        out_shape=jax.ShapeDtypeStruct((N, V), jnp.float32),
        grid_spec=grid_spec,
        compiler_params=pltpu.CompilerParams(
            dimension_semantics=("arbitrary",),        # layers are sequential
            vmem_limit_bytes=vmem_limit),
    )(x0, *layer_args, fc_w, fc_b)
    return logits.reshape(B, S, V)


# ----------------------- parameter init / prep / reference ---------------------


def init_params(key, vocab_size, embedding_dim, num_layers, dim_feedforward,
                max_seq_length):
    """PyTorch-faithful f32 parameters (y = x @ W convention)."""
    E, F, L = embedding_dim, dim_feedforward, num_layers
    ks = iter(jax.random.split(key, 16))
    nrm = lambda shape, scale=0.02: (scale * jax.random.normal(next(ks), shape)
                                     ).astype(jnp.float32)
    return dict(
        embedding=nrm((vocab_size, E)),
        pos_embedding=nrm((max_seq_length, E)),
        wq=nrm((L, E, E)), bq=nrm((L, E)),
        wk=nrm((L, E, E)), bk=nrm((L, E)),
        wv=nrm((L, E, E)), bv=nrm((L, E)),
        wo=nrm((L, E, E)), bo=nrm((L, E)),
        ln1w=jnp.ones((L, E), jnp.float32), ln1b=jnp.zeros((L, E), jnp.float32),
        w1=nrm((L, E, F)), b1=nrm((L, F)),
        w2=nrm((L, F, E)), b2=nrm((L, E)),
        ln2w=jnp.ones((L, E), jnp.float32), ln2b=jnp.zeros((L, E), jnp.float32),
        fc_w=nrm((E, vocab_size)), fc_b=nrm((vocab_size,)),
    )


def prepare_params(raw, nhead):
    """One-time constant fold: fuse Q|K|V, fold 1/sqrt(D) into the Q columns,
    cast matmul weights to bf16, reshape biases/LN params to (L, 1, dim)."""
    E = raw['embedding'].shape[1]
    D = E // nhead
    scale = 1.0 / float(D) ** 0.5
    bf16 = jnp.bfloat16
    row = lambda a: a[:, None, :]
    # TODO(synk): when importing real PyTorch in_proj_weight, transpose it and
    # keep the same head-major column grouping, or heads get silently permuted.
    return dict(
        embedding=raw['embedding'],
        pos_embedding=raw['pos_embedding'],
        wqkv=jnp.concatenate([raw['wq'] * scale, raw['wk'], raw['wv']],
                             axis=-1).astype(bf16),
        bqkv=row(jnp.concatenate([raw['bq'] * scale, raw['bk'], raw['bv']],
                                 axis=-1)),
        wo=raw['wo'].astype(bf16), bo=row(raw['bo']),
        ln1w=row(raw['ln1w']), ln1b=row(raw['ln1b']),
        w1=raw['w1'].astype(bf16), b1=row(raw['b1']),
        w2=raw['w2'].astype(bf16), b2=row(raw['b2']),
        ln2w=row(raw['ln2w']), ln2b=row(raw['ln2b']),
        fc_w=raw['fc_w'].astype(bf16), fc_b=raw['fc_b'][None, :],
    )


def reference_forward(input_ids, raw, nhead):
    """Pure-JAX f32 reference of the same math (uses the raw, unfused params)."""
    B, S = input_ids.shape
    E = raw['embedding'].shape[1]
    H, D = nhead, E // nhead
    L = raw['wq'].shape[0]
    x = (raw['embedding'][input_ids]
         + raw['pos_embedding'][:S][None]).astype(jnp.float32)
    for l in range(L):
        q = (x @ raw['wq'][l] + raw['bq'][l]).reshape(B, S, H, D)
        k = (x @ raw['wk'][l] + raw['bk'][l]).reshape(B, S, H, D)
        v = (x @ raw['wv'][l] + raw['bv'][l]).reshape(B, S, H, D)
        s = jnp.einsum('bqhd,bkhd->bhqk', q, k) / float(D) ** 0.5
        p = jax.nn.softmax(s, axis=-1)
        o = jnp.einsum('bhqk,bkhd->bqhd', p, v).reshape(B, S, E)
        x = _layernorm(x + o @ raw['wo'][l] + raw['bo'][l],
                       raw['ln1w'][l], raw['ln1b'][l])
        h1 = jnp.maximum(x @ raw['w1'][l] + raw['b1'][l], 0.0)
        x = _layernorm(x + h1 @ raw['w2'][l] + raw['b2'][l],
                       raw['ln2w'][l], raw['ln2b'][l])
    return x @ raw['fc_w'] + raw['fc_b']


# ----------------------------- main --------------------------------------------

if __name__ == "__main__":
    # Module hyperparameters (small, consistent with the forward pass).
    vocab_size = 32
    embedding_dim = 32
    nhead = 4
    num_layers = 2
    dropout = 0.1            # identity in eval mode
    max_seq_length = 16
    dim_feedforward = 2048   # nn.TransformerEncoderLayer default

    batch, seq = 2, 8

    key = jax.random.PRNGKey(0)
    k_param, k_ids = jax.random.split(key)
    raw = init_params(k_param, vocab_size, embedding_dim, num_layers,
                      dim_feedforward, max_seq_length)
    params = prepare_params(raw, nhead)
    input_ids = jax.random.randint(k_ids, (batch, seq), 0, vocab_size,
                                   dtype=jnp.int32)

    fwd = jax.jit(masked_lm_forward, static_argnames=("nhead", "mode"))
    ref = reference_forward(input_ids, raw, nhead)        # (B, S, V) f32

    # Exercise BOTH execution paths and check each against the f32 reference
    # (differences: bf16 matmul operands + approx reciprocal in softmax).
    for mode in ("fused", "streamed"):
        logits = jax.block_until_ready(fwd(input_ids, params,
                                           nhead=nhead, mode=mode))
        assert logits.shape == (batch, seq, vocab_size), (mode, logits.shape)
        assert logits.dtype == jnp.float32
        assert bool(jnp.all(jnp.isfinite(logits)))
        max_err = float(jnp.max(jnp.abs(logits - ref)))
        assert max_err < 5e-2, (mode, max_err)

    print("KERNEL_OK")
</pallas_src>

<mosaic_0001>
module attributes {stable_mosaic.version = 11 : i64} {
  func.func @_fused_kernel(%arg0: memref<16x32xf32, #tpu.memory_space<vmem>>, %arg1: memref<2x32x96xbf16, #tpu.memory_space<vmem>>, %arg2: memref<2x1x96xf32, #tpu.memory_space<vmem>>, %arg3: memref<2x32x32xbf16, #tpu.memory_space<vmem>>, %arg4: memref<2x1x32xf32, #tpu.memory_space<vmem>>, %arg5: memref<2x1x32xf32, #tpu.memory_space<vmem>>, %arg6: memref<2x1x32xf32, #tpu.memory_space<vmem>>, %arg7: memref<2x32x2048xbf16, #tpu.memory_space<vmem>>, %arg8: memref<2x1x2048xf32, #tpu.memory_space<vmem>>, %arg9: memref<2x2048x32xbf16, #tpu.memory_space<vmem>>, %arg10: memref<2x1x32xf32, #tpu.memory_space<vmem>>, %arg11: memref<2x1x32xf32, #tpu.memory_space<vmem>>, %arg12: memref<2x1x32xf32, #tpu.memory_space<vmem>>, %arg13: memref<32x32xbf16, #tpu.memory_space<vmem>>, %arg14: memref<1x32xf32, #tpu.memory_space<vmem>>, %arg15: memref<16x32xf32, #tpu.memory_space<vmem>>) attributes {dimension_semantics = [], scalar_prefetch = 0 : i64, scratch_operands = 0 : i64, tpu.core_type = #tpu.core_type<tc>} {
    %0 = tpu.iota {dimensions = array<i32: 0>} : vector<16x16xi32>
    %1 = tpu.iota {dimensions = array<i32: 1>} : vector<16x16xi32>
    %c3_i32 = arith.constant 3 : i32
    %2 = vector.broadcast %c3_i32 : i32 to vector<16x16xi32>
    %3 = arith.shrsi %0, %2 : vector<16x16xi32>
    %c3_i32_0 = arith.constant 3 : i32
    %4 = vector.broadcast %c3_i32_0 : i32 to vector<16x16xi32>
    %5 = arith.shrsi %1, %4 : vector<16x16xi32>
    %6 = arith.cmpi eq, %3, %5 : vector<16x16xi32>
    %cst = arith.constant 0.000000e+00 : f32
    %cst_1 = arith.constant -1.000000e+09 : f32
    %7 = vector.broadcast %cst : f32 to vector<16x16xf32>
    %8 = vector.broadcast %cst_1 : f32 to vector<16x16xf32>
    %9 = arith.select %6, %7, %8 : vector<16x16xi1>, vector<16x16xf32>
    %c0 = arith.constant 0 : index
    %c0_2 = arith.constant 0 : index
    %10 = vector.load %arg0[%c0, %c0_2] : memref<16x32xf32, #tpu.memory_space<vmem>>, vector<16x32xf32>
    %c0_3 = arith.constant 0 : index
    %c0_4 = arith.constant 0 : index
    %c0_5 = arith.constant 0 : index
    %11 = vector.load %arg1[%c0_3, %c0_4, %c0_5] : memref<2x32x96xbf16, #tpu.memory_space<vmem>>, vector<1x32x96xbf16>
    %12 = vector.shape_cast %11 : vector<1x32x96xbf16> to vector<32x96xbf16>
    %c0_6 = arith.constant 0 : index
    %c0_7 = arith.constant 0 : index
    %c0_8 = arith.constant 0 : index
    %13 = vector.load %arg2[%c0_6, %c0_7, %c0_8] : memref<2x1x96xf32, #tpu.memory_space<vmem>>, vector<1x1x96xf32>
    %14 = vector.shape_cast %13 : vector<1x1x96xf32> to vector<1x96xf32>
    %c0_9 = arith.constant 0 : index
    %c0_10 = arith.constant 0 : index
    %c0_11 = arith.constant 0 : index
    %15 = vector.load %arg3[%c0_9, %c0_10, %c0_11] : memref<2x32x32xbf16, #tpu.memory_space<vmem>>, vector<1x32x32xbf16>
    %16 = vector.shape_cast %15 : vector<1x32x32xbf16> to vector<32x32xbf16>
    %c0_12 = arith.constant 0 : index
    %c0_13 = arith.constant 0 : index
    %c0_14 = arith.constant 0 : index
    %17 = vector.load %arg4[%c0_12, %c0_13, %c0_14] : memref<2x1x32xf32, #tpu.memory_space<vmem>>, vector<1x1x32xf32>
    %18 = vector.shape_cast %17 : vector<1x1x32xf32> to vector<1x32xf32>
    %c0_15 = arith.constant 0 : index
    %c0_16 = arith.constant 0 : index
    %c0_17 = arith.constant 0 : index
    %19 = vector.load %arg5[%c0_15, %c0_16, %c0_17] : memref<2x1x32xf32, #tpu.memory_space<vmem>>, vector<1x1x32xf32>
    %20 = vector.shape_cast %19 : vector<1x1x32xf32> to vector<1x32xf32>
    %c0_18 = arith.constant 0 : index
    %c0_19 = arith.constant 0 : index
    %c0_20 = arith.constant 0 : index
    %21 = vector.load %arg6[%c0_18, %c0_19, %c0_20] : memref<2x1x32xf32, #tpu.memory_space<vmem>>, vector<1x1x32xf32>
    %22 = vector.shape_cast %21 : vector<1x1x32xf32> to vector<1x32xf32>
    %c0_21 = arith.constant 0 : index
    %c0_22 = arith.constant 0 : index
    %c0_23 = arith.constant 0 : index
    %23 = vector.load %arg7[%c0_21, %c0_22, %c0_23] : memref<2x32x2048xbf16, #tpu.memory_space<vmem>>, vector<1x32x2048xbf16>
    %24 = vector.shape_cast %23 : vector<1x32x2048xbf16> to vector<32x2048xbf16>
    %c0_24 = arith.constant 0 : index
    %c0_25 = arith.constant 0 : index
    %c0_26 = arith.constant 0 : index
    %25 = vector.load %arg8[%c0_24, %c0_25, %c0_26] : memref<2x1x2048xf32, #tpu.memory_space<vmem>>, vector<1x1x2048xf32>
    %26 = vector.shape_cast %25 : vector<1x1x2048xf32> to vector<1x2048xf32>
    %c0_27 = arith.constant 0 : index
    %c0_28 = arith.constant 0 : index
    %c0_29 = arith.constant 0 : index
    %27 = vector.load %arg9[%c0_27, %c0_28, %c0_29] : memref<2x2048x32xbf16, #tpu.memory_space<vmem>>, vector<1x2048x32xbf16>
    %28 = vector.shape_cast %27 : vector<1x2048x32xbf16> to vector<2048x32xbf16>
    %c0_30 = arith.constant 0 : index
    %c0_31 = arith.constant 0 : index
    %c0_32 = arith.constant 0 : index
    %29 = vector.load %arg10[%c0_30, %c0_31, %c0_32] : memref<2x1x32xf32, #tpu.memory_space<vmem>>, vector<1x1x32xf32>
    %30 = vector.shape_cast %29 : vector<1x1x32xf32> to vector<1x32xf32>
    %c0_33 = arith.constant 0 : index
    %c0_34 = arith.constant 0 : index
    %c0_35 = arith.constant 0 : index
    %31 = vector.load %arg11[%c0_33, %c0_34, %c0_35] : memref<2x1x32xf32, #tpu.memory_space<vmem>>, vector<1x1x32xf32>
    %32 = vector.shape_cast %31 : vector<1x1x32xf32> to vector<1x32xf32>
    %c0_36 = arith.constant 0 : index
    %c0_37 = arith.constant 0 : index
    %c0_38 = arith.constant 0 : index
    %33 = vector.load %arg12[%c0_36, %c0_37, %c0_38] : memref<2x1x32xf32, #tpu.memory_space<vmem>>, vector<1x1x32xf32>
    %34 = vector.shape_cast %33 : vector<1x1x32xf32> to vector<1x32xf32>
    %35 = arith.truncf %10 : vector<16x32xf32> to vector<16x32xbf16>
    %cst_39 = arith.constant dense<0.000000e+00> : vector<16x96xf32>
    %36 = tpu.matmul %35, %12, %cst_39 {dimension_numbers = #tpu.dot_dimension_numbers<[1], [0], [0], [1], [0, 0, 1, 1], [], []>} : vector<16x32xbf16>, vector<32x96xbf16>, vector<16x96xf32> -> vector<16x96xf32>
    %37 = vector.broadcast %14 : vector<1x96xf32> to vector<16x96xf32>
    %38 = arith.addf %36, %37 : vector<16x96xf32>
    %39 = tpu.transpose %38, [1, 0] : vector<16x96xf32> -> vector<96x16xf32>
    %40 = vector.shape_cast %39 : vector<96x16xf32> to vector<3x4x8x16xf32>
    %41 = vector.extract_strided_slice %40 {offsets = [0, 0, 0, 0], sizes = [1, 4, 8, 16], strides = [1, 1, 1, 1]} : vector<3x4x8x16xf32> to vector<1x4x8x16xf32>
    %42 = vector.shape_cast %41 : vector<1x4x8x16xf32> to vector<4x8x16xf32>
    %43 = tpu.transpose %42, [0, 2, 1] : vector<4x8x16xf32> -> vector<4x16x8xf32>
    %44 = arith.truncf %43 : vector<4x16x8xf32> to vector<4x16x8xbf16>
    %45 = vector.extract_strided_slice %40 {offsets = [1, 0, 0, 0], sizes = [1, 4, 8, 16], strides = [1, 1, 1, 1]} : vector<3x4x8x16xf32> to vector<1x4x8x16xf32>
    %46 = vector.shape_cast %45 : vector<1x4x8x16xf32> to vector<4x8x16xf32>
    %47 = arith.truncf %46 : vector<4x8x16xf32> to vector<4x8x16xbf16>
    %48 = vector.extract_strided_slice %40 {offsets = [2, 0, 0, 0], sizes = [1, 4, 8, 16], strides = [1, 1, 1, 1]} : vector<3x4x8x16xf32> to vector<1x4x8x16xf32>
    %49 = vector.shape_cast %48 : vector<1x4x8x16xf32> to vector<4x8x16xf32>
    %50 = arith.truncf %49 : vector<4x8x16xf32> to vector<4x8x16xbf16>
    "tpu.trace_start"() <{level = 10 : i32, message = "hqd,hdk->hqk"}> : () -> ()
    %cst_40 = arith.constant dense<0.000000e+00> : vector<4x16x16xf32>
    %51 = tpu.matmul %44, %47, %cst_40 {dimension_numbers = #tpu.dot_dimension_numbers<[2], [1], [1], [2], [0, 0, 0, 1, 1, 2], [0], [0]>} : vector<4x16x8xbf16>, vector<4x8x16xbf16>, vector<4x16x16xf32> -> vector<4x16x16xf32>
    "tpu.trace_stop"() : () -> ()
    %52 = vector.shape_cast %9 : vector<16x16xf32> to vector<1x16x16xf32>
    %53 = vector.broadcast %52 : vector<1x16x16xf32> to vector<4x16x16xf32>
    %54 = arith.addf %51, %53 : vector<4x16x16xf32>
    %cst_41 = arith.constant dense<0xFF800000> : vector<4x16xf32>
    %55 = vector.multi_reduction <maximumf>, %54, %cst_41 [2] : vector<4x16x16xf32> to vector<4x16xf32>
    %56 = vector.shape_cast %55 : vector<4x16xf32> to vector<4x16x1xf32>
    %57 = vector.broadcast %56 : vector<4x16x1xf32> to vector<4x16x16xf32>
    %58 = arith.subf %54, %57 : vector<4x16x16xf32>
    %59 = math.exp %58 : vector<4x16x16xf32>
    %cst_42 = arith.constant dense<0.000000e+00> : vector<4x16xf32>
    %60 = vector.multi_reduction <add>, %59, %cst_42 [2] : vector<4x16x16xf32> to vector<4x16xf32>
    %61 = vector.shape_cast %60 : vector<4x16xf32> to vector<4x16x1xf32>
    %62 = tpu.reciprocal %61 {approx = true} : vector<4x16x1xf32> -> vector<4x16x1xf32>
    %63 = vector.broadcast %62 : vector<4x16x1xf32> to vector<4x16x16xf32>
    %64 = arith.mulf %59, %63 : vector<4x16x16xf32>
    %65 = arith.truncf %64 : vector<4x16x16xf32> to vector<4x16x16xbf16>
    "tpu.trace_start"() <{level = 10 : i32, message = "hdk,hqk->hdq"}> : () -> ()
    %cst_43 = arith.constant dense<0.000000e+00> : vector<4x8x16xf32>
    %66 = tpu.matmul %50, %65, %cst_43 {dimension_numbers = #tpu.dot_dimension_numbers<[2], [2], [1], [1], [0, 0, 0, 1, 1, 1], [0], [0]>} : vector<4x8x16xbf16>, vector<4x16x16xbf16>, vector<4x8x16xf32> -> vector<4x8x16xf32>
    "tpu.trace_stop"() : () -> ()
    %67 = vector.shape_cast %66 : vector<4x8x16xf32> to vector<32x16xf32>
    %68 = tpu.transpose %67, [1, 0] : vector<32x16xf32> -> vector<16x32xf32>
    %69 = arith.truncf %68 : vector<16x32xf32> to vector<16x32xbf16>
    %cst_44 = arith.constant dense<0.000000e+00> : vector<16x32xf32>
    %70 = tpu.matmul %69, %16, %cst_44 {dimension_numbers = #tpu.dot_dimension_numbers<[1], [0], [0], [1], [0, 0, 1, 1], [], []>} : vector<16x32xbf16>, vector<32x32xbf16>, vector<16x32xf32> -> vector<16x32xf32>
    %71 = vector.broadcast %18 : vector<1x32xf32> to vector<16x32xf32>
    %72 = arith.addf %70, %71 : vector<16x32xf32>
    %73 = arith.addf %10, %72 : vector<16x32xf32>
    %cst_45 = arith.constant dense<0.000000e+00> : vector<16xf32>
    %74 = vector.multi_reduction <add>, %73, %cst_45 [1] : vector<16x32xf32> to vector<16xf32>
    %75 = vector.shape_cast %74 : vector<16xf32> to vector<16x1xf32>
    %cst_46 = arith.constant 3.200000e+01 : f32
    %76 = vector.broadcast %cst_46 : f32 to vector<16x1xf32>
    %77 = arith.divf %75, %76 : vector<16x1xf32>
    %78 = vector.broadcast %77 : vector<16x1xf32> to vector<16x32xf32>
    %79 = arith.subf %73, %78 : vector<16x32xf32>
    %80 = arith.mulf %79, %79 : vector<16x32xf32>
    %cst_47 = arith.constant dense<0.000000e+00> : vector<16xf32>
    %81 = vector.multi_reduction <add>, %80, %cst_47 [1] : vector<16x32xf32> to vector<16xf32>
    %82 = vector.shape_cast %81 : vector<16xf32> to vector<16x1xf32>
    %cst_48 = arith.constant 3.200000e+01 : f32
    %83 = vector.broadcast %cst_48 : f32 to vector<16x1xf32>
    %84 = arith.divf %82, %83 : vector<16x1xf32>
    %cst_49 = arith.constant 9.99999974E-6 : f32
    %85 = vector.broadcast %cst_49 : f32 to vector<16x1xf32>
    %86 = arith.addf %84, %85 : vector<16x1xf32>
    %87 = math.rsqrt %86 : vector<16x1xf32>
    %88 = vector.broadcast %87 : vector<16x1xf32> to vector<16x32xf32>
    %89 = arith.mulf %79, %88 : vector<16x32xf32>
    %90 = vector.broadcast %20 : vector<1x32xf32> to vector<16x32xf32>
    %91 = arith.mulf %89, %90 : vector<16x32xf32>
    %92 = vector.broadcast %22 : vector<1x32xf32> to vector<16x32xf32>
    %93 = arith.addf %91, %92 : vector<16x32xf32>
    %94 = arith.truncf %93 : vector<16x32xf32> to vector<16x32xbf16>
    %cst_50 = arith.constant dense<0.000000e+00> : vector<16x2048xf32>
    %95 = tpu.matmul %94, %24, %cst_50 {dimension_numbers = #tpu.dot_dimension_numbers<[1], [0], [0], [1], [0, 0, 1, 1], [], []>} : vector<16x32xbf16>, vector<32x2048xbf16>, vector<16x2048xf32> -> vector<16x2048xf32>
    %96 = vector.broadcast %26 : vector<1x2048xf32> to vector<16x2048xf32>
    %97 = arith.addf %95, %96 : vector<16x2048xf32>
    %cst_51 = arith.constant 0.000000e+00 : f32
    %98 = vector.broadcast %cst_51 : f32 to vector<16x2048xf32>
    %99 = arith.maximumf %97, %98 : vector<16x2048xf32>
    %100 = arith.truncf %99 : vector<16x2048xf32> to vector<16x2048xbf16>
    %cst_52 = arith.constant dense<0.000000e+00> : vector<16x32xf32>
    %101 = tpu.matmul %100, %28, %cst_52 {dimension_numbers = #tpu.dot_dimension_numbers<[1], [0], [0], [1], [0, 0, 1, 1], [], []>} : vector<16x2048xbf16>, vector<2048x32xbf16>, vector<16x32xf32> -> vector<16x32xf32>
    %102 = vector.broadcast %30 : vector<1x32xf32> to vector<16x32xf32>
    %103 = arith.addf %101, %102 : vector<16x32xf32>
    %104 = arith.addf %93, %103 : vector<16x32xf32>
    %cst_53 = arith.constant dense<0.000000e+00> : vector<16xf32>
    %105 = vector.multi_reduction <add>, %104, %cst_53 [1] : vector<16x32xf32> to vector<16xf32>
    %106 = vector.shape_cast %105 : vector<16xf32> to vector<16x1xf32>
    %cst_54 = arith.constant 3.200000e+01 : f32
    %107 = vector.broadcast %cst_54 : f32 to vector<16x1xf32>
    %108 = arith.divf %106, %107 : vector<16x1xf32>
    %109 = vector.broadcast %108 : vector<16x1xf32> to vector<16x32xf32>
    %110 = arith.subf %104, %109 : vector<16x32xf32>
    %111 = arith.mulf %110, %110 : vector<16x32xf32>
    %cst_55 = arith.constant dense<0.000000e+00> : vector<16xf32>
    %112 = vector.multi_reduction <add>, %111, %cst_55 [1] : vector<16x32xf32> to vector<16xf32>
    %113 = vector.shape_cast %112 : vector<16xf32> to vector<16x1xf32>
    %cst_56 = arith.constant 3.200000e+01 : f32
    %114 = vector.broadcast %cst_56 : f32 to vector<16x1xf32>
    %115 = arith.divf %113, %114 : vector<16x1xf32>
    %cst_57 = arith.constant 9.99999974E-6 : f32
    %116 = vector.broadcast %cst_57 : f32 to vector<16x1xf32>
    %117 = arith.addf %115, %116 : vector<16x1xf32>
    %118 = math.rsqrt %117 : vector<16x1xf32>
    %119 = vector.broadcast %118 : vector<16x1xf32> to vector<16x32xf32>
    %120 = arith.mulf %110, %119 : vector<16x32xf32>
    %121 = vector.broadcast %32 : vector<1x32xf32> to vector<16x32xf32>
    %122 = arith.mulf %120, %121 : vector<16x32xf32>
    %123 = vector.broadcast %34 : vector<1x32xf32> to vector<16x32xf32>
    %124 = arith.addf %122, %123 : vector<16x32xf32>
    %c1 = arith.constant 1 : index
    %c0_58 = arith.constant 0 : index
    %c0_59 = arith.constant 0 : index
    %125 = vector.load %arg1[%c1, %c0_58, %c0_59] : memref<2x32x96xbf16, #tpu.memory_space<vmem>>, vector<1x32x96xbf16>
    %126 = vector.shape_cast %125 : vector<1x32x96xbf16> to vector<32x96xbf16>
    %c1_60 = arith.constant 1 : index
    %c0_61 = arith.constant 0 : index
    %c0_62 = arith.constant 0 : index
    %127 = vector.load %arg2[%c1_60, %c0_61, %c0_62] : memref<2x1x96xf32, #tpu.memory_space<vmem>>, vector<1x1x96xf32>
    %128 = vector.shape_cast %127 : vector<1x1x96xf32> to vector<1x96xf32>
    %c1_63 = arith.constant 1 : index
    %c0_64 = arith.constant 0 : index
    %c0_65 = arith.constant 0 : index
    %129 = vector.load %arg3[%c1_63, %c0_64, %c0_65] : memref<2x32x32xbf16, #tpu.memory_space<vmem>>, vector<1x32x32xbf16>
    %130 = vector.shape_cast %129 : vector<1x32x32xbf16> to vector<32x32xbf16>
    %c1_66 = arith.constant 1 : index
    %c0_67 = arith.constant 0 : index
    %c0_68 = arith.constant 0 : index
    %131 = vector.load %arg4[%c1_66, %c0_67, %c0_68] : memref<2x1x32xf32, #tpu.memory_space<vmem>>, vector<1x1x32xf32>
    %132 = vector.shape_cast %131 : vector<1x1x32xf32> to vector<1x32xf32>
    %c1_69 = arith.constant 1 : index
    %c0_70 = arith.constant 0 : index
    %c0_71 = arith.constant 0 : index
    %133 = vector.load %arg5[%c1_69, %c0_70, %c0_71] : memref<2x1x32xf32, #tpu.memory_space<vmem>>, vector<1x1x32xf32>
    %134 = vector.shape_cast %133 : vector<1x1x32xf32> to vector<1x32xf32>
    %c1_72 = arith.constant 1 : index
    %c0_73 = arith.constant 0 : index
    %c0_74 = arith.constant 0 : index
    %135 = vector.load %arg6[%c1_72, %c0_73, %c0_74] : memref<2x1x32xf32, #tpu.memory_space<vmem>>, vector<1x1x32xf32>
    %136 = vector.shape_cast %135 : vector<1x1x32xf32> to vector<1x32xf32>
    %c1_75 = arith.constant 1 : index
    %c0_76 = arith.constant 0 : index
    %c0_77 = arith.constant 0 : index
    %137 = vector.load %arg7[%c1_75, %c0_76, %c0_77] : memref<2x32x2048xbf16, #tpu.memory_space<vmem>>, vector<1x32x2048xbf16>
    %138 = vector.shape_cast %137 : vector<1x32x2048xbf16> to vector<32x2048xbf16>
    %c1_78 = arith.constant 1 : index
    %c0_79 = arith.constant 0 : index
    %c0_80 = arith.constant 0 : index
    %139 = vector.load %arg8[%c1_78, %c0_79, %c0_80] : memref<2x1x2048xf32, #tpu.memory_space<vmem>>, vector<1x1x2048xf32>
    %140 = vector.shape_cast %139 : vector<1x1x2048xf32> to vector<1x2048xf32>
    %c1_81 = arith.constant 1 : index
    %c0_82 = arith.constant 0 : index
    %c0_83 = arith.constant 0 : index
    %141 = vector.load %arg9[%c1_81, %c0_82, %c0_83] : memref<2x2048x32xbf16, #tpu.memory_space<vmem>>, vector<1x2048x32xbf16>
    %142 = vector.shape_cast %141 : vector<1x2048x32xbf16> to vector<2048x32xbf16>
    %c1_84 = arith.constant 1 : index
    %c0_85 = arith.constant 0 : index
    %c0_86 = arith.constant 0 : index
    %143 = vector.load %arg10[%c1_84, %c0_85, %c0_86] : memref<2x1x32xf32, #tpu.memory_space<vmem>>, vector<1x1x32xf32>
    %144 = vector.shape_cast %143 : vector<1x1x32xf32> to vector<1x32xf32>
    %c1_87 = arith.constant 1 : index
    %c0_88 = arith.constant 0 : index
    %c0_89 = arith.constant 0 : index
    %145 = vector.load %arg11[%c1_87, %c0_88, %c0_89] : memref<2x1x32xf32, #tpu.memory_space<vmem>>, vector<1x1x32xf32>
    %146 = vector.shape_cast %145 : vector<1x1x32xf32> to vector<1x32xf32>
    %c1_90 = arith.constant 1 : index
    %c0_91 = arith.constant 0 : index
    %c0_92 = arith.constant 0 : index
    %147 = vector.load %arg12[%c1_90, %c0_91, %c0_92] : memref<2x1x32xf32, #tpu.memory_space<vmem>>, vector<1x1x32xf32>
    %148 = vector.shape_cast %147 : vector<1x1x32xf32> to vector<1x32xf32>
    %149 = arith.truncf %124 : vector<16x32xf32> to vector<16x32xbf16>
    %cst_93 = arith.constant dense<0.000000e+00> : vector<16x96xf32>
    %150 = tpu.matmul %149, %126, %cst_93 {dimension_numbers = #tpu.dot_dimension_numbers<[1], [0], [0], [1], [0, 0, 1, 1], [], []>} : vector<16x32xbf16>, vector<32x96xbf16>, vector<16x96xf32> -> vector<16x96xf32>
    %151 = vector.broadcast %128 : vector<1x96xf32> to vector<16x96xf32>
    %152 = arith.addf %150, %151 : vector<16x96xf32>
    %153 = tpu.transpose %152, [1, 0] : vector<16x96xf32> -> vector<96x16xf32>
    %154 = vector.shape_cast %153 : vector<96x16xf32> to vector<3x4x8x16xf32>
    %155 = vector.extract_strided_slice %154 {offsets = [0, 0, 0, 0], sizes = [1, 4, 8, 16], strides = [1, 1, 1, 1]} : vector<3x4x8x16xf32> to vector<1x4x8x16xf32>
    %156 = vector.shape_cast %155 : vector<1x4x8x16xf32> to vector<4x8x16xf32>
    %157 = tpu.transpose %156, [0, 2, 1] : vector<4x8x16xf32> -> vector<4x16x8xf32>
    %158 = arith.truncf %157 : vector<4x16x8xf32> to vector<4x16x8xbf16>
    %159 = vector.extract_strided_slice %154 {offsets = [1, 0, 0, 0], sizes = [1, 4, 8, 16], strides = [1, 1, 1, 1]} : vector<3x4x8x16xf32> to vector<1x4x8x16xf32>
    %160 = vector.shape_cast %159 : vector<1x4x8x16xf32> to vector<4x8x16xf32>
    %161 = arith.truncf %160 : vector<4x8x16xf32> to vector<4x8x16xbf16>
    %162 = vector.extract_strided_slice %154 {offsets = [2, 0, 0, 0], sizes = [1, 4, 8, 16], strides = [1, 1, 1, 1]} : vector<3x4x8x16xf32> to vector<1x4x8x16xf32>
    %163 = vector.shape_cast %162 : vector<1x4x8x16xf32> to vector<4x8x16xf32>
    %164 = arith.truncf %163 : vector<4x8x16xf32> to vector<4x8x16xbf16>
    "tpu.trace_start"() <{level = 10 : i32, message = "hqd,hdk->hqk"}> : () -> ()
    %cst_94 = arith.constant dense<0.000000e+00> : vector<4x16x16xf32>
    %165 = tpu.matmul %158, %161, %cst_94 {dimension_numbers = #tpu.dot_dimension_numbers<[2], [1], [1], [2], [0, 0, 0, 1, 1, 2], [0], [0]>} : vector<4x16x8xbf16>, vector<4x8x16xbf16>, vector<4x16x16xf32> -> vector<4x16x16xf32>
    "tpu.trace_stop"() : () -> ()
    %166 = vector.shape_cast %9 : vector<16x16xf32> to vector<1x16x16xf32>
    %167 = vector.broadcast %166 : vector<1x16x16xf32> to vector<4x16x16xf32>
    %168 = arith.addf %165, %167 : vector<4x16x16xf32>
    %cst_95 = arith.constant dense<0xFF800000> : vector<4x16xf32>
    %169 = vector.multi_reduction <maximumf>, %168, %cst_95 [2] : vector<4x16x16xf32> to vector<4x16xf32>
    %170 = vector.shape_cast %169 : vector<4x16xf32> to vector<4x16x1xf32>
    %171 = vector.broadcast %170 : vector<4x16x1xf32> to vector<4x16x16xf32>
    %172 = arith.subf %168, %171 : vector<4x16x16xf32>
    %173 = math.exp %172 : vector<4x16x16xf32>
    %cst_96 = arith.constant dense<0.000000e+00> : vector<4x16xf32>
    %174 = vector.multi_reduction <add>, %173, %cst_96 [2] : vector<4x16x16xf32> to vector<4x16xf32>
    %175 = vector.shape_cast %174 : vector<4x16xf32> to vector<4x16x1xf32>
    %176 = tpu.reciprocal %175 {approx = true} : vector<4x16x1xf32> -> vector<4x16x1xf32>
    %177 = vector.broadcast %176 : vector<4x16x1xf32> to vector<4x16x16xf32>
    %178 = arith.mulf %173, %177 : vector<4x16x16xf32>
    %179 = arith.truncf %178 : vector<4x16x16xf32> to vector<4x16x16xbf16>
    "tpu.trace_start"() <{level = 10 : i32, message = "hdk,hqk->hdq"}> : () -> ()
    %cst_97 = arith.constant dense<0.000000e+00> : vector<4x8x16xf32>
    %180 = tpu.matmul %164, %179, %cst_97 {dimension_numbers = #tpu.dot_dimension_numbers<[2], [2], [1], [1], [0, 0, 0, 1, 1, 1], [0], [0]>} : vector<4x8x16xbf16>, vector<4x16x16xbf16>, vector<4x8x16xf32> -> vector<4x8x16xf32>
    "tpu.trace_stop"() : () -> ()
    %181 = vector.shape_cast %180 : vector<4x8x16xf32> to vector<32x16xf32>
    %182 = tpu.transpose %181, [1, 0] : vector<32x16xf32> -> vector<16x32xf32>
    %183 = arith.truncf %182 : vector<16x32xf32> to vector<16x32xbf16>
    %cst_98 = arith.constant dense<0.000000e+00> : vector<16x32xf32>
    %184 = tpu.matmul %183, %130, %cst_98 {dimension_numbers = #tpu.dot_dimension_numbers<[1], [0], [0], [1], [0, 0, 1, 1], [], []>} : vector<16x32xbf16>, vector<32x32xbf16>, vector<16x32xf32> -> vector<16x32xf32>
    %185 = vector.broadcast %132 : vector<1x32xf32> to vector<16x32xf32>
    %186 = arith.addf %184, %185 : vector<16x32xf32>
    %187 = arith.addf %124, %186 : vector<16x32xf32>
    %cst_99 = arith.constant dense<0.000000e+00> : vector<16xf32>
    %188 = vector.multi_reduction <add>, %187, %cst_99 [1] : vector<16x32xf32> to vector<16xf32>
    %189 = vector.shape_cast %188 : vector<16xf32> to vector<16x1xf32>
    %cst_100 = arith.constant 3.200000e+01 : f32
    %190 = vector.broadcast %cst_100 : f32 to vector<16x1xf32>
    %191 = arith.divf %189, %190 : vector<16x1xf32>
    %192 = vector.broadcast %191 : vector<16x1xf32> to vector<16x32xf32>
    %193 = arith.subf %187, %192 : vector<16x32xf32>
    %194 = arith.mulf %193, %193 : vector<16x32xf32>
    %cst_101 = arith.constant dense<0.000000e+00> : vector<16xf32>
    %195 = vector.multi_reduction <add>, %194, %cst_101 [1] : vector<16x32xf32> to vector<16xf32>
    %196 = vector.shape_cast %195 : vector<16xf32> to vector<16x1xf32>
    %cst_102 = arith.constant 3.200000e+01 : f32
    %197 = vector.broadcast %cst_102 : f32 to vector<16x1xf32>
    %198 = arith.divf %196, %197 : vector<16x1xf32>
    %cst_103 = arith.constant 9.99999974E-6 : f32
    %199 = vector.broadcast %cst_103 : f32 to vector<16x1xf32>
    %200 = arith.addf %198, %199 : vector<16x1xf32>
    %201 = math.rsqrt %200 : vector<16x1xf32>
    %202 = vector.broadcast %201 : vector<16x1xf32> to vector<16x32xf32>
    %203 = arith.mulf %193, %202 : vector<16x32xf32>
    %204 = vector.broadcast %134 : vector<1x32xf32> to vector<16x32xf32>
    %205 = arith.mulf %203, %204 : vector<16x32xf32>
    %206 = vector.broadcast %136 : vector<1x32xf32> to vector<16x32xf32>
    %207 = arith.addf %205, %206 : vector<16x32xf32>
    %208 = arith.truncf %207 : vector<16x32xf32> to vector<16x32xbf16>
    %cst_104 = arith.constant dense<0.000000e+00> : vector<16x2048xf32>
    %209 = tpu.matmul %208, %138, %cst_104 {dimension_numbers = #tpu.dot_dimension_numbers<[1], [0], [0], [1], [0, 0, 1, 1], [], []>} : vector<16x32xbf16>, vector<32x2048xbf16>, vector<16x2048xf32> -> vector<16x2048xf32>
    %210 = vector.broadcast %140 : vector<1x2048xf32> to vector<16x2048xf32>
    %211 = arith.addf %209, %210 : vector<16x2048xf32>
    %cst_105 = arith.constant 0.000000e+00 : f32
    %212 = vector.broadcast %cst_105 : f32 to vector<16x2048xf32>
    %213 = arith.maximumf %211, %212 : vector<16x2048xf32>
    %214 = arith.truncf %213 : vector<16x2048xf32> to vector<16x2048xbf16>
    %cst_106 = arith.constant dense<0.000000e+00> : vector<16x32xf32>
    %215 = tpu.matmul %214, %142, %cst_106 {dimension_numbers = #tpu.dot_dimension_numbers<[1], [0], [0], [1], [0, 0, 1, 1], [], []>} : vector<16x2048xbf16>, vector<2048x32xbf16>, vector<16x32xf32> -> vector<16x32xf32>
    %216 = vector.broadcast %144 : vector<1x32xf32> to vector<16x32xf32>
    %217 = arith.addf %215, %216 : vector<16x32xf32>
    %218 = arith.addf %207, %217 : vector<16x32xf32>
    %cst_107 = arith.constant dense<0.000000e+00> : vector<16xf32>
    %219 = vector.multi_reduction <add>, %218, %cst_107 [1] : vector<16x32xf32> to vector<16xf32>
    %220 = vector.shape_cast %219 : vector<16xf32> to vector<16x1xf32>
    %cst_108 = arith.constant 3.200000e+01 : f32
    %221 = vector.broadcast %cst_108 : f32 to vector<16x1xf32>
    %222 = arith.divf %220, %221 : vector<16x1xf32>
    %223 = vector.broadcast %222 : vector<16x1xf32> to vector<16x32xf32>
    %224 = arith.subf %218, %223 : vector<16x32xf32>
    %225 = arith.mulf %224, %224 : vector<16x32xf32>
    %cst_109 = arith.constant dense<0.000000e+00> : vector<16xf32>
    %226 = vector.multi_reduction <add>, %225, %cst_109 [1] : vector<16x32xf32> to vector<16xf32>
    %227 = vector.shape_cast %226 : vector<16xf32> to vector<16x1xf32>
    %cst_110 = arith.constant 3.200000e+01 : f32
    %228 = vector.broadcast %cst_110 : f32 to vector<16x1xf32>
    %229 = arith.divf %227, %228 : vector<16x1xf32>
    %cst_111 = arith.constant 9.99999974E-6 : f32
    %230 = vector.broadcast %cst_111 : f32 to vector<16x1xf32>
    %231 = arith.addf %229, %230 : vector<16x1xf32>
    %232 = math.rsqrt %231 : vector<16x1xf32>
    %233 = vector.broadcast %232 : vector<16x1xf32> to vector<16x32xf32>
    %234 = arith.mulf %224, %233 : vector<16x32xf32>
    %235 = vector.broadcast %146 : vector<1x32xf32> to vector<16x32xf32>
    %236 = arith.mulf %234, %235 : vector<16x32xf32>
    %237 = vector.broadcast %148 : vector<1x32xf32> to vector<16x32xf32>
    %238 = arith.addf %236, %237 : vector<16x32xf32>
    %239 = arith.truncf %238 : vector<16x32xf32> to vector<16x32xbf16>
    %c0_112 = arith.constant 0 : index
    %c0_113 = arith.constant 0 : index
    %240 = vector.load %arg13[%c0_112, %c0_113] : memref<32x32xbf16, #tpu.memory_space<vmem>>, vector<32x32xbf16>
    %cst_114 = arith.constant dense<0.000000e+00> : vector<16x32xf32>
    %241 = tpu.matmul %239, %240, %cst_114 {dimension_numbers = #tpu.dot_dimension_numbers<[1], [0], [0], [1], [0, 0, 1, 1], [], []>} : vector<16x32xbf16>, vector<32x32xbf16>, vector<16x32xf32> -> vector<16x32xf32>
    %c0_115 = arith.constant 0 : index
    %c0_116 = arith.constant 0 : index
    %242 = vector.load %arg14[%c0_115, %c0_116] : memref<1x32xf32, #tpu.memory_space<vmem>>, vector<1x32xf32>
    %243 = vector.broadcast %242 : vector<1x32xf32> to vector<16x32xf32>
    %244 = arith.addf %241, %243 : vector<16x32xf32>
    %c0_117 = arith.constant 0 : index
    %c0_118 = arith.constant 0 : index
    %245 = vector.load %arg15[%c0_117, %c0_118] : memref<16x32xf32, #tpu.memory_space<vmem>>, vector<16x32xf32>
    tpu.vector_store %arg15[%c0_117, %c0_118], %244 {strides = array<i32>} : memref<16x32xf32, #tpu.memory_space<vmem>>, vector<16x32xf32>,
    return
  }
}

</mosaic_0001>

<bundles_post_ra>
// kernel: masked_lm_forward.1
= control target key start
LH: loop header
LB: loop body
LE: loop exit
PB: predicated region body
PF: predicated region fallthrough
CT: control target
= control target key end

     0   :  { %v7658_v1 = vmov 0.0   ;;  %vm7659_vm0 = vmmov 0   ;;  %vm390_vm1 = vcmask 261120   ;;  %s9262_s0 = inlined_call_operand.vmem [shape: f32[16,32], index: 0, kind: input, shape index: {}]   ;;  %s9263_s1 = inlined_call_operand.vmem [shape: bf16[2,32,96], index: 1, kind: input, shape index: {}]   ;;  %s9264_s2 = inlined_call_operand.vmem [shape: f32[2,1,96], index: 2, kind: input, shape index: {}]   ;;  %s9265_s3 = inlined_call_operand.vmem [shape: bf16[2,32,32], index: 3, kind: input, shape index: {}]   ;;  %s9266_s4 = inlined_call_operand.vmem [shape: f32[2,1,32], index: 4, kind: input, shape index: {}]   ;;  %s9267_s5 = inlined_call_operand.vmem [shape: f32[2,1,32], index: 5, kind: input, shape index: {}]   ;;  %s9268_s6 = inlined_call_operand.vmem [shape: f32[2,1,32], index: 6, kind: input, shape index: {}]   ;;  %s9269_s7 = inlined_call_operand.vmem [shape: bf16[2,32,2048], index: 7, kind: input, shape index: {}]   ;;  %s9270_s8 = inlined_call_operand.vmem [shape: f32[2,1,2048], index: 8, kind: input, shape index: {}]   ;;  %s9271_s9 = inlined_call_operand.vmem [shape: bf16[2,2048,32], index: 9, kind: input, shape index: {}]   ;;  %s9272_s10 = inlined_call_operand.vmem [shape: f32[2,1,32], index: 10, kind: input, shape index: {}]   ;;  %s9273_s11 = inlined_call_operand.vmem [shape: f32[2,1,32], index: 11, kind: input, shape index: {}]   ;;  %s9274_s12 = inlined_call_operand.vmem [shape: f32[2,1,32], index: 12, kind: input, shape index: {}]   ;;  %s9275_s13 = inlined_call_operand.vmem [shape: bf16[32,32], index: 13, kind: input, shape index: {}]   ;;  %s9276_s14 = inlined_call_operand.vmem [shape: f32[1,32], index: 14, kind: input, shape index: {}]   ;;  %s9277_s15 = inlined_call_operand.hbm [shape: f32[16,32], index: 15, kind: output, shape index: {}]  }
   0x1   :  { %v7288_v0 = vld [vmem:[%s9263_s1 + $0x8] sm:$0xff]   ;;  %7109 = vmatprep.subr.bf16.mxu0 %v7658_v1  ;;  %v7289_v2 = vld [vmem:[%s9263_s1] sm:$0xff]   ;;  %7117 = vmatprep.subr.bf16.mxu1 %v7658_v1 }
   0x2   :  { %7110 = vmatpush3.bf16.msra.mxu0 %v7288_v0  ;;  %7113 = vmatprep.mubr.msk.bf16.mxu0 %vm7659_vm0, %v7658_v1  ;;  %v64_v3 = vld [vmem:[%s9262_s0] sm:$0xff]  ;;  %v65_v4 = vld [vmem:[%s9262_s0 + $0x8] sm:$0xff] }
   0x3   :  { %7111 = vmatprep.subr.bf16.mxu0 %v7658_v1  ;;  %7119 = vmatprep.mubr.msk.bf16.mxu1 %vm7659_vm0, %v7658_v1  ;;  %v371_v5 = vpack.c.bf16 %v65_v4, %v64_v3 }
   0x6   :  { %7112 = vmatpush3.bf16.msra.mxu0 %v7289_v2 }
   0x7   :  { %7129 = vmatprep.subr.bf16.mxu0 %v7658_v1 }
   0x9   :  { %7114 = vmatmul.mubr.msk.bf16.vlgmr.msra.gmra.mxu0 %vm390_vm1, %v371_v5 }
   0xa   :  { %7131 = vmatprep.mubr.msk.bf16.mxu0 %vm7659_vm0, %v7658_v1 }
   0xb   :  { %20 = vsyncpa [#allocation3], 0  ;;  %v6023_v6 = vld [vmem:[%s9264_s2] ss:$0 sm:$0xff]  ;;  %vm611_vm2 = vcmask 1043456   ;;  %vm607_vm3 = vcmask 64512   ;;  %v52_v48 = vlaneseq }
   0xc   :  { %v7660_v55 = vmov -1e+09   ;;  %vm797_vm6 = vcmask 130048  }
   0xd   :  { %v7799_v49 = vshrl.u32 %v52_v48, 7  ;;  %v56_v50 = vand.u32 127, %v52_v48 }
   0xf   :  { %v57_v51 = vshra.s32 %v7799_v49, 3  ;;  %v59_v52 = vshra.s32 %v56_v50, 3  ;;  %v54_v53 = vadd.s32 8, %v7799_v49 }
  0x11   :  { %vm60_vm4 = vcmp.eq.s32.totalorder %v57_v51, %v59_v52  ;;  %v58_v54 = vshra.s32 %v54_v53, 3 }
  0x12   :  { %v7803_v56 = vsel %vm60_vm4, 0.0, %v7660_v55 }
  0x13   :  { %vm61_vm5 = vcmp.eq.s32.totalorder %v58_v54, %v59_v52 }
  0x14   :  { %v7806_v60 = vsel %vm61_vm5, 0.0, %v7660_v55 }
  0xc9   :  { %v428_v7 = vpop.f32.mrf.mxu0 }
  0xca   :  { %v429_v8 = vadd.f32 %v6023_v6, %v428_v7 }
  0xcb   :  { %v7115_v9 = vpop.f32.mrf.mxu0 }
  0xcc   :  { %435 = vxpose.xlu0.b32.start [1/2] (short) (narrow) %v429_v8, 96 }
  0xcd   :  { %v431_v10 = vpop.f32.mrf.mxu0 }
  0xce   :  { %v432_v11 = vadd.f32 %v6023_v6, %v431_v10 }
  0xcf   :  { %v7116_v12 = vpop.f32.mrf.mxu0 }
  0xd0   :  { %436 = vxpose.xlu0.b32.end [2/2] (short) (narrow) %v432_v11, 96 }
 0x148   :  { %v451_v13 = vpop.trf.xlu0 }
 0x149   :  { %467 = vxpose.xlu1.b32.start.end [1/1] (short) (narrow) %v451_v13, 16 }
 0x14c   :  { %v452_v14 = vpop.trf.xlu0 }
 0x14e   :  { %499 = vxpose.xlu1.b32.start.end [1/1] (short) (narrow) %v452_v14, 16 }
 0x150   :  { %v453_v15 = vpop.trf.xlu0 }
 0x154   :  { %v454_v16 = vpop.trf.xlu0 }
 0x155   :  { %v7252_v17 = vpack.i.bf16 %v454_v16, %v453_v15 }
 0x157   :  { %7253 = vxpose.xlu0.b32.start.end [1/1] (short) (narrow) %v7252_v17, 16 }
 0x158   :  { %v455_v18 = vpop.trf.xlu0 }
 0x159   :  { %v599_v19 = vpack.c.bf16 %v455_v18, %v455_v18 }
 0x15b   :  { %v613_v20 = vsel %vm611_vm2, %v599_v19, 0 }
 0x15c   :  { %7118 = vmatpush3.bf16.msra.mxu1 %v613_v20  ;;  %v456_v21 = vpop.trf.xlu0 }
 0x15d   :  { %7123 = vmatprep.subr.bf16.mxu1 %v7658_v1  ;;  %v600_v30 = vpack.c.bf16 %v456_v21, %v456_v21 }
 0x15f   :  { %v660_v33 = vsel %vm611_vm2, %v600_v30, 0 }
 0x160   :  { %v457_v22 = vpop.trf.xlu0 }
 0x161   :  { %v601_v23 = vpack.c.bf16 %v457_v22, %v457_v22 }
 0x163   :  { %v707_v24 = vsel %vm611_vm2, %v601_v23, 0 }
 0x164   :  { %7130 = vmatpush3.bf16.msra.mxu0 %v707_v24  ;;  %v458_v25 = vpop.trf.xlu0 }
 0x165   :  { %7141 = vmatprep.subr.bf16.mxu0 %v7658_v1  ;;  %v602_v36 = vpack.c.bf16 %v458_v25, %v458_v25 }
 0x167   :  { %v754_v40 = vsel %vm611_vm2, %v602_v36, 0 }
 0x168   :  { %v7775_v26 = vpop.trf.xlu0 }
 0x16c   :  { %v7777_v27 = vpop.trf.xlu0 }
 0x170   :  { %v7779_v29 = vpop.trf.xlu0 }
 0x174   :  { %v7783_v35 = vpop.trf.xlu0 }
 0x1c5   :  { %v483_v28 = vpop.trf.xlu1 }
 0x1c9   :  { %v484_v31 = vpop.trf.xlu1 }
 0x1ca   :  { %v595_v32 = vpack.c.bf16 %v484_v31, %v483_v28 }
 0x1cc   :  { %7120 = vmatmul.mubr.msk.bf16.vlgmr.msra.gmra.mxu1 %vm607_vm3, %v595_v32 }
 0x1cd   :  { %7124 = vmatpush3.bf16.msra.mxu1 %v660_v33  ;;  %v515_v34 = vpop.trf.xlu1  ;;  %7125 = vmatprep.mubr.msk.bf16.mxu1 %vm7659_vm0, %v7658_v1 }
 0x1ce   :  { %7135 = vmatprep.subr.bf16.mxu1 %v7658_v1 }
 0x1d1   :  { %v516_v37 = vpop.trf.xlu1 }
 0x1d2   :  { %v596_v38 = vpack.c.bf16 %v516_v37, %v515_v34 }
 0x1d3   :  { %v7254_v39 = vpop.trf.xlu0 }
 0x1d4   :  { %7126 = vmatmul.mubr.msk.bf16.vlgmr.msra.gmra.mxu1 %vm607_vm3, %v596_v38  ;;  %v7258_v41 = vunpack.i.h.bf16 %v7254_v39  ;;  %v7255_v42 = vunpack.i.l.bf16 %v7254_v39 }
 0x1d5   :  { %7136 = vmatpush3.bf16.msra.mxu1 %v754_v40  ;;  %7137 = vmatprep.mubr.msk.bf16.mxu1 %vm7659_vm0, %v7658_v1 }
 0x1d6   :  { %7147 = vmatprep.subr.bf16.mxu1 %v7658_v1 }
 0x1d7   :  { %v7259_v43 = vpop.trf.xlu0 }
 0x1d8   :  { %v7263_v44 = vunpack.i.h.bf16 %v7259_v43  ;;  %v7260_v45 = vunpack.i.l.bf16 %v7259_v43 }
 0x1da   :  { %v597_v46 = vpack.c.bf16 %v7260_v45, %v7255_v42  ;;  %v598_v47 = vpack.c.bf16 %v7263_v44, %v7258_v41 }
 0x1dc   :  { %7132 = vmatmul.mubr.msk.bf16.vlgmr.msra.gmra.mxu0 %vm607_vm3, %v597_v46  ;;  %7138 = vmatmul.mubr.msk.bf16.vlgmr.msra.gmra.mxu1 %vm607_vm3, %v598_v47 }
 0x1dd   :  { %7143 = vmatprep.mubr.msk.bf16.mxu0 %vm7659_vm0, %v7658_v1  ;;  %7149 = vmatprep.mubr.msk.bf16.mxu1 %vm7659_vm0, %v7658_v1 }
 0x28c   :  { %v649_v57 = vpop.f32.mrf.mxu1 }
 0x28d   :  { %v650_v58 = vadd.f32 %v649_v57, %v7803_v56 }
 0x28e   :  { %v7121_v59 = vpop.f32.mrf.mxu1 }
 0x28f   :  { %v798_v61 = vsel %vm797_vm6, %v650_v58, -inf }
 0x290   :  { %v652_v62 = vpop.f32.mrf.mxu1  ;;  %799 = vmax.xlane.f32.xlu1 %v798_v61 }
 0x291   :  { %v653_v63 = vadd.f32 %v652_v62, %v7806_v60 }
 0x292   :  { %v7122_v0 = vpop.f32.mrf.mxu1 }
 0x293   :  { %v801_v2 = vsel %vm797_vm6, %v653_v63, -inf }
 0x294   :  { %v696_v3 = vpop.f32.mrf.mxu1  ;;  %802 = vmax.xlane.f32.xlu0 %v801_v2 }
 0x295   :  { %v697_v4 = vadd.f32 %v696_v3, %v7803_v56 }
 0x296   :  { %v7127_v5 = vpop.f32.mrf.mxu1 }
 0x297   :  { %v804_v6 = vsel %vm797_vm6, %v697_v4, -inf }
 0x298   :  { %v699_v7 = vpop.f32.mrf.mxu1  ;;  %805 = vmax.xlane.f32.xlu1 %v804_v6 }
 0x299   :  { %v700_v14 = vadd.f32 %v699_v7, %v7806_v60 }
 0x29a   :  { %v7128_v8 = vpop.f32.mrf.mxu1 }
 0x29b   :  { %v807_v21 = vsel %vm797_vm6, %v700_v14, -inf }
 0x29c   :  { %v743_v9 = vpop.f32.mrf.mxu0  ;;  %v790_v10 = vpop.f32.mrf.mxu1 }
 0x29d   :  { %v744_v11 = vadd.f32 %v743_v9, %v7803_v56  ;;  %v791_v22 = vadd.f32 %v790_v10, %v7803_v56 }
 0x29e   :  { %v7133_v12 = vpop.f32.mrf.mxu0  ;;  %v7139_v13 = vpop.f32.mrf.mxu1 }
 0x29f   :  { %v810_v15 = vsel %vm797_vm6, %v744_v11, -inf  ;;  %v816_v25 = vsel %vm797_vm6, %v791_v22, -inf }
 0x2a0   :  { %v746_v16 = vpop.f32.mrf.mxu0  ;;  %v793_v17 = vpop.f32.mrf.mxu1  ;;  %811 = vmax.xlane.f32.xlu1 %v810_v15 }
 0x2a1   :  { %v747_v20 = vadd.f32 %v746_v16, %v7806_v60  ;;  %v794_v24 = vadd.f32 %v793_v17, %v7806_v60 }
 0x2a2   :  { %v7134_v18 = vpop.f32.mrf.mxu0  ;;  %v7140_v19 = vpop.f32.mrf.mxu1 }
 0x2a3   :  { %v813_v23 = vsel %vm797_vm6, %v747_v20, -inf  ;;  %v819_v28 = vsel %vm797_vm6, %v794_v24, -inf }
 0x2a4   :  { %808 = vmax.xlane.f32.xlu1 %v807_v21 }
 0x2a8   :  { %814 = vmax.xlane.f32.xlu1 %v813_v23 }
 0x2ac   :  { %817 = vmax.xlane.f32.xlu1 %v816_v25 }
 0x2b0   :  { %820 = vmax.xlane.f32.xlu1 %v819_v28 }
 0x319   :  { %v800_v30 = vpop.xlane.xlu1 %799 }
 0x31a   :  { %v822_v31 = vsub.f32 %v650_v58, %v800_v30 }
 0x31c   :  { %v830_v32 = vmul.f32 1.442695, %v822_v31 }
 0x31d   :  { %v803_v33 = vpop.xlane.xlu0 %802 }
 0x31e   :  { %7554 = vpow2.f32 %v830_v32  ;;  %v823_v34 = vsub.f32 %v653_v63, %v803_v33 }
 0x320   :  { %v832_v36 = vmul.f32 1.442695, %v823_v34 }
 0x321   :  { %v806_v37 = vpop.xlane.xlu1 %805 }
 0x322   :  { %7556 = vpow2.f32 %v832_v36  ;;  %v824_v38 = vsub.f32 %v697_v4, %v806_v37 }
 0x324   :  { %v834_v39 = vmul.f32 1.442695, %v824_v38 }
 0x326   :  { %7558 = vpow2.f32 %v834_v39 }
 0x329   :  { %v812_v40 = vpop.xlane.xlu1 %811 }
 0x32a   :  { %v826_v41 = vsub.f32 %v744_v11, %v812_v40 }
 0x32b   :  { %v7555_v42 = vpop.eup %7554 }
 0x32c   :  { %v838_v43 = vmul.f32 1.442695, %v826_v41  ;;  %v846_v44 = vsel %vm797_vm6, %v7555_v42, 0.0 }
 0x32d   :  { %847 = vadd.xlane.f32.xlu1 %v846_v44  ;;  %v809_v45 = vpop.xlane.xlu1 %808 }
 0x32e   :  { %7560 = vpow2.f32 %v838_v43  ;;  %v825_v46 = vsub.f32 %v700_v14, %v809_v45 }
 0x32f   :  { %v7557_v47 = vpop.eup %7556 }
 0x330   :  { %v836_v48 = vmul.f32 1.442695, %v825_v46  ;;  %v849_v50 = vsel %vm797_vm6, %v7557_v47, 0.0  ;;  %v605_v46 = vpack.c.bf16 %v7779_v29, %v7779_v29 }
 0x331   :  { %v815_v51 = vpop.xlane.xlu1 %814  ;;  %850 = vadd.xlane.f32.xlu1 %v849_v50  ;;  %v7290_v50 = vld [vmem:[%s9265_s3 + $0x8] sm:$0xff]  }
 0x332   :  { %7562 = vpow2.f32 %v836_v48  ;;  %v827_v52 = vsub.f32 %v747_v20, %v815_v51 }
 0x333   :  { %v7559_v53 = vpop.eup %7558 }
 0x334   :  { %v840_v54 = vmul.f32 1.442695, %v827_v52  ;;  %v852_v55 = vsel %vm797_vm6, %v7559_v53, 0.0 }
 0x335   :  { %v818_v57 = vpop.xlane.xlu1 %817  ;;  %853 = vadd.xlane.f32.xlu1 %v852_v55 }
 0x336   :  { %7564 = vpow2.f32 %v840_v54  ;;  %v828_v58 = vsub.f32 %v791_v22, %v818_v57  ;;  %v7291_v54 = vld [vmem:[%s9265_s3] sm:$0xff]  }
 0x338   :  { %v842_v59 = vmul.f32 1.442695, %v828_v58 }
 0x339   :  { %v821_v61 = vpop.xlane.xlu1 %820 }
 0x33a   :  { %7566 = vpow2.f32 %v842_v59  ;;  %v829_v62 = vsub.f32 %v794_v24, %v821_v61  ;;  %v603_v24 = vpack.c.bf16 %v7775_v26, %v7775_v26 }
 0x33b   :  { %v7561_v63 = vpop.eup %7560 }
 0x33c   :  { %v844_v0 = vmul.f32 1.442695, %v829_v62  ;;  %v858_v2 = vsel %vm797_vm6, %v7561_v63, 0.0 }
 0x33d   :  { %859 = vadd.xlane.f32.xlu1 %v858_v2 }
 0x33e   :  { %7568 = vpow2.f32 %v844_v0 }
 0x33f   :  { %v7563_v3 = vpop.eup %7562 }
 0x340   :  { %v855_v4 = vsel %vm797_vm6, %v7563_v3, 0.0 }
 0x341   :  { %856 = vadd.xlane.f32.xlu1 %v855_v4 }
 0x343   :  { %v7565_v5 = vpop.eup %7564 }
 0x344   :  { %v861_v6 = vsel %vm797_vm6, %v7565_v5, 0.0 }
 0x345   :  { %862 = vadd.xlane.f32.xlu1 %v861_v6 }
 0x347   :  { %v7567_v7 = vpop.eup %7566 }
 0x348   :  { %v864_v8 = vsel %vm797_vm6, %v7567_v7, 0.0 }
 0x349   :  { %865 = vadd.xlane.f32.xlu0 %v864_v8  ;;  %v6035_v8 = vld [vmem:[%s9266_s4] ss:$0 sm:$0xff] }
 0x34b   :  { %v7569_v9 = vpop.eup %7568 }
 0x34c   :  { %v867_v10 = vsel %vm797_vm6, %v7569_v9, 0.0 }
 0x34d   :  { %868 = vadd.xlane.f32.xlu1 %v867_v10 }
 0x3b6   :  { %v848_v11 = vpop.xlane.xlu1 %847 }
 0x3b7   :  { %7570 = vrcp.f32 %v848_v11 }
 0x3ba   :  { %v851_v12 = vpop.xlane.xlu1 %850 }
 0x3bb   :  { %7572 = vrcp.f32 %v851_v12  ;;  %v7634_v12 = vld [vmem:[%s9262_s0] sm:$0xff] }
 0x3be   :  { %v854_v13 = vpop.xlane.xlu1 %853 }
 0x3bf   :  { %7574 = vrcp.f32 %v854_v13 }
 0x3c4   :  { %v7571_v14 = vpop.eup %7570 }
 0x3c5   :  { %v878_v17 = vmul.f32 %v7571_v14, %v7555_v42  ;;  %v604_v42 = vpack.c.bf16 %v7777_v27, %v7777_v27  ;;  %v606_v27 = vpack.c.bf16 %v7783_v35, %v7783_v35 }
 0x3c6   :  { %v860_v15 = vpop.xlane.xlu1 %859 }
 0x3c8   :  { %v7573_v16 = vpop.eup %7572 }
 0x3c9   :  { %v879_v18 = vmul.f32 %v7573_v16, %v7557_v47 }
 0x3ca   :  { %v857_v19 = vpop.xlane.xlu1 %856 }
 0x3cb   :  { %7576 = vrcp.f32 %v857_v19  ;;  %v886_v20 = vpack.c.bf16 %v879_v18, %v878_v17  ;;  %v7635_v18 = vld [vmem:[%s9262_s0 + $0x8] sm:$0xff] }
 0x3cc   :  { %7578 = vrcp.f32 %v860_v15  ;;  %v7575_v25 = vpop.eup %7574 }
 0x3cd   :  { %v894_v21 = vsel %vm797_vm6, %v886_v20, 0  ;;  %v880_v31 = vmul.f32 %v7575_v25, %v7559_v53 }
 0x3ce   :  { %7142 = vmatpush3.bf16.xpose.msra.mxu0 %v894_v21  ;;  %v863_v22 = vpop.xlane.xlu1 %862 }
 0x3cf   :  { %7580 = vrcp.f32 %v863_v22  ;;  %7153 = vmatprep.subr.bf16.mxu0 %v7658_v1 }
 0x3d2   :  { %v866_v23 = vpop.xlane.xlu0 %865 }
 0x3d3   :  { %7582 = vrcp.f32 %v866_v23 }
 0x3d5   :  { %7144 = vmatmul.mubr.msk.bf16.vlgmr.msra.gmra.mxu0 %vm797_vm6, %v603_v24 }
 0x3d6   :  { %v869_v28 = vpop.xlane.xlu1 %868  ;;  %7155 = vmatprep.mubr.msk.bf16.mxu0 %vm7659_vm0, %v7658_v1 }
 0x3d7   :  { %7584 = vrcp.f32 %v869_v28 }
 0x3d8   :  { %v7577_v30 = vpop.eup %7576 }
 0x3d9   :  { %v881_v32 = vmul.f32 %v7577_v30, %v7563_v3  ;;  %v7579_v33 = vpop.eup %7578 }
 0x3da   :  { %v882_v38 = vmul.f32 %v7579_v33, %v7561_v63 }
 0x3db   :  { %v887_v34 = vpack.c.bf16 %v881_v32, %v880_v31 }
 0x3dc   :  { %v7581_v36 = vpop.eup %7580 }
 0x3dd   :  { %v940_v37 = vsel %vm797_vm6, %v887_v34, 0  ;;  %v883_v39 = vmul.f32 %v7581_v36, %v7565_v5  ;;  %v94_v34 = vld [vmem:[%s9269_s7 + $0x80] sm:$0xff] }
 0x3de   :  { %7148 = vmatpush3.bf16.xpose.msra.mxu1 %v940_v37  ;;  %v102_v36 = vld [vmem:[%s9269_s7 + $0xc0] sm:$0xff]  ;;  %v95_v37 = vld [vmem:[%s9269_s7 + $0x88] sm:$0xff] }
 0x3df   :  { %v888_v26 = vpack.c.bf16 %v883_v39, %v882_v38  ;;  %7159 = vmatprep.subr.bf16.mxu1 %v7658_v1  ;;  %v6058_v38 = vcombine.high %v94_v34, %v102_v36  ;;  %v103_v39 = vld [vmem:[%s9269_s7 + $0xc8] sm:$0xff] }
 0x3e0   :  { %v7583_v41 = vpop.eup %7582 }
 0x3e1   :  { %v986_v40 = vsel %vm797_vm6, %v888_v26, 0  ;;  %v884_v44 = vmul.f32 %v7583_v41, %v7567_v7  ;;  %v6057_v26 = vcombine.low %v94_v34, %v102_v36  ;;  %v6060_v41 = vcombine.high %v95_v37, %v103_v39 }
 0x3e2   :  { %7154 = vmatpush3.bf16.xpose.msra.mxu0 %v986_v40  ;;  %v6059_v40 = vcombine.low %v95_v37, %v103_v39  ;;  %v100_v39 = vld [vmem:[%s9269_s7 + $0xb0] sm:$0xff] }
 0x3e3   :  { %7165 = vmatprep.subr.bf16.mxu0 %v7658_v1 }
 0x3e4   :  { %v7585_v43 = vpop.eup %7584 }
 0x3e5   :  { %7150 = vmatmul.mubr.msk.bf16.vlgmr.msra.gmra.mxu1 %vm797_vm6, %v604_v42  ;;  %v885_v45 = vmul.f32 %v7585_v43, %v7569_v9  ;;  %v78_v42 = vld [vmem:[%s9269_s7] sm:$0xff] }
 0x3e6   :  { %7161 = vmatprep.mubr.msk.bf16.mxu1 %vm7659_vm0, %v7658_v1  ;;  %v86_v43 = vld [vmem:[%s9269_s7 + $0x40] sm:$0xff] }
 0x3e7   :  { %v889_v47 = vpack.c.bf16 %v885_v45, %v884_v44  ;;  %v79_v44 = vld [vmem:[%s9269_s7 + $0x8] sm:$0xff]  ;;  %v6042_v45 = vcombine.high %v78_v42, %v86_v43 }
 0x3e9   :  { %7156 = vmatmul.mubr.msk.bf16.vlgmr.msra.gmra.mxu0 %vm797_vm6, %v605_v46  ;;  %v1032_v48 = vsel %vm797_vm6, %v889_v47, 0  ;;  %v87_v46 = vld [vmem:[%s9269_s7 + $0x48] sm:$0xff]  ;;  %v6041_v47 = vcombine.low %v78_v42, %v86_v43 }
 0x3ea   :  { %7160 = vmatpush3.bf16.xpose.msra.mxu1 %v1032_v48  ;;  %7169 = vmatprep.mubr.msk.bf16.mxu0 %vm7659_vm0, %v7658_v1  ;;  %v6043_v48 = vcombine.low %v79_v44, %v87_v46 }
 0x3eb   :  { %7166 = vmatpush3.bf16.msra.mxu0 %v7290_v50  ;;  %1472 = vmatprep.subr.bf16.mxu1 %v6058_v38  ;;  %v96_v50 = vld [vmem:[%s9269_s7 + $0x90] sm:$0xff] }
 0x3ec   :  { %7167 = vmatprep.subr.bf16.mxu0 %v7658_v1 }
 0x3ef   :  { %7168 = vmatpush3.bf16.msra.mxu0 %v7291_v54  ;;  %v105_v54 = vld [vmem:[%s9269_s7 + $0xd8] sm:$0xff] }
 0x3f0   :  { %1515 = vmatprep.subr.bf16.mxu0 %v6060_v41  ;;  %v109_v41 = vld [vmem:[%s9269_s7 + $0xf8] sm:$0xff] }
 0x3f1   :  { %7162 = vmatmul.mubr.msk.bf16.vlgmr.msra.gmra.mxu1 %vm797_vm6, %v606_v27  ;;  %v6044_v27 = vcombine.high %v79_v44, %v87_v46  ;;  %v84_v46 = vld [vmem:[%s9269_s7 + $0x30] sm:$0xff] }
 0x3f2   :  { %1473 = vmatpush1.bf16.msra.mxu1 %v6057_v26  ;;  %v108_v26 = vld [vmem:[%s9269_s7 + $0xf0] sm:$0xff] }
 0x3f3   :  { %1474 = vmatprep.subr.bf16.mxu1 %v6042_v45  ;;  %v6070_v44 = vcombine.high %v100_v39, %v108_v26 }
 0x3f6   :  { %1475 = vmatpush1.bf16.msra.mxu1 %v6041_v47  ;;  %v92_v47 = vld [vmem:[%s9269_s7 + $0x70] sm:$0xff] }
 0x495   :  { %v930_v29 = vpop.f32.mrf.mxu0 }
 0x496   :  { %1074 = vxpose.xlu0.b32.start [1/4] (short) (narrow) %v930_v29, 16  ;;  %v104_v29 = vld [vmem:[%s9269_s7 + $0xd0] sm:$0xff] }
 0x497   :  { %v7145_v51 = vpop.f32.mrf.mxu0 }
 0x498   :  { %v97_v51 = vld [vmem:[%s9269_s7 + $0x98] sm:$0xff] }
 0x499   :  { %v933_v52 = vpop.f32.mrf.mxu0 }
 0x49a   :  { %v7661_v52 = vmov 0  }
 0x49b   :  { %v7146_v53 = vpop.f32.mrf.mxu0  ;;  %1492 = vmatprep.mubr.bf16.mxu1 %v7661_v52 }
 0x49c   :  { %v6062_v53 = vcombine.high %v96_v50, %v104_v29 }
 0x49e   :  { %1558 = vmatprep.subr.bf16.mxu1 %v6062_v53 }
 0x4a5   :  { %v976_v35 = vpop.f32.mrf.mxu1 }
 0x4a6   :  { %1075 = vxpose.xlu0.b32.cont [2/4] (short) (narrow) %v976_v35, 16  ;;  %v6061_v35 = vcombine.low %v96_v50, %v104_v29  ;;  %v6069_v50 = vcombine.low %v100_v39, %v108_v26 }
 0x4a7   :  { %v7151_v55 = vpop.f32.mrf.mxu1 }
 0x4a8   :  { %v6063_v55 = vcombine.low %v97_v51, %v105_v54 }
 0x4a9   :  { %v979_v57 = vpop.f32.mrf.mxu1  ;;  %v1022_v58 = vpop.f32.mrf.mxu0 }
 0x4aa   :  { %1076 = vxpose.xlu0.b32.cont [3/4] (short) (narrow) %v1022_v58, 16  ;;  %v6064_v57 = vcombine.high %v97_v51, %v105_v54  ;;  %v6054_v51 = vcombine.high %v84_v46, %v92_v47  ;;  %v6053_v54 = vcombine.low %v84_v46, %v92_v47 }
 0x4ab   :  { %v7152_v59 = vpop.f32.mrf.mxu1  ;;  %v7157_v61 = vpop.f32.mrf.mxu0 }
 0x4ad   :  { %v1025_v62 = vpop.f32.mrf.mxu0 }
 0x4af   :  { %v7158_v63 = vpop.f32.mrf.mxu0 }
 0x4b1   :  { %v1068_v0 = vpop.f32.mrf.mxu1 }
 0x4b2   :  { %1077 = vxpose.xlu0.b32.end [4/4] (short) (narrow) %v1068_v0, 16 }
 0x4b3   :  { %v7163_v2 = vpop.f32.mrf.mxu1 }
 0x4b5   :  { %v1071_v3 = vpop.f32.mrf.mxu1 }
 0x4b7   :  { %v7164_v4 = vpop.f32.mrf.mxu1 }
 0x4b8   :  { %v6039_v4 = vld [vmem:[%s9267_s5] ss:$0 sm:$0xff] }
 0x522   :  { %v1090_v5 = vpop.trf.xlu0 }
 0x526   :  { %v1091_v6 = vpop.trf.xlu0 }
 0x527   :  { %v1106_v7 = vpack.c.bf16 %v1091_v6, %v1090_v5 }
 0x529   :  { %7170 = vmatmul.mubr.msk.bf16.vlgmr.msra.gmra.mxu0 %vm390_vm1, %v1106_v7 }
 0x52a   :  { %1516 = vmatpush1.bf16.msra.mxu0 %v6059_v40  ;;  %1535 = vmatprep.mubr.bf16.mxu0 %v7661_v52  ;;  %v101_v40 = vld [vmem:[%s9269_s7 + $0xb8] sm:$0xff] }
 0x52b   :  { %1517 = vmatprep.subr.bf16.mxu0 %v6044_v27  ;;  %v6072_v45 = vcombine.high %v101_v40, %v109_v41  ;;  %v93_v27 = vld [vmem:[%s9269_s7 + $0x78] sm:$0xff]  ;;  %v6071_v29 = vcombine.low %v101_v40, %v109_v41 }
 0x52e   :  { %1518 = vmatpush1.bf16.msra.mxu0 %v6043_v48  ;;  %v85_v48 = vld [vmem:[%s9269_s7 + $0x38] sm:$0xff] }
 0x52f   :  { %1601 = vmatprep.subr.bf16.mxu0 %v6064_v57  ;;  %v6056_v53 = vcombine.high %v85_v48, %v93_v27  ;;  %v7293_v57 = vld [vmem:[%s9271_s9 + $0xf8] sm:$0xff]  }
 0x5e9   :  { %v1162_v9 = vpop.f32.mrf.mxu0 }
 0x5ea   :  { %v1163_v10 = vadd.f32 %v6035_v8, %v1162_v9 }
 0x5eb   :  { %v7171_v11 = vpop.f32.mrf.mxu0 }
 0x5ec   :  { %v1169_v13 = vadd.f32 %v7634_v12, %v1163_v10  ;;  %v80_v10 = vld [vmem:[%s9269_s7 + $0x10] sm:$0xff]  ;;  %v81_v12 = vld [vmem:[%s9269_s7 + $0x18] sm:$0xff] }
 0x5ed   :  { %v1165_v14 = vpop.f32.mrf.mxu0  ;;  %v88_v11 = vld [vmem:[%s9269_s7 + $0x50] sm:$0xff] }
 0x5ee   :  { %v1166_v15 = vadd.f32 %v6035_v8, %v1165_v14  ;;  %v1171_v16 = vsel %vm390_vm1, %v1169_v13, 0.0  ;;  %v6040_v8 = vld [vmem:[%s9268_s6] ss:$0 sm:$0xff] }
 0x5ef   :  { %1172 = vadd.xlane.f32.xlu1 %v1171_v16  ;;  %v7172_v17 = vpop.f32.mrf.mxu0 }
 0x5f0   :  { %v1170_v19 = vadd.f32 %v7635_v18, %v1166_v15  ;;  %v6046_v17 = vcombine.high %v80_v10, %v88_v11 }
 0x5f2   :  { %v1174_v20 = vsel %vm390_vm1, %v1170_v19, 0.0 }
 0x5f3   :  { %1175 = vadd.xlane.f32.xlu1 %v1174_v20  ;;  %v106_v20 = vld [vmem:[%s9269_s7 + $0xe0] sm:$0xff] }
 0x678   :  { %v1173_v21 = vpop.xlane.xlu1 %1172 }
 0x679   :  { %v1178_v22 = vmul.f32 0.03125, %v1173_v21  ;;  %v99_v21 = vld [vmem:[%s9269_s7 + $0xa8] sm:$0xff] }
 0x67b   :  { %v1180_v23 = vsub.f32 %v1169_v13, %v1178_v22  ;;  %v89_v13 = vld [vmem:[%s9269_s7 + $0x58] sm:$0xff]  ;;  %v107_v22 = vld [vmem:[%s9269_s7 + $0xe8] sm:$0xff] }
 0x67c   :  { %v1176_v24 = vpop.xlane.xlu1 %1175  ;;  %v6048_v18 = vcombine.high %v81_v12, %v89_v13  ;;  %v6067_v36 = vcombine.low %v99_v21, %v107_v22 }
 0x67d   :  { %v1179_v25 = vmul.f32 0.03125, %v1176_v24  ;;  %v1182_v28 = vmul.f32 %v1180_v23, %v1180_v23  ;;  %v6047_v24 = vcombine.low %v81_v12, %v89_v13  ;;  %v7310_v12 = vld [vmem:[%s9271_s9 + $0x18] sm:$0xff]  }
 0x67e   :  { %v7311_v13 = vld [vmem:[%s9271_s9 + $0x98] sm:$0xff]  }
 0x67f   :  { %v1181_v30 = vsub.f32 %v1170_v19, %v1179_v25  ;;  %v1184_v31 = vsel %vm390_vm1, %v1182_v28, 0.0  ;;  %v98_v19 = vld [vmem:[%s9269_s7 + $0xa0] sm:$0xff]  ;;  %v6068_v28 = vcombine.high %v99_v21, %v107_v22  ;;  %v7317_v21 = vld [vmem:[%s9271_s9 + $0xc8] sm:$0xff]  }
 0x680   :  { %1185 = vadd.xlane.f32.xlu1 %v1184_v31  ;;  %v6066_v25 = vcombine.high %v98_v19, %v106_v20  ;;  %v90_v31 = vld [vmem:[%s9269_s7 + $0x60] sm:$0xff]  ;;  %v6065_v34 = vcombine.low %v98_v19, %v106_v20  ;;  %v7315_v19 = vld [vmem:[%s9271_s9 + $0x90] sm:$0xff]   ;;  %v7316_v20 = vld [vmem:[%s9271_s9 + $0x48] sm:$0xff]  }
 0x681   :  { %v1183_v32 = vmul.f32 %v1181_v30, %v1181_v30  ;;  %v7318_v22 = vld [vmem:[%s9271_s9 + $0x8] sm:$0xff]  }
 0x683   :  { %v1187_v33 = vsel %vm390_vm1, %v1183_v32, 0.0  ;;  %v83_v32 = vld [vmem:[%s9269_s7 + $0x28] sm:$0xff] }
 0x684   :  { %1188 = vadd.xlane.f32.xlu1 %v1187_v33  ;;  %v91_v33 = vld [vmem:[%s9269_s7 + $0x68] sm:$0xff] }
 0x685   :  { %v6052_v38 = vcombine.high %v83_v32, %v91_v33  ;;  %v6051_v43 = vcombine.low %v83_v32, %v91_v33  ;;  %v7325_v32 = vld [vmem:[%s9271_s9 + $0x1f8] sm:$0xff]   ;;  %v8114_v33 = vsub.s32 1, %v7799_v49 }
 0x709   :  { %v1186_v58 = vpop.xlane.xlu1 %1185 }
 0x70a   :  { %v1190_v59 = vmul.f32 0.03125, %v1186_v58  ;;  %v7294_v58 = vld [vmem:[%s9271_s9 + $0x38] sm:$0xff]  }
 0x70c   :  { %v1192_v61 = vadd.f32 1e-05, %v1190_v59  ;;  %v7295_v59 = vld [vmem:[%s9271_s9 + $0xb8] sm:$0xff]  }
 0x70d   :  { %v1189_v62 = vpop.xlane.xlu1 %1188 }
 0x70e   :  { %7586 = vrsqrt.f32 %v1192_v61  ;;  %v1191_v63 = vmul.f32 0.03125, %v1189_v62  ;;  %v7296_v61 = vld [vmem:[%s9271_s9 + $0x70] sm:$0xff]  }
 0x70f   :  { %v7297_v62 = vld [vmem:[%s9271_s9 + $0xf0] sm:$0xff]  }
 0x710   :  { %v1193_v0 = vadd.f32 1e-05, %v1191_v63  ;;  %v7298_v63 = vld [vmem:[%s9271_s9 + $0x30] sm:$0xff]  }
 0x712   :  { %7588 = vrsqrt.f32 %v1193_v0  ;;  %v7299_v0 = vld [vmem:[%s9271_s9 + $0xb0] sm:$0xff]  }
 0x71b   :  { %v7587_v2 = vpop.eup %7586 }
 0x71c   :  { %v1196_v3 = vmul.f32 %v7587_v2, %v1180_v23  ;;  %v6045_v23 = vcombine.low %v80_v10, %v88_v11  ;;  %v7300_v2 = vld [vmem:[%s9271_s9 + $0x68] sm:$0xff]   ;;  %v7308_v10 = vld [vmem:[%s9271_s9 + $0x58] sm:$0xff]  }
 0x71d   :  { %v7309_v11 = vld [vmem:[%s9271_s9 + $0xd8] sm:$0xff]  }
 0x71e   :  { %v1204_v6 = vmul.f32 %v6039_v4, %v1196_v3  ;;  %v7301_v3 = vld [vmem:[%s9271_s9 + $0xe8] sm:$0xff]  }
 0x71f   :  { %v7589_v5 = vpop.eup %7588 }
 0x720   :  { %v1197_v7 = vmul.f32 %v7589_v5, %v1181_v30  ;;  %v7933_v14 = vadd.f32 %v6040_v8, %v1204_v6  ;;  %v82_v30 = vld [vmem:[%s9269_s7 + $0x20] sm:$0xff]  ;;  %v7303_v5 = vld [vmem:[%s9271_s9 + $0xa8] sm:$0xff]  }
 0x721   :  { %v6050_v37 = vcombine.high %v82_v30, %v90_v31  ;;  %v6049_v42 = vcombine.low %v82_v30, %v90_v31  ;;  %v7304_v6 = vld [vmem:[%s9271_s9 + $0x60] sm:$0xff]   ;;  %v7324_v31 = vld [vmem:[%s9271_s9 + $0x178] sm:$0xff]  }
 0x722   :  { %v1205_v9 = vmul.f32 %v6039_v4, %v1197_v7  ;;  %v7302_v4 = vld [vmem:[%s9271_s9 + $0x28] sm:$0xff]   ;;  %v7305_v7 = vld [vmem:[%s9271_s9 + $0xe0] sm:$0xff]  }
 0x723   :  { %v7323_v30 = vld [vmem:[%s9271_s9 + $0x80] sm:$0xff]  }
 0x724   :  { %v7935_v15 = vadd.f32 %v6040_v8, %v1205_v9  ;;  %v7306_v8 = vld [vmem:[%s9271_s9 + $0x20] sm:$0xff]  }
 0x725   :  { %v7307_v9 = vld [vmem:[%s9271_s9 + $0xa0] sm:$0xff]  }
 0x726   :  { %v7939_v16 = vpack.c.bf16 %v7935_v15, %v7933_v14 }
 0x728   :  { %6073 = vmatmul.mubr.msk.bf16.vlgmr.msra.gmra.mxu1 %vm390_vm1, %v7939_v16  ;;  %6074 = vmatmul.mubr.msk.bf16.vlgmr.msra.gmra.mxu0 %vm390_vm1, %v7939_v16 }
 0x729   :  { %1559 = vmatpush1.bf16.msra.mxu1 %v6061_v35  ;;  %1602 = vmatpush1.bf16.msra.mxu0 %v6063_v55  ;;  %v6055_v35 = vcombine.low %v85_v48, %v93_v27  ;;  %v7292_v55 = vld [vmem:[%s9271_s9 + $0x78] sm:$0xff]   ;;  %v8139_v48 = vsub.s32 5, %v7799_v49  ;;  %v8142_v27 = vsub.s32 7, %v7799_v49 }
 0x72a   :  { %1560 = vmatprep.subr.bf16.mxu1 %v6046_v17  ;;  %1603 = vmatprep.subr.bf16.mxu0 %v6048_v18  ;;  %v7313_v17 = vld [vmem:[%s9271_s9 + $0xd0] sm:$0xff]  }
 0x72b   :  { %1578 = vmatprep.mubr.bf16.mxu1 %v7661_v52  ;;  %1621 = vmatprep.mubr.bf16.mxu0 %v7661_v52  ;;  %v7314_v18 = vld [vmem:[%s9271_s9 + $0x10] sm:$0xff]  }
 0x72d   :  { %1561 = vmatpush1.bf16.msra.mxu1 %v6045_v23  ;;  %1604 = vmatpush1.bf16.msra.mxu0 %v6047_v24  ;;  %v7319_v23 = vld [vmem:[%s9271_s9 + $0x88] sm:$0xff]   ;;  %v7320_v24 = vld [vmem:[%s9271_s9 + $0x40] sm:$0xff]  }
 0x72e   :  { %1644 = vmatprep.subr.bf16.mxu1 %v6066_v25  ;;  %1687 = vmatprep.subr.bf16.mxu0 %v6068_v28  ;;  %v7321_v25 = vld [vmem:[%s9271_s9 + $0xc0] sm:$0xff]  }
 0x72f   :  { %v7322_v28 = vld [vmem:[%s9271_s9] sm:$0xff]  }
 0x730   :  { %6075 = vmatmul.mubr.msk.bf16.vlgmr.msra.gmra.mxu1 %vm390_vm1, %v7939_v16  ;;  %6076 = vmatmul.mubr.msk.bf16.vlgmr.msra.gmra.mxu0 %vm390_vm1, %v7939_v16 }
 0x731   :  { %1645 = vmatpush1.bf16.msra.mxu1 %v6065_v34  ;;  %1688 = vmatpush1.bf16.msra.mxu0 %v6067_v36  ;;  %v8117_v34 = vsub.s32 3, %v7799_v49  ;;  %v8120_v36 = vsub.s32 0, %v7799_v49 }
 0x732   :  { %1646 = vmatprep.subr.bf16.mxu1 %v6050_v37  ;;  %1689 = vmatprep.subr.bf16.mxu0 %v6052_v38  ;;  %v8123_v37 = vsub.s32 2, %v7799_v49  ;;  %v8128_v38 = vld [vmem:[%s9270_s8] sm:$0xff] }
 0x733   :  { %1664 = vmatprep.mubr.bf16.mxu1 %v7661_v52  ;;  %1707 = vmatprep.mubr.bf16.mxu0 %v7661_v52  ;;  %v1224_v40 = vrot.slane %v8128_v38, %v8114_v33  ;;  %v1232_v41 = vrot.slane %v8128_v38, %v8117_v34 }
 0x735   :  { %1647 = vmatpush1.bf16.msra.mxu1 %v6049_v42  ;;  %1690 = vmatpush1.bf16.msra.mxu0 %v6051_v43  ;;  %v1220_v42 = vrot.slane %v8128_v38, %v8120_v36  ;;  %v1228_v43 = vrot.slane %v8128_v38, %v8123_v37 }
 0x736   :  { %1730 = vmatprep.subr.bf16.mxu1 %v6070_v44  ;;  %1773 = vmatprep.subr.bf16.mxu0 %v6072_v45 }
 0x738   :  { %6077 = vmatmul.mubr.msk.bf16.vlgmr.msra.gmra.mxu1 %vm390_vm1, %v7939_v16  ;;  %6078 = vmatmul.mubr.msk.bf16.vlgmr.msra.gmra.mxu0 %vm390_vm1, %v7939_v16 }
 0x739   :  { %1731 = vmatpush1.bf16.msra.mxu1 %v6069_v50  ;;  %1774 = vmatpush1.bf16.msra.mxu0 %v6071_v29 }
 0x73a   :  { %1732 = vmatprep.subr.bf16.mxu1 %v6054_v51  ;;  %1775 = vmatprep.subr.bf16.mxu0 %v6056_v53 }
 0x73b   :  { %1750 = vmatprep.mubr.bf16.mxu1 %v7661_v52  ;;  %1793 = vmatprep.mubr.bf16.mxu0 %v7661_v52 }
 0x73d   :  { %1733 = vmatpush1.bf16.msra.mxu1 %v6053_v54  ;;  %1776 = vmatpush1.bf16.msra.mxu0 %v6055_v35 }
 0x73e   :  { %6732 = vmatprep.subr.bf16.mxu1 %v7292_v55  ;;  %6754 = vmatprep.subr.bf16.mxu0 %v7293_v57 }
 0x740   :  { %6079 = vmatmul.mubr.msk.bf16.vlgmr.msra.gmra.mxu1 %vm390_vm1, %v7939_v16  ;;  %6080 = vmatmul.mubr.msk.bf16.vlgmr.msra.gmra.mxu0 %vm390_vm1, %v7939_v16  ;;  %v7312_v16 = vld [vmem:[%s9271_s9 + $0x50] sm:$0xff]  }
 0x741   :  { %6733 = vmatpush3.bf16.msra.mxu1 %v7294_v58  ;;  %6755 = vmatpush3.bf16.msra.mxu0 %v7295_v59 }
 0x742   :  { %6734 = vmatprep.subr.bf16.mxu1 %v7296_v61  ;;  %6756 = vmatprep.subr.bf16.mxu0 %v7297_v62 }
 0x745   :  { %6735 = vmatpush3.bf16.msra.mxu1 %v7298_v63  ;;  %6757 = vmatpush3.bf16.msra.mxu0 %v7299_v0 }
 0x746   :  { %6736 = vmatprep.subr.bf16.mxu1 %v7300_v2  ;;  %6758 = vmatprep.subr.bf16.mxu0 %v7301_v3  ;;  %v1240_v2 = vrot.slane %v8128_v38, %v8139_v48  ;;  %v1248_v3 = vrot.slane %v8128_v38, %v8142_v27 }
 0x749   :  { %6737 = vmatpush3.bf16.msra.mxu1 %v7302_v4  ;;  %6759 = vmatpush3.bf16.msra.mxu0 %v7303_v5 }
 0x74a   :  { %6738 = vmatprep.subr.bf16.mxu1 %v7304_v6  ;;  %6760 = vmatprep.subr.bf16.mxu0 %v7305_v7 }
 0x74d   :  { %6739 = vmatpush3.bf16.msra.mxu1 %v7306_v8  ;;  %6761 = vmatpush3.bf16.msra.mxu0 %v7307_v9 }
 0x74e   :  { %6740 = vmatprep.subr.bf16.mxu1 %v7308_v10  ;;  %6762 = vmatprep.subr.bf16.mxu0 %v7309_v11 }
 0x751   :  { %6741 = vmatpush3.bf16.msra.mxu1 %v7310_v12  ;;  %6763 = vmatpush3.bf16.msra.mxu0 %v7311_v13 }
 0x752   :  { %6742 = vmatprep.subr.bf16.mxu1 %v7312_v16  ;;  %6764 = vmatprep.subr.bf16.mxu0 %v7313_v17  ;;  %v7326_v16 = vld [vmem:[%s9271_s9 + $0x138] sm:$0xff]  }
 0x753   :  { %v7327_v17 = vld [vmem:[%s9271_s9 + $0x1b8] sm:$0xff]  }
 0x755   :  { %6743 = vmatpush3.bf16.msra.mxu1 %v7314_v18  ;;  %6765 = vmatpush3.bf16.msra.mxu0 %v7315_v19 }
 0x756   :  { %6744 = vmatprep.subr.bf16.mxu1 %v7316_v20  ;;  %6766 = vmatprep.subr.bf16.mxu0 %v7317_v21 }
 0x759   :  { %6745 = vmatpush3.bf16.msra.mxu1 %v7318_v22  ;;  %6767 = vmatpush3.bf16.msra.mxu0 %v7319_v23  ;;  %v7328_v22 = vld [vmem:[%s9271_s9 + $0x170] sm:$0xff]  }
 0x75a   :  { %6746 = vmatprep.subr.bf16.mxu1 %v7320_v24  ;;  %6768 = vmatprep.subr.bf16.mxu0 %v7321_v25  ;;  %v7329_v23 = vld [vmem:[%s9271_s9 + $0x1f0] sm:$0xff]  }
 0x75d   :  { %6747 = vmatpush3.bf16.msra.mxu1 %v7322_v28  ;;  %6769 = vmatpush3.bf16.msra.mxu0 %v7323_v30 }
 0x75e   :  { %6776 = vmatprep.subr.bf16.mxu1 %v7324_v31  ;;  %6798 = vmatprep.subr.bf16.mxu0 %v7325_v32 }
 0x7e8   :  { %v1494_v39 = vpop.f32.mrf.mxu1  ;;  %v1537_v26 = vpop.f32.mrf.mxu0 }
 0x7e9   :  { %v1495_v54 = vadd.f32 %v1494_v39, %v1220_v42  ;;  %v1538_v35 = vadd.f32 %v1537_v26, %v1228_v43  ;;  %v7330_v39 = vld [vmem:[%s9271_s9 + $0x130] sm:$0xff]  }
 0x7ea   :  { %v1496_v44 = vpop.f32.mrf.mxu1  ;;  %v1539_v45 = vpop.f32.mrf.mxu0  ;;  %v7331_v26 = vld [vmem:[%s9271_s9 + $0x1b0] sm:$0xff]  }
 0x7eb   :  { %v1497_v50 = vadd.f32 %v1496_v44, %v1224_v40  ;;  %v1540_v29 = vadd.f32 %v1539_v45, %v1232_v41  ;;  %v1804_v8 = vmax.f32 %v1495_v54, 0.0  ;;  %v1806_v9 = vmax.f32 %v1538_v35, 0.0  ;;  %v7333_v45 = vld [vmem:[%s9271_s9 + $0x1e8] sm:$0xff]   ;;  %v7338_v35 = vld [vmem:[%s9271_s9 + $0x120] sm:$0xff]  }
 0x7ec   :  { %v1498_v46 = vpop.f32.mrf.mxu1  ;;  %v1541_v47 = vpop.f32.mrf.mxu0 }
 0x7ed   :  { %v1499_v51 = vadd.f32 %v1498_v46, %v1220_v42  ;;  %v1542_v53 = vadd.f32 %v1541_v47, %v1228_v43  ;;  %v1805_v4 = vmax.f32 %v1497_v50, 0.0  ;;  %v1807_v5 = vmax.f32 %v1540_v29, 0.0  ;;  %v7334_v50 = vld [vmem:[%s9271_s9 + $0x128] sm:$0xff]  }
 0x7ee   :  { %v1500_v55 = vpop.f32.mrf.mxu1  ;;  %v1543_v57 = vpop.f32.mrf.mxu0  ;;  %v7335_v29 = vld [vmem:[%s9271_s9 + $0x1a8] sm:$0xff]  }
 0x7ef   :  { %v1501_v58 = vadd.f32 %v1500_v55, %v1224_v40  ;;  %v1544_v59 = vadd.f32 %v1543_v57, %v1232_v41  ;;  %v1820_v61 = vmax.f32 %v1499_v51, 0.0  ;;  %v1822_v62 = vmax.f32 %v1542_v53, 0.0  ;;  %v7332_v40 = vld [vmem:[%s9271_s9 + $0x168] sm:$0xff]   ;;  %v7336_v51 = vld [vmem:[%s9271_s9 + $0x160] sm:$0xff]  }
 0x7f0   :  { %v8144_v63 = vpop.f32.mrf.mxu1  ;;  %v8146_v0 = vpop.f32.mrf.mxu0  ;;  %v7337_v53 = vld [vmem:[%s9271_s9 + $0x1e0] sm:$0xff]  }
 0x7f1   :  { %v1821_v6 = vmax.f32 %v1501_v58, 0.0  ;;  %v1823_v7 = vmax.f32 %v1544_v59, 0.0  ;;  %v1836_v18 = vpack.c.bf16 %v1820_v61, %v1804_v8  ;;  %v1838_v19 = vpack.c.bf16 %v1822_v62, %v1806_v9  ;;  %v7339_v57 = vld [vmem:[%s9271_s9 + $0x1a0] sm:$0xff]   ;;  %v7340_v58 = vld [vmem:[%s9271_s9 + $0x158] sm:$0xff]   ;;  %v7346_v9 = vld [vmem:[%s9271_s9 + $0x110] sm:$0xff]  }
 0x7f2   :  { %v1582_v10 = vpop.f32.mrf.mxu1  ;;  %v1625_v11 = vpop.f32.mrf.mxu0  ;;  %v7341_v59 = vld [vmem:[%s9271_s9 + $0x1d8] sm:$0xff]  }
 0x7f3   :  { %v1837_v12 = vpack.c.bf16 %v1821_v6, %v1805_v4  ;;  %v1839_v13 = vpack.c.bf16 %v1823_v7, %v1807_v5  ;;  %v1583_v24 = vadd.f32 %v1582_v10, %v1240_v2  ;;  %v1626_v25 = vadd.f32 %v1625_v11, %v1248_v3  ;;  %v7342_v62 = vld [vmem:[%s9271_s9 + $0x118] sm:$0xff]   ;;  %v7344_v4 = vld [vmem:[%s9271_s9 + $0x150] sm:$0xff]  }
 0x7f4   :  { %v8158_v20 = vpop.f32.mrf.mxu1  ;;  %v8160_v21 = vpop.f32.mrf.mxu0  ;;  %v7345_v5 = vld [vmem:[%s9271_s9 + $0x1d0] sm:$0xff]   ;;  %v8221_v6 = vsub.s32 4, %v7799_v49  ;;  %v8224_v7 = vsub.s32 6, %v7799_v49  ;;  %v7348_v49 = vld [vmem:[%s9271_s9 + $0x148] sm:$0xff]  }
 0x7f5   :  { %2658 = vmatprep.mubr.bf16.mxu1 %v1837_v12  ;;  %2699 = vmatprep.mubr.bf16.mxu0 %v1839_v13  ;;  %v1809_v41 = vmax.f32 %v1583_v24, 0.0  ;;  %v1811_v42 = vmax.f32 %v1626_v25, 0.0  ;;  %v7347_v11 = vld [vmem:[%s9271_s9 + $0x190] sm:$0xff]   ;;  %v7349_v12 = vld [vmem:[%s9271_s9 + $0x1c8] sm:$0xff]   ;;  %v7352_v25 = vld [vmem:[%s9271_s9 + $0x140] sm:$0xff]  }
 0x7f6   :  { %v1586_v28 = vpop.f32.mrf.mxu1  ;;  %v1629_v30 = vpop.f32.mrf.mxu0  ;;  %2659 = vmatmul.mubr.bf16.vlgmr.msra.gmra.mxu1 %v1836_v18  ;;  %2700 = vmatmul.mubr.bf16.vlgmr.msra.gmra.mxu0 %v1838_v19  ;;  %v1236_v13 = vrot.slane %v8128_v38, %v8221_v6  ;;  %v7350_v19 = vld [vmem:[%s9271_s9 + $0x108] sm:$0xff]  }
 0x7f7   :  { %v1587_v31 = vadd.f32 %v1586_v28, %v1240_v2  ;;  %v1630_v32 = vadd.f32 %v1629_v30, %v1248_v3  ;;  %6777 = vmatpush3.bf16.msra.mxu1 %v7326_v16  ;;  %6799 = vmatpush3.bf16.msra.mxu0 %v7327_v17  ;;  %v7343_v3 = vld [vmem:[%s9271_s9 + $0x198] sm:$0xff]   ;;  %v1244_v16 = vrot.slane %v8128_v38, %v8224_v7  ;;  %v8249_v17 = vld [vmem:[%s9270_s8 + $0x8] sm:$0xff] }
 0x7f8   :  { %6778 = vmatprep.subr.bf16.mxu1 %v7328_v22  ;;  %6800 = vmatprep.subr.bf16.mxu0 %v7329_v23  ;;  %v8192_v54 = vpop.f32.mrf.mxu1  ;;  %v8197_v55 = vpop.f32.mrf.mxu0  ;;  %v1585_v22 = vadd.f32 %v8158_v20, %v1236_v13  ;;  %v1256_v23 = vrot.slane %v8249_v17, %v8114_v33  ;;  %v7351_v38 = vld [vmem:[%s9271_s9 + $0x188] sm:$0xff]   ;;  %v1264_v30 = vrot.slane %v8249_v17, %v8117_v34  ;;  %v7353_v20 = vld [vmem:[%s9271_s9 + $0x1c0] sm:$0xff]  }
 0x7f9   :  { %v1825_v43 = vmax.f32 %v1587_v31, 0.0  ;;  %v1827_v44 = vmax.f32 %v1630_v32, 0.0  ;;  %v1628_v28 = vadd.f32 %v8160_v21, %v1244_v16  ;;  %v1581_v31 = vadd.f32 %v8144_v63, %v1236_v13  ;;  %v7356_v63 = vld [vmem:[%s9271_s9 + $0x278] sm:$0xff]   ;;  %v7369_v13 = vld [vmem:[%s9271_s9 + $0x2e0] sm:$0xff]  }
 0x7fa   :  { %v1668_v61 = vpop.f32.mrf.mxu1  ;;  %v1711_v2 = vpop.f32.mrf.mxu0  ;;  %v1824_v21 = vmax.f32 %v1585_v22, 0.0  ;;  %v7371_v22 = vld [vmem:[%s9271_s9 + $0x2a0] sm:$0xff]  }
 0x7fb   :  { %v1841_v46 = vpack.c.bf16 %v1825_v43, %v1809_v41  ;;  %v1843_v47 = vpack.c.bf16 %v1827_v44, %v1811_v42  ;;  %6779 = vmatpush3.bf16.msra.mxu1 %v7330_v39  ;;  %6801 = vmatpush3.bf16.msra.mxu0 %v7331_v26  ;;  %v1624_v39 = vadd.f32 %v8146_v0, %v1244_v16  ;;  %v7355_v42 = vld [vmem:[%s9271_s9 + $0x180] sm:$0xff]   ;;  %v1826_v43 = vmax.f32 %v1628_v28, 0.0  ;;  %v7357_v44 = vld [vmem:[%s9271_s9 + $0x2f8] sm:$0xff]  }
 0x7fc   :  { %6780 = vmatprep.subr.bf16.mxu1 %v7332_v40  ;;  %6802 = vmatprep.subr.bf16.mxu0 %v7333_v45  ;;  %v8226_v8 = vpop.f32.mrf.mxu1  ;;  %v8231_v10 = vpop.f32.mrf.mxu0  ;;  %v7354_v40 = vld [vmem:[%s9271_s9 + $0x100] sm:$0xff]   ;;  %v1669_v41 = vadd.f32 %v1668_v61, %v1256_v23  ;;  %v1712_v0 = vadd.f32 %v1711_v2, %v1264_v30  ;;  %v1808_v45 = vmax.f32 %v1581_v31, 0.0  ;;  %v7377_v31 = vld [vmem:[%s9271_s9 + $0x2d0] sm:$0xff]  }
 0x7fd   :  { %2740 = vmatprep.mubr.bf16.mxu1 %v1841_v46  ;;  %2781 = vmatprep.mubr.bf16.mxu0 %v1843_v47  ;;  %v1810_v47 = vmax.f32 %v1624_v39, 0.0  ;;  %v7378_v39 = vld [vmem:[%s9271_s9 + $0x210] sm:$0xff]  }
 0x7fe   :  { %v1672_v18 = vpop.f32.mrf.mxu1  ;;  %v1715_v24 = vpop.f32.mrf.mxu0 }
 0x7ff   :  { %6781 = vmatpush3.bf16.msra.mxu1 %v7334_v50  ;;  %6803 = vmatpush3.bf16.msra.mxu0 %v7335_v29  ;;  %v1673_v32 = vadd.f32 %v1672_v18, %v1256_v23  ;;  %v1716_v26 = vadd.f32 %v1715_v24, %v1264_v30  ;;  %v7358_v29 = vld [vmem:[%s9271_s9 + $0x238] sm:$0xff]   ;;  %v7370_v18 = vld [vmem:[%s9271_s9 + $0x220] sm:$0xff]  }
 0x800   :  { %6782 = vmatprep.subr.bf16.mxu1 %v7336_v51  ;;  %6804 = vmatprep.subr.bf16.mxu0 %v7337_v53  ;;  %v1840_v51 = vpack.c.bf16 %v1824_v21, %v1808_v45  ;;  %v1813_v53 = vmax.f32 %v1669_v41, 0.0  ;;  %v8319_v16 = vpop.f32.mrf.mxu1  ;;  %v7372_v23 = vld [vmem:[%s9271_s9 + $0x258] sm:$0xff]   ;;  %v7380_v21 = vld [vmem:[%s9271_s9 + $0x248] sm:$0xff]   ;;  %v1272_v45 = vrot.slane %v8249_v17, %v8139_v48 }
 0x801   :  { %v1829_v46 = vmax.f32 %v1673_v32, 0.0  ;;  %v1831_v50 = vmax.f32 %v1716_v26, 0.0  ;;  %v7373_v24 = vld [vmem:[%s9271_s9 + $0x2d8] sm:$0xff]   ;;  %v7381_v41 = vld [vmem:[%s9271_s9 + $0x2c8] sm:$0xff]  }
 0x802   :  { %v7375_v30 = vld [vmem:[%s9271_s9 + $0x298] sm:$0xff]  }
 0x803   :  { %6783 = vmatpush3.bf16.msra.mxu1 %v7338_v35  ;;  %6805 = vmatpush3.bf16.msra.mxu0 %v7339_v57  ;;  %v7359_v35 = vld [vmem:[%s9271_s9 + $0x2b8] sm:$0xff]   ;;  %v1842_v57 = vpack.c.bf16 %v1826_v43, %v1810_v47  ;;  %v1845_v61 = vpack.c.bf16 %v1829_v46, %v1813_v53  ;;  %v7383_v47 = vld [vmem:[%s9271_s9 + $0x288] sm:$0xff]  }
 0x804   :  { %6784 = vmatprep.subr.bf16.mxu1 %v7340_v58  ;;  %6806 = vmatprep.subr.bf16.mxu0 %v7341_v59  ;;  %v1815_v58 = vmax.f32 %v1712_v0, 0.0  ;;  %v7360_v59 = vld [vmem:[%s9271_s9 + $0x270] sm:$0xff]   ;;  %v7382_v0 = vld [vmem:[%s9271_s9 + $0x208] sm:$0xff]  }
 0x806   :  { %v1847_v2 = vpack.c.bf16 %v1831_v50, %v1815_v58  ;;  %v7384_v50 = vld [vmem:[%s9271_s9 + $0x240] sm:$0xff]  }
 0x807   :  { %6785 = vmatpush3.bf16.msra.mxu1 %v7342_v62  ;;  %6807 = vmatpush3.bf16.msra.mxu0 %v7343_v3  ;;  %v7361_v62 = vld [vmem:[%s9271_s9 + $0x2f0] sm:$0xff]  }
 0x808   :  { %6786 = vmatprep.subr.bf16.mxu1 %v7344_v4  ;;  %6808 = vmatprep.subr.bf16.mxu0 %v7345_v5  ;;  %v7362_v3 = vld [vmem:[%s9271_s9 + $0x230] sm:$0xff]   ;;  %v7364_v5 = vld [vmem:[%s9271_s9 + $0x268] sm:$0xff]  }
 0x809   :  { %v7363_v4 = vld [vmem:[%s9271_s9 + $0x2b0] sm:$0xff]  }
 0x80b   :  { %6787 = vmatpush3.bf16.msra.mxu1 %v7346_v9  ;;  %6809 = vmatpush3.bf16.msra.mxu0 %v7347_v11  ;;  %v7365_v9 = vld [vmem:[%s9271_s9 + $0x2e8] sm:$0xff]  }
 0x80c   :  { %6788 = vmatprep.subr.bf16.mxu1 %v7348_v49  ;;  %6810 = vmatprep.subr.bf16.mxu0 %v7349_v12  ;;  %v7366_v11 = vld [vmem:[%s9271_s9 + $0x228] sm:$0xff]   ;;  %v7368_v12 = vld [vmem:[%s9271_s9 + $0x260] sm:$0xff]  }
 0x80d   :  { %v7367_v49 = vld [vmem:[%s9271_s9 + $0x2a8] sm:$0xff]  }
 0x80f   :  { %6789 = vmatpush3.bf16.msra.mxu1 %v7350_v19  ;;  %6811 = vmatpush3.bf16.msra.mxu0 %v7351_v38  ;;  %v8324_v19 = vpop.f32.mrf.mxu0  ;;  %v1754_v38 = vpop.f32.mrf.mxu1 }
 0x810   :  { %6790 = vmatprep.subr.bf16.mxu1 %v7352_v25  ;;  %6812 = vmatprep.subr.bf16.mxu0 %v7353_v20  ;;  %v7374_v25 = vld [vmem:[%s9271_s9 + $0x218] sm:$0xff]   ;;  %v7376_v20 = vld [vmem:[%s9271_s9 + $0x250] sm:$0xff]  }
 0x811   :  { %v1797_v28 = vpop.f32.mrf.mxu0  ;;  %v8347_v32 = vpop.f32.mrf.mxu1 }
 0x813   :  { %6791 = vmatpush3.bf16.msra.mxu1 %v7354_v40  ;;  %6813 = vmatpush3.bf16.msra.mxu0 %v7355_v42  ;;  %v8352_v26 = vpop.f32.mrf.mxu0  ;;  %v7379_v40 = vld [vmem:[%s9271_s9 + $0x290] sm:$0xff]   ;;  %v1252_v42 = vrot.slane %v8249_v17, %v8120_v36  ;;  %v1758_v43 = vpop.f32.mrf.mxu1 }
 0x814   :  { %6820 = vmatprep.subr.bf16.mxu1 %v7356_v63  ;;  %6842 = vmatprep.subr.bf16.mxu0 %v7357_v44  ;;  %v1260_v63 = vrot.slane %v8249_v17, %v8123_v37 }
 0x815   :  { %v1671_v44 = vadd.f32 %v8226_v8, %v1252_v42  ;;  %v1801_v46 = vpop.f32.mrf.mxu0  ;;  %v7385_v8 = vld [vmem:[%s9271_s9 + $0x2c0] sm:$0xff]   ;;  %v1667_v53 = vadd.f32 %v8192_v54, %v1252_v42  ;;  %v7388_v54 = vld [vmem:[%s9271_s9 + $0x378] sm:$0xff]  }
 0x816   :  { %2741 = vmatmul.mubr.bf16.vlgmr.msra.gmra.mxu1 %v1840_v51  ;;  %2782 = vmatmul.mubr.bf16.vlgmr.msra.gmra.mxu0 %v1842_v57  ;;  %v1280_v51 = vrot.slane %v8249_v17, %v8142_v27  ;;  %v1710_v57 = vadd.f32 %v8197_v55, %v1260_v63  ;;  %v7401_v42 = vld [vmem:[%s9271_s9 + $0x3e0] sm:$0xff]  }
 0x817   :  { %6821 = vmatpush3.bf16.msra.mxu1 %v7358_v29  ;;  %2822 = vmatprep.mubr.bf16.mxu1 %v1845_v61  ;;  %v1714_v29 = vadd.f32 %v8231_v10, %v1260_v63  ;;  %v1828_v10 = vmax.f32 %v1671_v44, 0.0  ;;  %v1755_v61 = vadd.f32 %v1754_v38, %v1272_v45  ;;  %v7402_v63 = vld [vmem:[%s9271_s9 + $0x320] sm:$0xff]   ;;  %v7405_v44 = vld [vmem:[%s9271_s9 + $0x3d8] sm:$0xff]  }
 0x818   :  { %6843 = vmatpush3.bf16.msra.mxu0 %v7359_v35  ;;  %2863 = vmatprep.mubr.bf16.mxu0 %v1847_v2  ;;  %v1759_v35 = vadd.f32 %v1758_v43, %v1272_v45  ;;  %v1802_v58 = vadd.f32 %v1801_v46, %v1280_v51  ;;  %v1798_v55 = vadd.f32 %v1797_v28, %v1280_v51  ;;  %v7403_v43 = vld [vmem:[%s9271_s9 + $0x3a0] sm:$0xff]   ;;  %v7406_v45 = vld [vmem:[%s9271_s9 + $0x318] sm:$0xff]   ;;  %v7411_v51 = vld [vmem:[%s9271_s9 + $0x390] sm:$0xff]  }
 0x819   :  { %6822 = vmatprep.subr.bf16.mxu1 %v7360_v59  ;;  %6844 = vmatprep.subr.bf16.mxu0 %v7361_v62  ;;  %v7386_v59 = vld [vmem:[%s9271_s9 + $0x200] sm:$0xff]   ;;  %v1830_v2 = vmax.f32 %v1714_v29, 0.0  ;;  %v7407_v46 = vld [vmem:[%s9271_s9 + $0x398] sm:$0xff]   ;;  %v7410_v29 = vld [vmem:[%s9271_s9 + $0x310] sm:$0xff]  }
 0x81a   :  { %v7387_v62 = vld [vmem:[%s9271_s9 + $0x280] sm:$0xff]  }
 0x81b   :  { %6823 = vmatpush3.bf16.msra.mxu1 %v7362_v3  ;;  %v7389_v3 = vld [vmem:[%s9271_s9 + $0x3f8] sm:$0xff]  }
 0x81c   :  { %6845 = vmatpush3.bf16.msra.mxu0 %v7363_v4  ;;  %6824 = vmatprep.subr.bf16.mxu1 %v7364_v5  ;;  %v1812_v4 = vmax.f32 %v1667_v53, 0.0  ;;  %v1833_v5 = vmax.f32 %v1759_v35, 0.0  ;;  %v7413_v53 = vld [vmem:[%s9271_s9 + $0x3c8] sm:$0xff]   ;;  %v1268_v35 = vrot.slane %v8249_v17, %v8221_v6 }
 0x81d   :  { %6846 = vmatprep.subr.bf16.mxu0 %v7365_v9  ;;  %v1814_v9 = vmax.f32 %v1710_v57, 0.0  ;;  %v1276_v57 = vrot.slane %v8249_v17, %v8224_v7  ;;  %v7417_v17 = vld [vmem:[%s9271_s9 + $0x3c0] sm:$0xff]  }
 0x81f   :  { %6825 = vmatpush3.bf16.msra.mxu1 %v7366_v11  ;;  %v1835_v11 = vmax.f32 %v1802_v58, 0.0  ;;  %v7414_v58 = vld [vmem:[%s9271_s9 + $0x308] sm:$0xff]  }
 0x820   :  { %6847 = vmatpush3.bf16.msra.mxu0 %v7367_v49  ;;  %6826 = vmatprep.subr.bf16.mxu1 %v7368_v12  ;;  %v7390_v49 = vld [vmem:[%s9271_s9 + $0x338] sm:$0xff]   ;;  %v1844_v12 = vpack.c.bf16 %v1828_v10, %v1812_v4  ;;  %v7415_v10 = vld [vmem:[%s9271_s9 + $0x388] sm:$0xff]  }
 0x821   :  { %6848 = vmatprep.subr.bf16.mxu0 %v7369_v13  ;;  %v1817_v13 = vmax.f32 %v1755_v61, 0.0  ;;  %v7416_v61 = vld [vmem:[%s9271_s9 + $0x340] sm:$0xff]  }
 0x823   :  { %6827 = vmatpush3.bf16.msra.mxu1 %v7370_v18  ;;  %v7391_v18 = vld [vmem:[%s9271_s9 + $0x3b8] sm:$0xff]   ;;  %v1849_v38 = vpack.c.bf16 %v1833_v5, %v1817_v13 }
 0x824   :  { %6849 = vmatpush3.bf16.msra.mxu0 %v7371_v22  ;;  %6828 = vmatprep.subr.bf16.mxu1 %v7372_v23  ;;  %v1846_v22 = vpack.c.bf16 %v1830_v2, %v1814_v9  ;;  %v1819_v23 = vmax.f32 %v1798_v55, 0.0  ;;  %v7418_v2 = vld [vmem:[%s9271_s9 + $0x300] sm:$0xff]  }
 0x825   :  { %6850 = vmatprep.subr.bf16.mxu0 %v7373_v24  ;;  %v7392_v24 = vld [vmem:[%s9271_s9 + $0x370] sm:$0xff]  }
 0x826   :  { %v1851_v28 = vpack.c.bf16 %v1835_v11, %v1819_v23 }
 0x827   :  { %6829 = vmatpush3.bf16.msra.mxu1 %v7374_v25  ;;  %v7393_v25 = vld [vmem:[%s9271_s9 + $0x3f0] sm:$0xff]  }
 0x828   :  { %6851 = vmatpush3.bf16.msra.mxu0 %v7375_v30  ;;  %6830 = vmatprep.subr.bf16.mxu1 %v7376_v20  ;;  %v7394_v30 = vld [vmem:[%s9271_s9 + $0x330] sm:$0xff]  }
 0x829   :  { %6852 = vmatprep.subr.bf16.mxu0 %v7377_v31  ;;  %v7395_v20 = vld [vmem:[%s9271_s9 + $0x3b0] sm:$0xff]   ;;  %v7396_v31 = vld [vmem:[%s9271_s9 + $0x368] sm:$0xff]  }
 0x82b   :  { %6831 = vmatpush3.bf16.msra.mxu1 %v7378_v39  ;;  %v7397_v39 = vld [vmem:[%s9271_s9 + $0x3e8] sm:$0xff]  }
 0x82c   :  { %6853 = vmatpush3.bf16.msra.mxu0 %v7379_v40  ;;  %6832 = vmatprep.subr.bf16.mxu1 %v7380_v21  ;;  %v7398_v40 = vld [vmem:[%s9271_s9 + $0x328] sm:$0xff]  }
 0x82d   :  { %6854 = vmatprep.subr.bf16.mxu0 %v7381_v41  ;;  %v7399_v21 = vld [vmem:[%s9271_s9 + $0x3a8] sm:$0xff]   ;;  %v7400_v41 = vld [vmem:[%s9271_s9 + $0x360] sm:$0xff]  }
 0x82f   :  { %6833 = vmatpush3.bf16.msra.mxu1 %v7382_v0  ;;  %v7404_v0 = vld [vmem:[%s9271_s9 + $0x358] sm:$0xff]  }
 0x830   :  { %6855 = vmatpush3.bf16.msra.mxu0 %v7383_v47  ;;  %6834 = vmatprep.subr.bf16.mxu1 %v7384_v50  ;;  %v7408_v47 = vld [vmem:[%s9271_s9 + $0x350] sm:$0xff]  }
 0x831   :  { %6856 = vmatprep.subr.bf16.mxu0 %v7385_v8  ;;  %v7409_v50 = vld [vmem:[%s9271_s9 + $0x3d0] sm:$0xff]   ;;  %v7412_v8 = vld [vmem:[%s9271_s9 + $0x348] sm:$0xff]  }
 0x833   :  { %6835 = vmatpush3.bf16.msra.mxu1 %v7386_v59  ;;  %v1757_v59 = vadd.f32 %v8347_v32, %v1268_v35  ;;  %v1796_v32 = vadd.f32 %v8324_v19, %v1276_v57 }
 0x834   :  { %6857 = vmatpush3.bf16.msra.mxu0 %v7387_v62  ;;  %6864 = vmatprep.subr.bf16.mxu1 %v7388_v54  ;;  %v1800_v62 = vadd.f32 %v8352_v26, %v1276_v57  ;;  %v1753_v54 = vadd.f32 %v8319_v16, %v1268_v35  ;;  %v7419_v26 = vld [vmem:[%s9271_s9 + $0x380] sm:$0xff]  }
 0x835   :  { %6886 = vmatprep.subr.bf16.mxu0 %v7389_v3  ;;  %v1832_v55 = vmax.f32 %v1757_v59, 0.0  ;;  %v1818_v5 = vmax.f32 %v1796_v32, 0.0 }
 0x836   :  { %2823 = vmatmul.mubr.bf16.vlgmr.msra.gmra.mxu1 %v1844_v12  ;;  %v1834_v3 = vmax.f32 %v1800_v62, 0.0  ;;  %v1816_v4 = vmax.f32 %v1753_v54, 0.0 }
 0x837   :  { %2864 = vmatmul.mubr.bf16.vlgmr.msra.gmra.mxu0 %v1846_v22  ;;  %6865 = vmatpush3.bf16.msra.mxu1 %v7390_v49 }
 0x838   :  { %2904 = vmatprep.mubr.bf16.mxu1 %v1849_v38  ;;  %6887 = vmatpush3.bf16.msra.mxu0 %v7391_v18  ;;  %v1848_v16 = vpack.c.bf16 %v1832_v55, %v1816_v4  ;;  %v1850_v19 = vpack.c.bf16 %v1834_v3, %v1818_v5 }
 0x839   :  { %2945 = vmatprep.mubr.bf16.mxu0 %v1851_v28  ;;  %6866 = vmatprep.subr.bf16.mxu1 %v7392_v24 }
 0x83a   :  { %6888 = vmatprep.subr.bf16.mxu0 %v7393_v25 }
 0x83b   :  { %6867 = vmatpush3.bf16.msra.mxu1 %v7394_v30 }
 0x83c   :  { %6889 = vmatpush3.bf16.msra.mxu0 %v7395_v20  ;;  %6868 = vmatprep.subr.bf16.mxu1 %v7396_v31 }
 0x83d   :  { %6890 = vmatprep.subr.bf16.mxu0 %v7397_v39 }
 0x83f   :  { %6869 = vmatpush3.bf16.msra.mxu1 %v7398_v40  ;;  %v6081_v40 = vld [vmem:[%s9272_s10] ss:$0 sm:$0xff] }
 0x840   :  { %6891 = vmatpush3.bf16.msra.mxu0 %v7399_v21  ;;  %6870 = vmatprep.subr.bf16.mxu1 %v7400_v41 }
 0x841   :  { %6892 = vmatprep.subr.bf16.mxu0 %v7401_v42 }
 0x843   :  { %6871 = vmatpush3.bf16.msra.mxu1 %v7402_v63 }
 0x844   :  { %6893 = vmatpush3.bf16.msra.mxu0 %v7403_v43  ;;  %6872 = vmatprep.subr.bf16.mxu1 %v7404_v0 }
 0x845   :  { %6894 = vmatprep.subr.bf16.mxu0 %v7405_v44 }
 0x847   :  { %6873 = vmatpush3.bf16.msra.mxu1 %v7406_v45 }
 0x848   :  { %6895 = vmatpush3.bf16.msra.mxu0 %v7407_v46  ;;  %6874 = vmatprep.subr.bf16.mxu1 %v7408_v47 }
 0x849   :  { %6896 = vmatprep.subr.bf16.mxu0 %v7409_v50 }
 0x84b   :  { %6875 = vmatpush3.bf16.msra.mxu1 %v7410_v29 }
 0x84c   :  { %6897 = vmatpush3.bf16.msra.mxu0 %v7411_v51  ;;  %6876 = vmatprep.subr.bf16.mxu1 %v7412_v8 }
 0x84d   :  { %6898 = vmatprep.subr.bf16.mxu0 %v7413_v53 }
 0x84f   :  { %6877 = vmatpush3.bf16.msra.mxu1 %v7414_v58 }
 0x850   :  { %6899 = vmatpush3.bf16.msra.mxu0 %v7415_v10  ;;  %6878 = vmatprep.subr.bf16.mxu1 %v7416_v61 }
 0x851   :  { %6900 = vmatprep.subr.bf16.mxu0 %v7417_v17 }
 0x853   :  { %6879 = vmatpush3.bf16.msra.mxu1 %v7418_v2 }
 0x854   :  { %6901 = vmatpush3.bf16.msra.mxu0 %v7419_v26  ;;  %7173 = vmatprep.subr.bf16.mxu1 %v7658_v1 }
 0x855   :  { %7181 = vmatprep.subr.bf16.mxu0 %v7658_v1 }
 0x856   :  { %2905 = vmatmul.mubr.bf16.vlgmr.msra.gmra.mxu1 %v1848_v16 }
 0x857   :  { %2946 = vmatmul.mubr.bf16.vlgmr.msra.gmra.mxu0 %v1850_v19  ;;  %7177 = vmatprep.mubr.msk.bf16.mxu1 %vm7659_vm0, %v7658_v1 }
 0x858   :  { %7183 = vmatprep.mubr.msk.bf16.mxu0 %vm7659_vm0, %v7658_v1 }
 0x8b6   :  { %v6748_v9 = vpop.f32.mrf.mxu1  ;;  %v6770_v11 = vpop.f32.mrf.mxu0 }
 0x8b8   :  { %v6749_v49 = vpop.f32.mrf.mxu1  ;;  %v6771_v12 = vpop.f32.mrf.mxu0 }
 0x8b9   :  { %v6750_v39 = vadd.f32 %v6749_v49, %v6748_v9  ;;  %v6772_v44 = vadd.f32 %v6771_v12, %v6770_v11 }
 0x8ba   :  { %v6751_v13 = vpop.f32.mrf.mxu1  ;;  %v6773_v18 = vpop.f32.mrf.mxu0 }
 0x8bb   :  { %v2661_v42 = vadd.f32 %v6750_v39, %v6081_v40 }
 0x8bc   :  { %v6752_v22 = vpop.f32.mrf.mxu1  ;;  %v6774_v24 = vpop.f32.mrf.mxu0 }
 0x8bd   :  { %v6753_v63 = vadd.f32 %v6752_v22, %v6751_v13  ;;  %v2702_v46 = vadd.f32 %v6772_v44, %v2661_v42  ;;  %v6775_v51 = vadd.f32 %v6774_v24, %v6773_v18 }
 0x8bf   :  { %v2664_v47 = vadd.f32 %v6753_v63, %v6081_v40 }
 0x8c1   :  { %v2705_v35 = vadd.f32 %v6775_v51, %v2664_v47 }
 0x8d6   :  { %v6792_v23 = vpop.f32.mrf.mxu1  ;;  %v6814_v38 = vpop.f32.mrf.mxu0 }
 0x8d8   :  { %v6793_v25 = vpop.f32.mrf.mxu1  ;;  %v6815_v28 = vpop.f32.mrf.mxu0 }
 0x8d9   :  { %v6794_v45 = vadd.f32 %v6793_v25, %v6792_v23  ;;  %v6816_v57 = vadd.f32 %v6815_v28, %v6814_v38 }
 0x8da   :  { %v6795_v30 = vpop.f32.mrf.mxu1  ;;  %v6817_v20 = vpop.f32.mrf.mxu0 }
 0x8db   :  { %v2743_v8 = vadd.f32 %v6794_v45, %v2702_v46 }
 0x8dc   :  { %v6796_v31 = vpop.f32.mrf.mxu1  ;;  %v6818_v41 = vpop.f32.mrf.mxu0 }
 0x8dd   :  { %v6797_v53 = vadd.f32 %v6796_v31, %v6795_v30  ;;  %v2784_v61 = vadd.f32 %v6816_v57, %v2743_v8  ;;  %v6819_v17 = vadd.f32 %v6818_v41, %v6817_v20 }
 0x8df   :  { %v2746_v62 = vadd.f32 %v6797_v53, %v2705_v35 }
 0x8e1   :  { %v2787_v26 = vadd.f32 %v6819_v17, %v2746_v62 }
 0x8f6   :  { %v6836_v21 = vpop.f32.mrf.mxu1 }
 0x8f7   :  { %v6858_v43 = vpop.f32.mrf.mxu0 }
 0x8f8   :  { %v6837_v0 = vpop.f32.mrf.mxu1 }
 0x8f9   :  { %v6859_v50 = vpop.f32.mrf.mxu0  ;;  %v6838_v58 = vadd.f32 %v6837_v0, %v6836_v21 }
 0x8fa   :  { %v6839_v29 = vpop.f32.mrf.mxu1  ;;  %v6860_v3 = vadd.f32 %v6859_v50, %v6858_v43 }
 0x8fb   :  { %v6861_v59 = vpop.f32.mrf.mxu0  ;;  %v2825_v54 = vadd.f32 %v6838_v58, %v2784_v61  ;;  %v6210_v61 = vld [vmem:[%s9273_s11] ss:$0 sm:$0xff] }
 0x8fc   :  { %v6840_v10 = vpop.f32.mrf.mxu1 }
 0x8fd   :  { %v6841_v32 = vadd.f32 %v6840_v10, %v6839_v29  ;;  %v6862_v2 = vpop.f32.mrf.mxu0  ;;  %v2866_v16 = vadd.f32 %v6860_v3, %v2825_v54  ;;  %v7421_v29 = vld [vmem:[%s9263_s1 + $0x10] sm:$0xff]  }
 0x8fe   :  { %v6863_v12 = vadd.f32 %v6862_v2, %v6861_v59 }
 0x8ff   :  { %v2828_v19 = vadd.f32 %v6841_v32, %v2787_v26  ;;  %v6211_v32 = vld [vmem:[%s9274_s12] ss:$0 sm:$0xff] }
 0x901   :  { %v2869_v24 = vadd.f32 %v6863_v12, %v2828_v19 }
 0x916   :  { %v6880_v55 = vpop.f32.mrf.mxu1 }
 0x917   :  { %v6902_v4 = vpop.f32.mrf.mxu0 }
 0x918   :  { %v6881_v5 = vpop.f32.mrf.mxu1 }
 0x919   :  { %v6882_v9 = vadd.f32 %v6881_v5, %v6880_v55  ;;  %v6903_v11 = vpop.f32.mrf.mxu0 }
 0x91a   :  { %v6883_v49 = vpop.f32.mrf.mxu1  ;;  %v6904_v18 = vadd.f32 %v6903_v11, %v6902_v4  ;;  %v6517_v4 = vld [vmem:[%s9264_s2 + $0x1] ss:$0 sm:$0xff] }
 0x91b   :  { %v2907_v13 = vadd.f32 %v6882_v9, %v2866_v16  ;;  %v6905_v22 = vpop.f32.mrf.mxu0 }
 0x91c   :  { %v6884_v23 = vpop.f32.mrf.mxu1 }
 0x91d   :  { %v2948_v38 = vadd.f32 %v6904_v18, %v2907_v13  ;;  %v6885_v25 = vadd.f32 %v6884_v23, %v6883_v49  ;;  %v6906_v28 = vpop.f32.mrf.mxu0 }
 0x91e   :  { %v6907_v20 = vadd.f32 %v6906_v28, %v6905_v22 }
 0x91f   :  { %v2910_v30 = vadd.f32 %v6885_v25, %v2869_v24  ;;  %v2954_v31 = vadd.f32 %v2948_v38, %v7933_v14 }
 0x921   :  { %v2951_v39 = vadd.f32 %v6907_v20, %v2910_v30  ;;  %v2956_v40 = vsel %vm390_vm1, %v2954_v31, 0.0 }
 0x922   :  { %2957 = vadd.xlane.f32.xlu1 %v2956_v40 }
 0x923   :  { %v2955_v21 = vadd.f32 %v2951_v39, %v7935_v15  ;;  %v7420_v15 = vld [vmem:[%s9263_s1 + $0x18] sm:$0xff]  }
 0x924   :  { %7174 = vmatpush3.bf16.msra.mxu1 %v7420_v15 }
 0x925   :  { %v2959_v41 = vsel %vm390_vm1, %v2955_v21, 0.0  ;;  %7175 = vmatprep.subr.bf16.mxu1 %v7658_v1 }
 0x926   :  { %2960 = vadd.xlane.f32.xlu1 %v2959_v41 }
 0x928   :  { %7176 = vmatpush3.bf16.msra.mxu1 %v7421_v29 }
 0x929   :  { %7187 = vmatprep.subr.bf16.mxu1 %v7658_v1 }
 0x9ab   :  { %v2958_v42 = vpop.xlane.xlu1 %2957 }
 0x9ac   :  { %v2962_v63 = vmul.f32 0.03125, %v2958_v42 }
 0x9ae   :  { %v2964_v43 = vsub.f32 %v2954_v31, %v2962_v63 }
 0x9af   :  { %v2961_v0 = vpop.xlane.xlu1 %2960 }
 0x9b0   :  { %v2963_v44 = vmul.f32 0.03125, %v2961_v0  ;;  %v2966_v45 = vmul.f32 %v2964_v43, %v2964_v43 }
 0x9b2   :  { %v2965_v46 = vsub.f32 %v2955_v21, %v2963_v44  ;;  %v2968_v47 = vsel %vm390_vm1, %v2966_v45, 0.0 }
 0x9b3   :  { %2969 = vadd.xlane.f32.xlu1 %v2968_v47 }
 0x9b4   :  { %v2967_v14 = vmul.f32 %v2965_v46, %v2965_v46 }
 0x9b6   :  { %v2971_v50 = vsel %vm390_vm1, %v2967_v14, 0.0 }
 0x9b7   :  { %2972 = vadd.xlane.f32.xlu1 %v2971_v50 }
 0xa3c   :  { %v2970_v51 = vpop.xlane.xlu1 %2969 }
 0xa3d   :  { %v2974_v8 = vmul.f32 0.03125, %v2970_v51 }
 0xa3f   :  { %v2976_v53 = vadd.f32 1e-05, %v2974_v8 }
 0xa40   :  { %v2973_v35 = vpop.xlane.xlu1 %2972 }
 0xa41   :  { %7590 = vrsqrt.f32 %v2976_v53  ;;  %v2975_v57 = vmul.f32 0.03125, %v2973_v35 }
 0xa43   :  { %v2977_v58 = vadd.f32 1e-05, %v2975_v57 }
 0xa45   :  { %7592 = vrsqrt.f32 %v2977_v58 }
 0xa4e   :  { %v7591_v59 = vpop.eup %7590 }
 0xa4f   :  { %v2980_v10 = vmul.f32 %v7591_v59, %v2964_v43 }
 0xa51   :  { %v2988_v54 = vmul.f32 %v6210_v61, %v2980_v10 }
 0xa52   :  { %v7593_v62 = vpop.eup %7592 }
 0xa53   :  { %v2981_v17 = vmul.f32 %v7593_v62, %v2965_v46  ;;  %v8526_v55 = vadd.f32 %v6211_v32, %v2988_v54 }
 0xa55   :  { %v2989_v2 = vmul.f32 %v6210_v61, %v2981_v17 }
 0xa57   :  { %v8528_v26 = vadd.f32 %v6211_v32, %v2989_v2 }
 0xa59   :  { %v3315_v3 = vpack.c.bf16 %v8528_v26, %v8526_v55 }
 0xa5b   :  { %7178 = vmatmul.mubr.msk.bf16.vlgmr.msra.gmra.mxu1 %vm390_vm1, %v3315_v3 }
 0xa5c   :  { %7189 = vmatprep.mubr.msk.bf16.mxu1 %vm7659_vm0, %v7658_v1 }
 0xb1b   :  { %v3371_v5 = vpop.f32.mrf.mxu1 }
 0xb1c   :  { %v3372_v16 = vadd.f32 %v6517_v4, %v3371_v5 }
 0xb1d   :  { %v7179_v19 = vpop.f32.mrf.mxu1 }
 0xb1e   :  { %3378 = vxpose.xlu1.b32.start [1/2] (short) (narrow) %v3372_v16, 96 }
 0xb1f   :  { %v3374_v9 = vpop.f32.mrf.mxu1 }
 0xb20   :  { %v3375_v11 = vadd.f32 %v6517_v4, %v3374_v9 }
 0xb21   :  { %v7180_v49 = vpop.f32.mrf.mxu1 }
 0xb22   :  { %3379 = vxpose.xlu1.b32.end [2/2] (short) (narrow) %v3375_v11, 96 }
 0xb9a   :  { %v3394_v12 = vpop.trf.xlu1 }
 0xb9e   :  { %v3395_v13 = vpop.trf.xlu1 }
 0xb9f   :  { %v7264_v18 = vpack.i.bf16 %v3395_v13, %v3394_v12 }
 0xba1   :  { %7265 = vxpose.xlu0.b32.start.end [1/1] (short) (narrow) %v7264_v18, 16 }
 0xba2   :  { %v3396_v22 = vpop.trf.xlu1 }
 0xba6   :  { %v3397_v23 = vpop.trf.xlu1 }
 0xba7   :  { %v7276_v24 = vpack.i.bf16 %v3397_v23, %v3396_v22 }
 0xba9   :  { %7277 = vxpose.xlu0.b32.start.end [1/1] (short) (narrow) %v7276_v24, 16 }
 0xbaa   :  { %v3398_v38 = vpop.trf.xlu1 }
 0xbab   :  { %v3542_v25 = vpack.c.bf16 %v3398_v38, %v3398_v38 }
 0xbad   :  { %v3554_v28 = vsel %vm611_vm2, %v3542_v25, 0 }
 0xbae   :  { %7182 = vmatpush3.bf16.msra.mxu0 %v3554_v28  ;;  %v3399_v30 = vpop.trf.xlu1 }
 0xbaf   :  { %v3543_v20 = vpack.c.bf16 %v3399_v30, %v3399_v30  ;;  %7193 = vmatprep.subr.bf16.mxu0 %v7658_v1 }
 0xbb1   :  { %v3601_v31 = vsel %vm611_vm2, %v3543_v20, 0 }
 0xbb2   :  { %7188 = vmatpush3.bf16.msra.mxu1 %v3601_v31  ;;  %v3400_v39 = vpop.trf.xlu1 }
 0xbb3   :  { %7199 = vmatprep.subr.bf16.mxu1 %v7658_v1  ;;  %v3544_v41 = vpack.c.bf16 %v3400_v39, %v3400_v39 }
 0xbb5   :  { %v3648_v14 = vsel %vm611_vm2, %v3544_v41, 0 }
 0xbb6   :  { %v3401_v21 = vpop.trf.xlu1 }
 0xbb7   :  { %v3545_v42 = vpack.c.bf16 %v3401_v21, %v3401_v21 }
 0xbb9   :  { %v3695_v50 = vsel %vm611_vm2, %v3545_v42, 0 }
 0xbba   :  { %v8574_v42 = vpop.trf.xlu1 }
 0xc1d   :  { %v7266_v40 = vpop.trf.xlu0 }
 0xc1e   :  { %v7270_v63 = vunpack.i.h.bf16 %v7266_v40  ;;  %v7267_v43 = vunpack.i.l.bf16 %v7266_v40 }
 0xc21   :  { %v7271_v0 = vpop.trf.xlu0 }
 0xc22   :  { %v7275_v44 = vunpack.i.h.bf16 %v7271_v0  ;;  %v7272_v45 = vunpack.i.l.bf16 %v7271_v0 }
 0xc24   :  { %v3538_v46 = vpack.c.bf16 %v7272_v45, %v7267_v43  ;;  %v3539_v47 = vpack.c.bf16 %v7275_v44, %v7270_v63  ;;  %v8576_v63 = vpop.trf.xlu1 }
 0xc25   :  { %v7278_v15 = vpop.trf.xlu0 }
 0xc26   :  { %7184 = vmatmul.mubr.msk.bf16.vlgmr.msra.gmra.mxu0 %vm607_vm3, %v3538_v46  ;;  %7190 = vmatmul.mubr.msk.bf16.vlgmr.msra.gmra.mxu1 %vm607_vm3, %v3539_v47  ;;  %v7282_v29 = vunpack.i.h.bf16 %v7278_v15  ;;  %v7279_v51 = vunpack.i.l.bf16 %v7278_v15 }
 0xc27   :  { %7194 = vmatpush3.bf16.msra.mxu0 %v3648_v14  ;;  %7200 = vmatpush3.bf16.msra.mxu1 %v3695_v50 }
 0xc28   :  { %7195 = vmatprep.mubr.msk.bf16.mxu0 %vm7659_vm0, %v7658_v1  ;;  %7201 = vmatprep.mubr.msk.bf16.mxu1 %vm7659_vm0, %v7658_v1  ;;  %v8578_v43 = vpop.trf.xlu1 }
 0xc29   :  { %v7283_v8 = vpop.trf.xlu0  ;;  %7205 = vmatprep.subr.bf16.mxu0 %v7658_v1  ;;  %7211 = vmatprep.subr.bf16.mxu1 %v7658_v1 }
 0xc2a   :  { %v7287_v53 = vunpack.i.h.bf16 %v7283_v8  ;;  %v7284_v35 = vunpack.i.l.bf16 %v7283_v8 }
 0xc2c   :  { %v3540_v57 = vpack.c.bf16 %v7284_v35, %v7279_v51  ;;  %v3541_v58 = vpack.c.bf16 %v7287_v53, %v7282_v29  ;;  %v8580_v0 = vpop.trf.xlu1 }
 0xc2e   :  { %7196 = vmatmul.mubr.msk.bf16.vlgmr.msra.gmra.mxu0 %vm607_vm3, %v3540_v57  ;;  %7202 = vmatmul.mubr.msk.bf16.vlgmr.msra.gmra.mxu1 %vm607_vm3, %v3541_v58 }
 0xc2f   :  { %7207 = vmatprep.mubr.msk.bf16.mxu0 %vm7659_vm0, %v7658_v1  ;;  %7213 = vmatprep.mubr.msk.bf16.mxu1 %vm7659_vm0, %v7658_v1 }
 0xce6   :  { %v3590_v59 = vpop.f32.mrf.mxu0  ;;  %v3637_v10 = vpop.f32.mrf.mxu1 }
 0xce7   :  { %v3591_v61 = vadd.f32 %v3590_v59, %v7803_v56  ;;  %v3638_v54 = vadd.f32 %v3637_v10, %v7803_v56 }
 0xce8   :  { %v7185_v62 = vpop.f32.mrf.mxu0  ;;  %v7191_v17 = vpop.f32.mrf.mxu1 }
 0xce9   :  { %v3738_v32 = vsel %vm797_vm6, %v3591_v61, -inf  ;;  %v3744_v11 = vsel %vm797_vm6, %v3638_v54, -inf }
 0xcea   :  { %3739 = vmax.xlane.f32.xlu0 %v3738_v32  ;;  %v3593_v2 = vpop.f32.mrf.mxu0  ;;  %v3640_v3 = vpop.f32.mrf.mxu1 }
 0xceb   :  { %v3594_v4 = vadd.f32 %v3593_v2, %v7806_v60  ;;  %v3641_v19 = vadd.f32 %v3640_v3, %v7806_v60 }
 0xcec   :  { %v7186_v5 = vpop.f32.mrf.mxu0  ;;  %v7192_v16 = vpop.f32.mrf.mxu1 }
 0xced   :  { %v3741_v9 = vsel %vm797_vm6, %v3594_v4, -inf  ;;  %v3747_v23 = vsel %vm797_vm6, %v3641_v19, -inf }
 0xcee   :  { %3742 = vmax.xlane.f32.xlu1 %v3741_v9  ;;  %v3684_v49 = vpop.f32.mrf.mxu0  ;;  %3745 = vmax.xlane.f32.xlu0 %v3744_v11  ;;  %v3731_v12 = vpop.f32.mrf.mxu1 }
 0xcef   :  { %v3685_v13 = vadd.f32 %v3684_v49, %v7803_v56  ;;  %v3732_v31 = vadd.f32 %v3731_v12, %v7803_v56 }
 0xcf0   :  { %v7197_v18 = vpop.f32.mrf.mxu0  ;;  %v7203_v22 = vpop.f32.mrf.mxu1 }
 0xcf1   :  { %v3750_v25 = vsel %vm797_vm6, %v3685_v13, -inf  ;;  %v3756_v21 = vsel %vm797_vm6, %v3732_v31, -inf }
 0xcf2   :  { %v3687_v24 = vpop.f32.mrf.mxu0  ;;  %3748 = vmax.xlane.f32.xlu0 %v3747_v23  ;;  %v3734_v38 = vpop.f32.mrf.mxu1 }
 0xcf3   :  { %v3688_v20 = vadd.f32 %v3687_v24, %v7806_v60  ;;  %v3735_v40 = vadd.f32 %v3734_v38, %v7806_v60 }
 0xcf4   :  { %v7198_v28 = vpop.f32.mrf.mxu0  ;;  %v7204_v30 = vpop.f32.mrf.mxu1 }
 0xcf5   :  { %v3753_v39 = vsel %vm797_vm6, %v3688_v20, -inf  ;;  %v3759_v41 = vsel %vm797_vm6, %v3735_v40, -inf }
 0xcf6   :  { %3751 = vmax.xlane.f32.xlu0 %v3750_v25 }
 0xcfa   :  { %3754 = vmax.xlane.f32.xlu0 %v3753_v39 }
 0xcfe   :  { %3757 = vmax.xlane.f32.xlu0 %v3756_v21 }
 0xd02   :  { %3760 = vmax.xlane.f32.xlu0 %v3759_v41 }
 0xd73   :  { %v3740_v56 = vpop.xlane.xlu0 %3739 }
 0xd74   :  { %v3762_v44 = vsub.f32 %v3591_v61, %v3740_v56 }
 0xd76   :  { %v3770_v45 = vmul.f32 1.442695, %v3762_v44 }
 0xd77   :  { %v3743_v46 = vpop.xlane.xlu1 %3742  ;;  %v3746_v47 = vpop.xlane.xlu0 %3745 }
 0xd78   :  { %7594 = vpow2.f32 %v3770_v45  ;;  %v3763_v60 = vsub.f32 %v3594_v4, %v3743_v46  ;;  %v3764_v14 = vsub.f32 %v3638_v54, %v3746_v47 }
 0xd7a   :  { %v3772_v50 = vmul.f32 1.442695, %v3763_v60  ;;  %v3774_v15 = vmul.f32 1.442695, %v3764_v14 }
 0xd7b   :  { %v3749_v29 = vpop.xlane.xlu0 %3748 }
 0xd7c   :  { %7596 = vpow2.f32 %v3772_v50  ;;  %v3765_v51 = vsub.f32 %v3641_v19, %v3749_v29 }
 0xd7d   :  { %7598 = vpow2.f32 %v3774_v15 }
 0xd7e   :  { %v3776_v8 = vmul.f32 1.442695, %v3765_v51  ;;  %v3546_v51 = vpack.c.bf16 %v8574_v42, %v8574_v42 }
 0xd7f   :  { %v3752_v53 = vpop.xlane.xlu0 %3751 }
 0xd80   :  { %v3766_v35 = vsub.f32 %v3685_v13, %v3752_v53  ;;  %7600 = vpow2.f32 %v3776_v8 }
 0xd82   :  { %v3778_v57 = vmul.f32 1.442695, %v3766_v35 }
 0xd83   :  { %v3755_v58 = vpop.xlane.xlu0 %3754 }
 0xd84   :  { %v3767_v59 = vsub.f32 %v3688_v20, %v3755_v58  ;;  %7602 = vpow2.f32 %v3778_v57 }
 0xd85   :  { %v7595_v10 = vpop.eup %7594 }
 0xd86   :  { %v3780_v61 = vmul.f32 1.442695, %v3767_v59  ;;  %v3786_v62 = vsel %vm797_vm6, %v7595_v10, 0.0 }
 0xd87   :  { %v3758_v17 = vpop.xlane.xlu0 %3757  ;;  %3787 = vadd.xlane.f32.xlu0 %v3786_v62 }
 0xd88   :  { %v3768_v54 = vsub.f32 %v3732_v31, %v3758_v17  ;;  %7604 = vpow2.f32 %v3780_v61 }
 0xd89   :  { %v7597_v32 = vpop.eup %7596 }
 0xd8a   :  { %v3782_v2 = vmul.f32 1.442695, %v3768_v54  ;;  %v3789_v3 = vsel %vm797_vm6, %v7597_v32, 0.0  ;;  %v7599_v4 = vpop.eup %7598 }
 0xd8b   :  { %3790 = vadd.xlane.f32.xlu0 %v3789_v3  ;;  %v3761_v5 = vpop.xlane.xlu0 %3760  ;;  %v3792_v9 = vsel %vm797_vm6, %v7599_v4, 0.0 }
 0xd8c   :  { %v3769_v16 = vsub.f32 %v3735_v40, %v3761_v5  ;;  %7606 = vpow2.f32 %v3782_v2  ;;  %v3548_v2 = vpack.c.bf16 %v8578_v43, %v8578_v43  ;;  %v7422_v43 = vld [vmem:[%s9265_s3 + $0x18] sm:$0xff]  }
 0xd8d   :  { %v7601_v11 = vpop.eup %7600 }
 0xd8e   :  { %v3784_v19 = vmul.f32 1.442695, %v3769_v16  ;;  %v3795_v49 = vsel %vm797_vm6, %v7601_v11, 0.0 }
 0xd8f   :  { %3793 = vadd.xlane.f32.xlu0 %v3792_v9 }
 0xd90   :  { %7608 = vpow2.f32 %v3784_v19 }
 0xd91   :  { %v7603_v12 = vpop.eup %7602 }
 0xd92   :  { %v3798_v13 = vsel %vm797_vm6, %v7603_v12, 0.0 }
 0xd93   :  { %3796 = vadd.xlane.f32.xlu0 %v3795_v49 }
 0xd95   :  { %v7605_v18 = vpop.eup %7604 }
 0xd96   :  { %v3801_v22 = vsel %vm797_vm6, %v7605_v18, 0.0 }
 0xd97   :  { %3799 = vadd.xlane.f32.xlu0 %v3798_v13 }
 0xd99   :  { %v7607_v23 = vpop.eup %7606 }
 0xd9a   :  { %v3804_v24 = vsel %vm797_vm6, %v7607_v23, 0.0 }
 0xd9b   :  { %3802 = vadd.xlane.f32.xlu0 %v3801_v22 }
 0xd9d   :  { %v7609_v38 = vpop.eup %7608 }
 0xd9e   :  { %v3807_v25 = vsel %vm797_vm6, %v7609_v38, 0.0 }
 0xd9f   :  { %3805 = vadd.xlane.f32.xlu0 %v3804_v24 }
 0xda3   :  { %3808 = vadd.xlane.f32.xlu0 %v3807_v25 }
 0xe10   :  { %v3788_v28 = vpop.xlane.xlu0 %3787 }
 0xe11   :  { %7610 = vrcp.f32 %v3788_v28 }
 0xe14   :  { %v3791_v30 = vpop.xlane.xlu0 %3790 }
 0xe15   :  { %7612 = vrcp.f32 %v3791_v30 }
 0xe18   :  { %v3794_v20 = vpop.xlane.xlu0 %3793 }
 0xe19   :  { %7614 = vrcp.f32 %v3794_v20 }
 0xe1c   :  { %v3797_v31 = vpop.xlane.xlu0 %3796 }
 0xe1d   :  { %7616 = vrcp.f32 %v3797_v31 }
 0xe1e   :  { %v7611_v39 = vpop.eup %7610 }
 0xe1f   :  { %v3818_v41 = vmul.f32 %v7611_v39, %v7595_v10  ;;  %v3547_v10 = vpack.c.bf16 %v8576_v63, %v8576_v63 }
 0xe20   :  { %v3800_v40 = vpop.xlane.xlu0 %3799 }
 0xe21   :  { %7618 = vrcp.f32 %v3800_v40  ;;  %v6529_v40 = vld [vmem:[%s9266_s4 + $0x1] ss:$0 sm:$0xff] }
 0xe22   :  { %v7613_v21 = vpop.eup %7612 }
 0xe23   :  { %v3819_v56 = vmul.f32 %v7613_v21, %v7597_v32 }
 0xe24   :  { %v3803_v44 = vpop.xlane.xlu0 %3802 }
 0xe25   :  { %7620 = vrcp.f32 %v3803_v44  ;;  %v3826_v45 = vpack.c.bf16 %v3819_v56, %v3818_v41 }
 0xe26   :  { %v7615_v47 = vpop.eup %7614 }
 0xe27   :  { %v3834_v46 = vsel %vm797_vm6, %v3826_v45, 0  ;;  %v3820_v50 = vmul.f32 %v7615_v47, %v7599_v4  ;;  %v3549_v4 = vpack.c.bf16 %v8580_v0, %v8580_v0  ;;  %v7423_v0 = vld [vmem:[%s9265_s3 + $0x10] sm:$0xff]  }
 0xe28   :  { %7206 = vmatpush3.bf16.xpose.msra.mxu0 %v3834_v46  ;;  %v3806_v60 = vpop.xlane.xlu0 %3805 }
 0xe29   :  { %7217 = vmatprep.subr.bf16.mxu0 %v7658_v1  ;;  %7622 = vrcp.f32 %v3806_v60 }
 0xe2a   :  { %v7617_v14 = vpop.eup %7616 }
 0xe2b   :  { %v3821_v15 = vmul.f32 %v7617_v14, %v7601_v11 }
 0xe2c   :  { %v3809_v29 = vpop.xlane.xlu0 %3808 }
 0xe2d   :  { %7624 = vrcp.f32 %v3809_v29  ;;  %v3827_v8 = vpack.c.bf16 %v3821_v15, %v3820_v50 }
 0xe2e   :  { %v7619_v35 = vpop.eup %7618 }
 0xe2f   :  { %7208 = vmatmul.mubr.msk.bf16.vlgmr.msra.gmra.mxu0 %vm797_vm6, %v3546_v51  ;;  %v3880_v53 = vsel %vm797_vm6, %v3827_v8, 0  ;;  %v3822_v58 = vmul.f32 %v7619_v35, %v7603_v12 }
 0xe30   :  { %7212 = vmatpush3.bf16.xpose.msra.mxu1 %v3880_v53  ;;  %7219 = vmatprep.mubr.msk.bf16.mxu0 %vm7659_vm0, %v7658_v1 }
 0xe31   :  { %7223 = vmatprep.subr.bf16.mxu1 %v7658_v1 }
 0xe32   :  { %v7621_v57 = vpop.eup %7620 }
 0xe33   :  { %v3823_v59 = vmul.f32 %v7621_v57, %v7605_v18 }
 0xe35   :  { %v3828_v42 = vpack.c.bf16 %v3823_v59, %v3822_v58 }
 0xe36   :  { %v7623_v62 = vpop.eup %7622 }
 0xe37   :  { %7214 = vmatmul.mubr.msk.bf16.vlgmr.msra.gmra.mxu1 %vm797_vm6, %v3547_v10  ;;  %v3926_v61 = vsel %vm797_vm6, %v3828_v42, 0  ;;  %v3824_v54 = vmul.f32 %v7623_v62, %v7607_v23  ;;  %v6248_v10 = vld [vmem:[%s9269_s7 + $0x1c0] sm:$0xff]  ;;  %v6241_v42 = vld [vmem:[%s9269_s7 + $0x188] sm:$0xff] }
 0xe38   :  { %7218 = vmatpush3.bf16.xpose.msra.mxu0 %v3926_v61  ;;  %7225 = vmatprep.mubr.msk.bf16.mxu1 %vm7659_vm0, %v7658_v1  ;;  %v6249_v62 = vld [vmem:[%s9269_s7 + $0x1c8] sm:$0xff] }
 0xe39   :  { %7229 = vmatprep.subr.bf16.mxu0 %v7658_v1 }
 0xe3a   :  { %v7625_v17 = vpop.eup %7624 }
 0xe3b   :  { %v3825_v32 = vmul.f32 %v7625_v17, %v7609_v38 }
 0xe3d   :  { %v3829_v3 = vpack.c.bf16 %v3825_v32, %v3824_v54  ;;  %v6553_v54 = vcombine.low %v6241_v42, %v6249_v62  ;;  %v6554_v32 = vcombine.high %v6241_v42, %v6249_v62  ;;  %v6236_v42 = vld [vmem:[%s9269_s7 + $0x160] sm:$0xff]  ;;  %v6237_v62 = vld [vmem:[%s9269_s7 + $0x168] sm:$0xff] }
 0xe3f   :  { %7220 = vmatmul.mubr.msk.bf16.vlgmr.msra.gmra.mxu0 %vm797_vm6, %v3548_v2  ;;  %v3972_v63 = vsel %vm797_vm6, %v3829_v3, 0  ;;  %v6224_v2 = vld [vmem:[%s9269_s7 + $0x100] sm:$0xff] }
 0xe40   :  { %7224 = vmatpush3.bf16.xpose.msra.mxu1 %v3972_v63  ;;  %7233 = vmatprep.mubr.msk.bf16.mxu0 %vm7659_vm0, %v7658_v1  ;;  %v6232_v3 = vld [vmem:[%s9269_s7 + $0x140] sm:$0xff]  ;;  %v6225_v63 = vld [vmem:[%s9269_s7 + $0x108] sm:$0xff] }
 0xe41   :  { %7230 = vmatpush3.bf16.msra.mxu0 %v7422_v43  ;;  %v6233_v43 = vld [vmem:[%s9269_s7 + $0x148] sm:$0xff] }
 0xe42   :  { %7231 = vmatprep.subr.bf16.mxu0 %v7658_v1 }
 0xe45   :  { %7232 = vmatpush3.bf16.msra.mxu0 %v7423_v0  ;;  %v6243_v0 = vld [vmem:[%s9269_s7 + $0x198] sm:$0xff] }
 0xe46   :  { %4454 = vmatprep.subr.bf16.mxu0 %v6554_v32 }
 0xe47   :  { %7226 = vmatmul.mubr.msk.bf16.vlgmr.msra.gmra.mxu1 %vm797_vm6, %v3549_v4  ;;  %v6536_v4 = vcombine.high %v6224_v2, %v6232_v3 }
 0xe48   :  { %4431 = vmatprep.mubr.bf16.mxu1 %v7661_v52 }
 0xeef   :  { %v3870_v5 = vpop.f32.mrf.mxu0 }
 0xef0   :  { %4014 = vxpose.xlu1.b32.start [1/4] (short) (narrow) %v3870_v5, 16  ;;  %v6535_v5 = vcombine.low %v6224_v2, %v6232_v3  ;;  %v6246_v3 = vld [vmem:[%s9269_s7 + $0x1b0] sm:$0xff] }
 0xef1   :  { %v7209_v16 = vpop.f32.mrf.mxu0 }
 0xef2   :  { %v6537_v16 = vcombine.low %v6225_v63, %v6233_v43 }
 0xef3   :  { %v3873_v19 = vpop.f32.mrf.mxu0 }
 0xef4   :  { %v6538_v19 = vcombine.high %v6225_v63, %v6233_v43  ;;  %v6254_v63 = vld [vmem:[%s9269_s7 + $0x1f0] sm:$0xff]  ;;  %v6255_v43 = vld [vmem:[%s9269_s7 + $0x1f8] sm:$0xff] }
 0xef5   :  { %v7210_v9 = vpop.f32.mrf.mxu0 }
 0xef6   :  { %v6242_v9 = vld [vmem:[%s9269_s7 + $0x190] sm:$0xff] }
 0xef7   :  { %v3916_v11 = vpop.f32.mrf.mxu1 }
 0xef8   :  { %4015 = vxpose.xlu1.b32.cont [2/4] (short) (narrow) %v3916_v11, 16  ;;  %v6250_v11 = vld [vmem:[%s9269_s7 + $0x1d0] sm:$0xff] }
 0xef9   :  { %v7215_v49 = vpop.f32.mrf.mxu1 }
 0xefa   :  { %v6555_v49 = vcombine.low %v6242_v9, %v6250_v11 }
 0xefb   :  { %v3919_v12 = vpop.f32.mrf.mxu1 }
 0xefc   :  { %v6556_v12 = vcombine.high %v6242_v9, %v6250_v11  ;;  %v6230_v11 = vld [vmem:[%s9269_s7 + $0x130] sm:$0xff] }
 0xefd   :  { %v7216_v13 = vpop.f32.mrf.mxu1 }
 0xefe   :  { %v6251_v13 = vld [vmem:[%s9269_s7 + $0x1d8] sm:$0xff] }
 0xeff   :  { %v3962_v18 = vpop.f32.mrf.mxu0 }
 0xf00   :  { %4016 = vxpose.xlu1.b32.cont [3/4] (short) (narrow) %v3962_v18, 16  ;;  %v6557_v18 = vcombine.low %v6243_v0, %v6251_v13 }
 0xf01   :  { %v7221_v22 = vpop.f32.mrf.mxu0 }
 0xf02   :  { %v6558_v22 = vcombine.high %v6243_v0, %v6251_v13  ;;  %v6238_v0 = vld [vmem:[%s9269_s7 + $0x170] sm:$0xff]  ;;  %v6563_v13 = vcombine.low %v6246_v3, %v6254_v63 }
 0xf03   :  { %v3965_v23 = vpop.f32.mrf.mxu0 }
 0xf05   :  { %v7222_v24 = vpop.f32.mrf.mxu0 }
 0xf07   :  { %v4008_v38 = vpop.f32.mrf.mxu1 }
 0xf08   :  { %4017 = vxpose.xlu1.b32.end [4/4] (short) (narrow) %v4008_v38, 16 }
 0xf09   :  { %v7227_v25 = vpop.f32.mrf.mxu1 }
 0xf0b   :  { %v4011_v28 = vpop.f32.mrf.mxu1 }
 0xf0d   :  { %v7228_v30 = vpop.f32.mrf.mxu1 }
 0xf78   :  { %v4030_v20 = vpop.trf.xlu1 }
 0xf7c   :  { %v4031_v31 = vpop.trf.xlu1 }
 0xf7d   :  { %v4046_v39 = vpack.c.bf16 %v4031_v31, %v4030_v20 }
 0xf7f   :  { %7234 = vmatmul.mubr.msk.bf16.vlgmr.msra.gmra.mxu0 %vm390_vm1, %v4046_v39  ;;  %v6533_v39 = vld [vmem:[%s9267_s5 + $0x1] ss:$0 sm:$0xff] }
 0xf80   :  { %4474 = vmatprep.mubr.bf16.mxu0 %v7661_v52  ;;  %4455 = vmatpush1.bf16.msra.mxu0 %v6553_v54 }
 0xf81   :  { %4456 = vmatprep.subr.bf16.mxu0 %v6538_v19  ;;  %v6564_v19 = vcombine.high %v6246_v3, %v6254_v63 }
 0xf84   :  { %4457 = vmatpush1.bf16.msra.mxu0 %v6537_v16 }
 0xf85   :  { %4540 = vmatprep.subr.bf16.mxu0 %v6558_v22  ;;  %v6548_v22 = vcombine.high %v6230_v11, %v6238_v0 }
0x103f   :  { %v4102_v21 = vpop.f32.mrf.mxu0 }
0x1040   :  { %v4103_v41 = vadd.f32 %v6529_v40, %v4102_v21 }
0x1041   :  { %v7235_v56 = vpop.f32.mrf.mxu0 }
0x1042   :  { %v4109_v44 = vadd.f32 %v4103_v41, %v8526_v55  ;;  %v6534_v56 = vld [vmem:[%s9268_s6 + $0x1] ss:$0 sm:$0xff] }
0x1043   :  { %v4105_v45 = vpop.f32.mrf.mxu0 }
0x1044   :  { %v4106_v46 = vadd.f32 %v6529_v40, %v4105_v45  ;;  %v4111_v47 = vsel %vm390_vm1, %v4109_v44, 0.0  ;;  %v6226_v45 = vld [vmem:[%s9269_s7 + $0x110] sm:$0xff] }
0x1045   :  { %4112 = vadd.xlane.f32.xlu0 %v4111_v47  ;;  %v7236_v60 = vpop.f32.mrf.mxu0  ;;  %v6227_v47 = vld [vmem:[%s9269_s7 + $0x118] sm:$0xff] }
0x1046   :  { %v4110_v14 = vadd.f32 %v4106_v46, %v8528_v26  ;;  %v6240_v26 = vld [vmem:[%s9269_s7 + $0x180] sm:$0xff]  ;;  %v6234_v46 = vld [vmem:[%s9269_s7 + $0x150] sm:$0xff]  ;;  %v6235_v60 = vld [vmem:[%s9269_s7 + $0x158] sm:$0xff] }
0x1047   :  { %v6552_v61 = vcombine.high %v6240_v26, %v6248_v10  ;;  %v6551_v17 = vcombine.low %v6240_v26, %v6248_v10  ;;  %v6228_v10 = vld [vmem:[%s9269_s7 + $0x120] sm:$0xff] }
0x1048   :  { %v4114_v50 = vsel %vm390_vm1, %v4110_v14, 0.0  ;;  %v6544_v32 = vcombine.high %v6228_v10, %v6236_v42 }
0x1049   :  { %4115 = vadd.xlane.f32.xlu0 %v4114_v50  ;;  %4411 = vmatprep.subr.bf16.mxu1 %v6552_v61  ;;  %v6229_v61 = vld [vmem:[%s9269_s7 + $0x128] sm:$0xff] }
0x104a   :  { %4412 = vmatpush1.bf16.msra.mxu1 %v6551_v17  ;;  %v6546_v2 = vcombine.high %v6229_v61, %v6237_v62  ;;  %v6545_v16 = vcombine.low %v6229_v61, %v6237_v62  ;;  %v7453_v61 = vld [vmem:[%s9271_s9 + $0x4c0] sm:$0xff]  }
0x104b   :  { %4413 = vmatprep.subr.bf16.mxu1 %v6536_v4  ;;  %v6247_v4 = vld [vmem:[%s9269_s7 + $0x1b8] sm:$0xff]  ;;  %v7454_v62 = vld [vmem:[%s9271_s9 + $0x400] sm:$0xff]  }
0x104c   :  { %v6566_v9 = vcombine.high %v6247_v4, %v6255_v43 }
0x104e   :  { %4414 = vmatpush1.bf16.msra.mxu1 %v6535_v5  ;;  %v6543_v5 = vcombine.low %v6228_v10, %v6236_v42  ;;  %v7451_v10 = vld [vmem:[%s9271_s9 + $0x488] sm:$0xff]   ;;  %v7452_v42 = vld [vmem:[%s9271_s9 + $0x440] sm:$0xff]  }
0x104f   :  { %4497 = vmatprep.subr.bf16.mxu1 %v6556_v12  ;;  %v6239_v12 = vld [vmem:[%s9269_s7 + $0x178] sm:$0xff] }
0x10ce   :  { %v4113_v15 = vpop.xlane.xlu0 %4112 }
0x10cf   :  { %v4117_v29 = vmul.f32 0.03125, %v4113_v15 }
0x10d1   :  { %v4119_v51 = vsub.f32 %v4109_v44, %v4117_v29  ;;  %v6540_v29 = vcombine.high %v6226_v45, %v6234_v46 }
0x10d2   :  { %v4116_v8 = vpop.xlane.xlu0 %4115 }
0x10d3   :  { %v4118_v53 = vmul.f32 0.03125, %v4116_v8  ;;  %v4121_v35 = vmul.f32 %v4119_v51, %v4119_v51  ;;  %v6244_v8 = vld [vmem:[%s9269_s7 + $0x1a0] sm:$0xff] }
0x10d5   :  { %v4120_v57 = vsub.f32 %v4110_v14, %v4118_v53  ;;  %v4123_v55 = vsel %vm390_vm1, %v4121_v35, 0.0  ;;  %v6252_v53 = vld [vmem:[%s9269_s7 + $0x1e0] sm:$0xff]  ;;  %v6245_v35 = vld [vmem:[%s9269_s7 + $0x1a8] sm:$0xff] }
0x10d6   :  { %4124 = vadd.xlane.f32.xlu0 %v4123_v55  ;;  %v6539_v55 = vcombine.low %v6226_v45, %v6234_v46  ;;  %v6559_v17 = vcombine.low %v6244_v8, %v6252_v53  ;;  %v7436_v45 = vld [vmem:[%s9271_s9 + $0x460] sm:$0xff]  }
0x10d7   :  { %v4122_v58 = vmul.f32 %v4120_v57, %v4120_v57  ;;  %v7437_v46 = vld [vmem:[%s9271_s9 + $0x4e0] sm:$0xff]  }
0x10d9   :  { %v4126_v59 = vsel %vm390_vm1, %v4122_v58, 0.0  ;;  %v6541_v58 = vcombine.low %v6227_v47, %v6235_v60 }
0x10da   :  { %4127 = vadd.xlane.f32.xlu0 %v4126_v59  ;;  %v6560_v59 = vcombine.high %v6244_v8, %v6252_v53  ;;  %v7443_v8 = vld [vmem:[%s9271_s9 + $0x498] sm:$0xff]   ;;  %v7444_v53 = vld [vmem:[%s9271_s9 + $0x450] sm:$0xff]  }
0x115f   :  { %v4125_v23 = vpop.xlane.xlu0 %4124 }
0x1160   :  { %v4129_v24 = vmul.f32 0.03125, %v4125_v23 }
0x1162   :  { %v4131_v38 = vadd.f32 1e-05, %v4129_v24  ;;  %v6547_v24 = vcombine.low %v6230_v11, %v6238_v0 }
0x1163   :  { %v4128_v25 = vpop.xlane.xlu0 %4127 }
0x1164   :  { %7626 = vrsqrt.f32 %v4131_v38  ;;  %v4130_v28 = vmul.f32 0.03125, %v4128_v25  ;;  %v7424_v25 = vld [vmem:[%s9271_s9 + $0x478] sm:$0xff]  }
0x1166   :  { %v4132_v30 = vadd.f32 1e-05, %v4130_v28  ;;  %v7425_v28 = vld [vmem:[%s9271_s9 + $0x4f8] sm:$0xff]  }
0x1168   :  { %7628 = vrsqrt.f32 %v4132_v30  ;;  %v7426_v30 = vld [vmem:[%s9271_s9 + $0x438] sm:$0xff]  }
0x1171   :  { %v7627_v20 = vpop.eup %7626 }
0x1172   :  { %v4135_v31 = vmul.f32 %v7627_v20, %v4119_v51  ;;  %v6542_v51 = vcombine.high %v6227_v47, %v6235_v60  ;;  %v7427_v20 = vld [vmem:[%s9271_s9 + $0x4b8] sm:$0xff]   ;;  %v7438_v47 = vld [vmem:[%s9271_s9 + $0x420] sm:$0xff]  }
0x1173   :  { %v7439_v60 = vld [vmem:[%s9271_s9 + $0x4a0] sm:$0xff]  }
0x1174   :  { %v4143_v21 = vmul.f32 %v6533_v39, %v4135_v31  ;;  %v7428_v31 = vld [vmem:[%s9271_s9 + $0x470] sm:$0xff]  }
0x1175   :  { %v7629_v40 = vpop.eup %7628 }
0x1176   :  { %v4136_v41 = vmul.f32 %v7629_v40, %v4120_v57  ;;  %v8688_v14 = vadd.f32 %v6534_v56, %v4143_v21  ;;  %v6253_v57 = vld [vmem:[%s9269_s7 + $0x1e8] sm:$0xff]  ;;  %v7431_v40 = vld [vmem:[%s9271_s9 + $0x4b0] sm:$0xff]  }
0x1177   :  { %v6562_v26 = vcombine.high %v6245_v35, %v6253_v57  ;;  %v6561_v54 = vcombine.low %v6245_v35, %v6253_v57  ;;  %v7432_v21 = vld [vmem:[%s9271_s9 + $0x468] sm:$0xff]   ;;  %v7445_v35 = vld [vmem:[%s9271_s9 + $0x4d0] sm:$0xff]  }
0x1178   :  { %v4144_v44 = vmul.f32 %v6533_v39, %v4136_v41  ;;  %v7430_v39 = vld [vmem:[%s9271_s9 + $0x430] sm:$0xff]   ;;  %v7433_v41 = vld [vmem:[%s9271_s9 + $0x4e8] sm:$0xff]  }
0x1179   :  { %v7446_v57 = vld [vmem:[%s9271_s9 + $0x410] sm:$0xff]  }
0x117a   :  { %v8690_v50 = vadd.f32 %v6534_v56, %v4144_v44  ;;  %v7434_v56 = vld [vmem:[%s9271_s9 + $0x428] sm:$0xff]  }
0x117b   :  { %v7435_v44 = vld [vmem:[%s9271_s9 + $0x4a8] sm:$0xff]  }
0x117c   :  { %v8694_v15 = vpack.c.bf16 %v8690_v50, %v8688_v14 }
0x117e   :  { %6567 = vmatmul.mubr.msk.bf16.vlgmr.msra.gmra.mxu1 %vm390_vm1, %v8694_v15  ;;  %6568 = vmatmul.mubr.msk.bf16.vlgmr.msra.gmra.mxu0 %vm390_vm1, %v8694_v15 }
0x117f   :  { %4498 = vmatpush1.bf16.msra.mxu1 %v6555_v49  ;;  %4541 = vmatpush1.bf16.msra.mxu0 %v6557_v18  ;;  %v6231_v49 = vld [vmem:[%s9269_s7 + $0x138] sm:$0xff]  ;;  %v6565_v18 = vcombine.low %v6247_v4, %v6255_v43 }
0x1180   :  { %4499 = vmatprep.subr.bf16.mxu1 %v6540_v29  ;;  %4542 = vmatprep.subr.bf16.mxu0 %v6542_v51  ;;  %v6550_v23 = vcombine.high %v6231_v49, %v6239_v12  ;;  %v6549_v38 = vcombine.low %v6231_v49, %v6239_v12  ;;  %v7441_v29 = vld [vmem:[%s9271_s9 + $0x4d8] sm:$0xff]  }
0x1181   :  { %4517 = vmatprep.mubr.bf16.mxu1 %v7661_v52  ;;  %4560 = vmatprep.mubr.bf16.mxu0 %v7661_v52  ;;  %v7442_v51 = vld [vmem:[%s9271_s9 + $0x418] sm:$0xff]  }
0x1183   :  { %4500 = vmatpush1.bf16.msra.mxu1 %v6539_v55  ;;  %4543 = vmatpush1.bf16.msra.mxu0 %v6541_v58  ;;  %v7447_v55 = vld [vmem:[%s9271_s9 + $0x490] sm:$0xff]   ;;  %v7448_v58 = vld [vmem:[%s9271_s9 + $0x448] sm:$0xff]  }
0x1184   :  { %4583 = vmatprep.subr.bf16.mxu1 %v6560_v59  ;;  %4626 = vmatprep.subr.bf16.mxu0 %v6562_v26  ;;  %v7449_v59 = vld [vmem:[%s9271_s9 + $0x4c8] sm:$0xff]  }
0x1185   :  { %v7450_v26 = vld [vmem:[%s9271_s9 + $0x408] sm:$0xff]  }
0x1186   :  { %6569 = vmatmul.mubr.msk.bf16.vlgmr.msra.gmra.mxu1 %vm390_vm1, %v8694_v15  ;;  %6570 = vmatmul.mubr.msk.bf16.vlgmr.msra.gmra.mxu0 %vm390_vm1, %v8694_v15 }
0x1187   :  { %4584 = vmatpush1.bf16.msra.mxu1 %v6559_v17  ;;  %4627 = vmatpush1.bf16.msra.mxu0 %v6561_v54  ;;  %v7455_v17 = vld [vmem:[%s9271_s9 + $0x480] sm:$0xff]   ;;  %v7456_v54 = vld [vmem:[%s9271_s9 + $0x578] sm:$0xff]  }
0x1188   :  { %4585 = vmatprep.subr.bf16.mxu1 %v6544_v32  ;;  %4628 = vmatprep.subr.bf16.mxu0 %v6546_v2  ;;  %v7457_v32 = vld [vmem:[%s9271_s9 + $0x5f8] sm:$0xff]   ;;  %v8871_v2 = vld [vmem:[%s9270_s8 + $0x10] sm:$0xff] }
0x1189   :  { %4603 = vmatprep.mubr.bf16.mxu1 %v7661_v52  ;;  %4646 = vmatprep.mubr.bf16.mxu0 %v7661_v52  ;;  %v4163_v4 = vrot.slane %v8871_v2, %v8114_v33  ;;  %v4171_v43 = vrot.slane %v8871_v2, %v8117_v34 }
0x118b   :  { %4586 = vmatpush1.bf16.msra.mxu1 %v6543_v5  ;;  %4629 = vmatpush1.bf16.msra.mxu0 %v6545_v16  ;;  %v4159_v5 = vrot.slane %v8871_v2, %v8120_v36  ;;  %v4167_v16 = vrot.slane %v8871_v2, %v8123_v37 }
0x118c   :  { %4669 = vmatprep.subr.bf16.mxu1 %v6564_v19  ;;  %4712 = vmatprep.subr.bf16.mxu0 %v6566_v9 }
0x118e   :  { %6571 = vmatmul.mubr.msk.bf16.vlgmr.msra.gmra.mxu1 %vm390_vm1, %v8694_v15  ;;  %6572 = vmatmul.mubr.msk.bf16.vlgmr.msra.gmra.mxu0 %vm390_vm1, %v8694_v15 }
0x118f   :  { %4670 = vmatpush1.bf16.msra.mxu1 %v6563_v13  ;;  %4713 = vmatpush1.bf16.msra.mxu0 %v6565_v18 }
0x1190   :  { %4671 = vmatprep.subr.bf16.mxu1 %v6548_v22  ;;  %4714 = vmatprep.subr.bf16.mxu0 %v6550_v23 }
0x1191   :  { %4689 = vmatprep.mubr.bf16.mxu1 %v7661_v52  ;;  %4732 = vmatprep.mubr.bf16.mxu0 %v7661_v52  ;;  %v7429_v52 = vld [vmem:[%s9271_s9 + $0x4f0] sm:$0xff]  }
0x1193   :  { %4672 = vmatpush1.bf16.msra.mxu1 %v6547_v24  ;;  %4715 = vmatpush1.bf16.msra.mxu0 %v6549_v38 }
0x1194   :  { %6930 = vmatprep.subr.bf16.mxu1 %v7424_v25  ;;  %6952 = vmatprep.subr.bf16.mxu0 %v7425_v28 }
0x1196   :  { %6573 = vmatmul.mubr.msk.bf16.vlgmr.msra.gmra.mxu1 %vm390_vm1, %v8694_v15  ;;  %6574 = vmatmul.mubr.msk.bf16.vlgmr.msra.gmra.mxu0 %vm390_vm1, %v8694_v15  ;;  %v7440_v15 = vld [vmem:[%s9271_s9 + $0x458] sm:$0xff]  }
0x1197   :  { %6931 = vmatpush3.bf16.msra.mxu1 %v7426_v30  ;;  %6953 = vmatpush3.bf16.msra.mxu0 %v7427_v20 }
0x1198   :  { %6932 = vmatprep.subr.bf16.mxu1 %v7428_v31  ;;  %6954 = vmatprep.subr.bf16.mxu0 %v7429_v52 }
0x119b   :  { %6933 = vmatpush3.bf16.msra.mxu1 %v7430_v39  ;;  %6955 = vmatpush3.bf16.msra.mxu0 %v7431_v40  ;;  %v4179_v39 = vrot.slane %v8871_v2, %v8139_v48  ;;  %v4187_v40 = vrot.slane %v8871_v2, %v8142_v27 }
0x119c   :  { %6934 = vmatprep.subr.bf16.mxu1 %v7432_v21  ;;  %6956 = vmatprep.subr.bf16.mxu0 %v7433_v41 }
0x119f   :  { %6935 = vmatpush3.bf16.msra.mxu1 %v7434_v56  ;;  %6957 = vmatpush3.bf16.msra.mxu0 %v7435_v44 }
0x11a0   :  { %6936 = vmatprep.subr.bf16.mxu1 %v7436_v45  ;;  %6958 = vmatprep.subr.bf16.mxu0 %v7437_v46 }
0x11a3   :  { %6937 = vmatpush3.bf16.msra.mxu1 %v7438_v47  ;;  %6959 = vmatpush3.bf16.msra.mxu0 %v7439_v60 }
0x11a4   :  { %6938 = vmatprep.subr.bf16.mxu1 %v7440_v15  ;;  %6960 = vmatprep.subr.bf16.mxu0 %v7441_v29 }
0x11a7   :  { %6939 = vmatpush3.bf16.msra.mxu1 %v7442_v51  ;;  %6961 = vmatpush3.bf16.msra.mxu0 %v7443_v8  ;;  %v7458_v51 = vld [vmem:[%s9271_s9 + $0x538] sm:$0xff]  }
0x11a8   :  { %6940 = vmatprep.subr.bf16.mxu1 %v7444_v53  ;;  %6962 = vmatprep.subr.bf16.mxu0 %v7445_v35  ;;  %v7459_v8 = vld [vmem:[%s9271_s9 + $0x5b8] sm:$0xff]  }
0x11ab   :  { %6941 = vmatpush3.bf16.msra.mxu1 %v7446_v57  ;;  %6963 = vmatpush3.bf16.msra.mxu0 %v7447_v55 }
0x11ac   :  { %6942 = vmatprep.subr.bf16.mxu1 %v7448_v58  ;;  %6964 = vmatprep.subr.bf16.mxu0 %v7449_v59  ;;  %v7460_v58 = vld [vmem:[%s9271_s9 + $0x570] sm:$0xff]  }
0x11ad   :  { %v7461_v59 = vld [vmem:[%s9271_s9 + $0x5f0] sm:$0xff]  }
0x11af   :  { %6943 = vmatpush3.bf16.msra.mxu1 %v7450_v26  ;;  %6965 = vmatpush3.bf16.msra.mxu0 %v7451_v10 }
0x11b0   :  { %6944 = vmatprep.subr.bf16.mxu1 %v7452_v42  ;;  %6966 = vmatprep.subr.bf16.mxu0 %v7453_v61 }
0x11b3   :  { %6945 = vmatpush3.bf16.msra.mxu1 %v7454_v62  ;;  %6967 = vmatpush3.bf16.msra.mxu0 %v7455_v17 }
0x11b4   :  { %6974 = vmatprep.subr.bf16.mxu1 %v7456_v54  ;;  %6996 = vmatprep.subr.bf16.mxu0 %v7457_v32  ;;  %v7462_v54 = vld [vmem:[%s9271_s9 + $0x530] sm:$0xff]  }
0x11b5   :  { %v7463_v32 = vld [vmem:[%s9271_s9 + $0x5b0] sm:$0xff]  }
0x123e   :  { %v4433_v3 = vpop.f32.mrf.mxu1  ;;  %v4476_v63 = vpop.f32.mrf.mxu0 }
0x123f   :  { %v4434_v22 = vadd.f32 %v4433_v3, %v4159_v5  ;;  %v4477_v23 = vadd.f32 %v4476_v63, %v4167_v16  ;;  %v7464_v3 = vld [vmem:[%s9271_s9 + $0x568] sm:$0xff]  }
0x1240   :  { %v4435_v19 = vpop.f32.mrf.mxu1  ;;  %v4478_v9 = vpop.f32.mrf.mxu0 }
0x1241   :  { %v4436_v49 = vadd.f32 %v4435_v19, %v4163_v4  ;;  %v4479_v12 = vadd.f32 %v4478_v9, %v4171_v43  ;;  %v4743_v45 = vmax.f32 %v4434_v22, 0.0  ;;  %v4745_v46 = vmax.f32 %v4477_v23, 0.0  ;;  %v7471_v23 = vld [vmem:[%s9271_s9 + $0x5a0] sm:$0xff]  }
0x1242   :  { %v4437_v11 = vpop.f32.mrf.mxu1  ;;  %v4480_v0 = vpop.f32.mrf.mxu0 }
0x1243   :  { %v4438_v13 = vadd.f32 %v4437_v11, %v4159_v5  ;;  %v4481_v18 = vadd.f32 %v4480_v0, %v4167_v16  ;;  %v4744_v21 = vmax.f32 %v4436_v49, 0.0  ;;  %v4746_v41 = vmax.f32 %v4479_v12, 0.0  ;;  %v7465_v16 = vld [vmem:[%s9271_s9 + $0x5e8] sm:$0xff]   ;;  %v7468_v49 = vld [vmem:[%s9271_s9 + $0x560] sm:$0xff]  }
0x1244   :  { %v4439_v24 = vpop.f32.mrf.mxu1  ;;  %v4482_v38 = vpop.f32.mrf.mxu0  ;;  %v7466_v11 = vld [vmem:[%s9271_s9 + $0x528] sm:$0xff]   ;;  %v7469_v12 = vld [vmem:[%s9271_s9 + $0x5e0] sm:$0xff]  }
0x1245   :  { %v4440_v25 = vadd.f32 %v4439_v24, %v4163_v4  ;;  %v4483_v28 = vadd.f32 %v4482_v38, %v4171_v43  ;;  %v4759_v30 = vmax.f32 %v4438_v13, 0.0  ;;  %v4761_v20 = vmax.f32 %v4481_v18, 0.0  ;;  %v7467_v0 = vld [vmem:[%s9271_s9 + $0x5a8] sm:$0xff]   ;;  %v7470_v18 = vld [vmem:[%s9271_s9 + $0x520] sm:$0xff]   ;;  %v7472_v24 = vld [vmem:[%s9271_s9 + $0x558] sm:$0xff]  }
0x1246   :  { %v8881_v31 = vpop.f32.mrf.mxu1  ;;  %v8883_v52 = vpop.f32.mrf.mxu0  ;;  %v7473_v38 = vld [vmem:[%s9271_s9 + $0x5d8] sm:$0xff]  }
0x1247   :  { %v4760_v56 = vmax.f32 %v4440_v25, 0.0  ;;  %v4762_v44 = vmax.f32 %v4483_v28, 0.0  ;;  %v4775_v53 = vpack.c.bf16 %v4759_v30, %v4743_v45  ;;  %v4777_v35 = vpack.c.bf16 %v4761_v20, %v4745_v46  ;;  %v7474_v28 = vld [vmem:[%s9271_s9 + $0x518] sm:$0xff]   ;;  %v7480_v45 = vld [vmem:[%s9271_s9 + $0x548] sm:$0xff]  }
0x1248   :  { %v4521_v47 = vpop.f32.mrf.mxu1  ;;  %v4564_v60 = vpop.f32.mrf.mxu0  ;;  %v7475_v20 = vld [vmem:[%s9271_s9 + $0x598] sm:$0xff]   ;;  %v7481_v46 = vld [vmem:[%s9271_s9 + $0x5c8] sm:$0xff]  }
0x1249   :  { %v4776_v15 = vpack.c.bf16 %v4760_v56, %v4744_v21  ;;  %v4778_v29 = vpack.c.bf16 %v4762_v44, %v4746_v41  ;;  %v4522_v26 = vadd.f32 %v4521_v47, %v4179_v39  ;;  %v4565_v10 = vadd.f32 %v4564_v60, %v4187_v40  ;;  %v7478_v41 = vld [vmem:[%s9271_s9 + $0x510] sm:$0xff]  }
0x124a   :  { %v8895_v57 = vpop.f32.mrf.mxu1  ;;  %v8897_v55 = vpop.f32.mrf.mxu0  ;;  %v7479_v44 = vld [vmem:[%s9271_s9 + $0x590] sm:$0xff]   ;;  %v4175_v47 = vrot.slane %v8871_v2, %v8221_v6  ;;  %v4183_v60 = vrot.slane %v8871_v2, %v8224_v7  ;;  %v7483_v2 = vld [vmem:[%s9271_s9 + $0x588] sm:$0xff]  }
0x124b   :  { %5597 = vmatprep.mubr.bf16.mxu1 %v4776_v15  ;;  %5638 = vmatprep.mubr.bf16.mxu0 %v4778_v29  ;;  %v4748_v63 = vmax.f32 %v4522_v26, 0.0  ;;  %v4750_v4 = vmax.f32 %v4565_v10, 0.0  ;;  %v8980_v15 = vld [vmem:[%s9270_s8 + $0x18] sm:$0xff] }
0x124c   :  { %v4525_v42 = vpop.f32.mrf.mxu1  ;;  %v4568_v61 = vpop.f32.mrf.mxu0  ;;  %5598 = vmatmul.mubr.bf16.vlgmr.msra.gmra.mxu1 %v4775_v53  ;;  %5639 = vmatmul.mubr.bf16.vlgmr.msra.gmra.mxu0 %v4777_v35  ;;  %v4195_v53 = vrot.slane %v8980_v15, %v8114_v33  ;;  %v4203_v26 = vrot.slane %v8980_v15, %v8117_v34  ;;  %v7485_v33 = vld [vmem:[%s9271_s9 + $0x5c0] sm:$0xff]  }
0x124d   :  { %v4526_v62 = vadd.f32 %v4525_v42, %v4179_v39  ;;  %v4569_v17 = vadd.f32 %v4568_v61, %v4187_v40  ;;  %6975 = vmatpush3.bf16.msra.mxu1 %v7458_v51  ;;  %6997 = vmatpush3.bf16.msra.mxu0 %v7459_v8  ;;  %v7476_v39 = vld [vmem:[%s9271_s9 + $0x550] sm:$0xff]   ;;  %v7482_v51 = vld [vmem:[%s9271_s9 + $0x508] sm:$0xff]   ;;  %v4524_v8 = vadd.f32 %v8895_v57, %v4175_v47  ;;  %v7487_v34 = vld [vmem:[%s9271_s9 + $0x580] sm:$0xff]  }
0x124e   :  { %6976 = vmatprep.subr.bf16.mxu1 %v7460_v58  ;;  %6998 = vmatprep.subr.bf16.mxu0 %v7461_v59  ;;  %v8929_v13 = vpop.f32.mrf.mxu1  ;;  %v8934_v22 = vpop.f32.mrf.mxu0  ;;  %v7477_v40 = vld [vmem:[%s9271_s9 + $0x5d0] sm:$0xff]   ;;  %v7484_v58 = vld [vmem:[%s9271_s9 + $0x540] sm:$0xff]   ;;  %v4567_v59 = vadd.f32 %v8897_v55, %v4183_v60  ;;  %v4520_v57 = vadd.f32 %v8881_v31, %v4175_v47  ;;  %v4563_v42 = vadd.f32 %v8883_v52, %v4183_v60  ;;  %v7488_v31 = vld [vmem:[%s9271_s9 + $0x678] sm:$0xff]  }
0x124f   :  { %v4764_v43 = vmax.f32 %v4526_v62, 0.0  ;;  %v4766_v5 = vmax.f32 %v4569_v17, 0.0  ;;  %v7486_v62 = vld [vmem:[%s9271_s9 + $0x500] sm:$0xff]   ;;  %v4763_v55 = vmax.f32 %v4524_v8, 0.0  ;;  %v7504_v47 = vld [vmem:[%s9271_s9 + $0x658] sm:$0xff]  }
0x1250   :  { %v4607_v25 = vpop.f32.mrf.mxu1  ;;  %v4650_v30 = vpop.f32.mrf.mxu0  ;;  %v7505_v60 = vld [vmem:[%s9271_s9 + $0x6d8] sm:$0xff]  }
0x1251   :  { %v4780_v19 = vpack.c.bf16 %v4764_v43, %v4748_v63  ;;  %v4782_v9 = vpack.c.bf16 %v4766_v5, %v4750_v4  ;;  %6977 = vmatpush3.bf16.msra.mxu1 %v7462_v54  ;;  %6999 = vmatpush3.bf16.msra.mxu0 %v7463_v32  ;;  %v4608_v17 = vadd.f32 %v4607_v25, %v4195_v53  ;;  %v4765_v54 = vmax.f32 %v4567_v59, 0.0  ;;  %v7489_v32 = vld [vmem:[%s9271_s9 + $0x6f8] sm:$0xff]   ;;  %v7496_v25 = vld [vmem:[%s9271_s9 + $0x668] sm:$0xff]   ;;  %v7510_v59 = vld [vmem:[%s9271_s9 + $0x610] sm:$0xff]  }
0x1252   :  { %6978 = vmatprep.subr.bf16.mxu1 %v7464_v3  ;;  %7000 = vmatprep.subr.bf16.mxu0 %v7465_v16  ;;  %v8957_v21 = vpop.f32.mrf.mxu1  ;;  %v8962_v56 = vpop.f32.mrf.mxu0  ;;  %v4651_v52 = vadd.f32 %v4650_v30, %v4203_v26  ;;  %v4747_v3 = vmax.f32 %v4520_v57, 0.0  ;;  %v4749_v4 = vmax.f32 %v4563_v42, 0.0  ;;  %v7490_v5 = vld [vmem:[%s9271_s9 + $0x638] sm:$0xff]   ;;  %v7498_v30 = vld [vmem:[%s9271_s9 + $0x628] sm:$0xff]   ;;  %v4191_v42 = vrot.slane %v8980_v15, %v8120_v36 }
0x1253   :  { %5679 = vmatprep.mubr.bf16.mxu1 %v4780_v19  ;;  %5720 = vmatprep.mubr.bf16.mxu0 %v4782_v9  ;;  %v4752_v19 = vmax.f32 %v4608_v17, 0.0  ;;  %v7491_v9 = vld [vmem:[%s9271_s9 + $0x6b8] sm:$0xff]   ;;  %v7512_v57 = vld [vmem:[%s9271_s9 + $0x648] sm:$0xff]  }
0x1254   :  { %v4611_v29 = vpop.f32.mrf.mxu1  ;;  %v4654_v35 = vpop.f32.mrf.mxu0  ;;  %v4779_v16 = vpack.c.bf16 %v4763_v55, %v4747_v3  ;;  %v7514_v55 = vld [vmem:[%s9271_s9 + $0x608] sm:$0xff]   ;;  %v4610_v17 = vadd.f32 %v8957_v21, %v4191_v42  ;;  %v4606_v21 = vadd.f32 %v8929_v13, %v4191_v42  ;;  %v7520_v13 = vld [vmem:[%s9271_s9 + $0x778] sm:$0xff]   ;;  %v7542_v42 = vld [vmem:[%s9271_s9 + $0x710] sm:$0xff]  }
0x1255   :  { %6979 = vmatpush3.bf16.msra.mxu1 %v7466_v11  ;;  %7001 = vmatpush3.bf16.msra.mxu0 %v7467_v0  ;;  %v4612_v10 = vadd.f32 %v4611_v29, %v4195_v53  ;;  %v4655_v61 = vadd.f32 %v4654_v35, %v4203_v26  ;;  %v4781_v11 = vpack.c.bf16 %v4765_v54, %v4749_v4  ;;  %v4754_v0 = vmax.f32 %v4651_v52, 0.0  ;;  %v7507_v53 = vld [vmem:[%s9271_s9 + $0x698] sm:$0xff]   ;;  %v7508_v35 = vld [vmem:[%s9271_s9 + $0x650] sm:$0xff]   ;;  %v7515_v36 = vld [vmem:[%s9271_s9 + $0x688] sm:$0xff]  }
0x1256   :  { %6980 = vmatprep.subr.bf16.mxu1 %v7468_v49  ;;  %7002 = vmatprep.subr.bf16.mxu0 %v7469_v12  ;;  %v7492_v49 = vld [vmem:[%s9271_s9 + $0x670] sm:$0xff]   ;;  %v4219_v52 = vrot.slane %v8980_v15, %v8142_v27  ;;  %v7518_v4 = vld [vmem:[%s9271_s9 + $0x600] sm:$0xff]  }
0x1257   :  { %v4768_v63 = vmax.f32 %v4612_v10, 0.0  ;;  %v4770_v43 = vmax.f32 %v4655_v61, 0.0  ;;  %v7513_v10 = vld [vmem:[%s9271_s9 + $0x6c8] sm:$0xff]   ;;  %v4199_v61 = vrot.slane %v8980_v15, %v8123_v37  ;;  %v7516_v37 = vld [vmem:[%s9271_s9 + $0x640] sm:$0xff]  }
0x1258   :  { %v7519_v27 = vld [vmem:[%s9271_s9 + $0x680] sm:$0xff]  }
0x1259   :  { %6981 = vmatpush3.bf16.msra.mxu1 %v7470_v18  ;;  %7003 = vmatpush3.bf16.msra.mxu0 %v7471_v23  ;;  %v4784_v12 = vpack.c.bf16 %v4768_v63, %v4752_v19  ;;  %v7493_v18 = vld [vmem:[%s9271_s9 + $0x6f0] sm:$0xff]   ;;  %v4786_v23 = vpack.c.bf16 %v4770_v43, %v4754_v0  ;;  %v4653_v54 = vadd.f32 %v8962_v56, %v4199_v61  ;;  %v4767_v56 = vmax.f32 %v4610_v17, 0.0 }
0x125a   :  { %6982 = vmatprep.subr.bf16.mxu1 %v7472_v24  ;;  %7004 = vmatprep.subr.bf16.mxu0 %v7473_v38  ;;  %v7494_v24 = vld [vmem:[%s9271_s9 + $0x630] sm:$0xff]   ;;  %v4649_v3 = vadd.f32 %v8934_v22, %v4199_v61  ;;  %v4751_v19 = vmax.f32 %v4606_v21, 0.0  ;;  %v4207_v17 = vrot.slane %v8980_v15, %v8221_v6  ;;  %v7548_v6 = vld [vmem:[%s9271_s9 + $0x740] sm:$0xff]  }
0x125b   :  { %v7495_v38 = vld [vmem:[%s9271_s9 + $0x6b0] sm:$0xff]  }
0x125c   :  { %v7543_v61 = vld [vmem:[%s9271_s9 + $0x790] sm:$0xff]  }
0x125d   :  { %6983 = vmatpush3.bf16.msra.mxu1 %v7474_v28  ;;  %7005 = vmatpush3.bf16.msra.mxu0 %v7475_v20  ;;  %v7497_v28 = vld [vmem:[%s9271_s9 + $0x6e8] sm:$0xff]  }
0x125e   :  { %6984 = vmatprep.subr.bf16.mxu1 %v7476_v39  ;;  %7006 = vmatprep.subr.bf16.mxu0 %v7477_v40  ;;  %v7499_v20 = vld [vmem:[%s9271_s9 + $0x6a8] sm:$0xff]   ;;  %v7500_v39 = vld [vmem:[%s9271_s9 + $0x660] sm:$0xff]  }
0x125f   :  { %v7501_v40 = vld [vmem:[%s9271_s9 + $0x6e0] sm:$0xff]  }
0x1261   :  { %6985 = vmatpush3.bf16.msra.mxu1 %v7478_v41  ;;  %7007 = vmatpush3.bf16.msra.mxu0 %v7479_v44  ;;  %v9050_v41 = vpop.f32.mrf.mxu1  ;;  %v7502_v44 = vld [vmem:[%s9271_s9 + $0x620] sm:$0xff]  }
0x1262   :  { %6986 = vmatprep.subr.bf16.mxu1 %v7480_v45  ;;  %7008 = vmatprep.subr.bf16.mxu0 %v7481_v46  ;;  %v9055_v45 = vpop.f32.mrf.mxu0  ;;  %v7503_v46 = vld [vmem:[%s9271_s9 + $0x6a0] sm:$0xff]  }
0x1263   :  { %v4693_v29 = vpop.f32.mrf.mxu1 }
0x1264   :  { %v4736_v8 = vpop.f32.mrf.mxu0 }
0x1265   :  { %6987 = vmatpush3.bf16.msra.mxu1 %v7482_v51  ;;  %7009 = vmatpush3.bf16.msra.mxu0 %v7483_v2  ;;  %v7506_v51 = vld [vmem:[%s9271_s9 + $0x618] sm:$0xff]   ;;  %v7509_v2 = vld [vmem:[%s9271_s9 + $0x6d0] sm:$0xff]   ;;  %v4737_v22 = vadd.f32 %v4736_v8, %v4219_v52  ;;  %v7534_v8 = vld [vmem:[%s9271_s9 + $0x720] sm:$0xff]  }
0x1266   :  { %6988 = vmatprep.subr.bf16.mxu1 %v7484_v58  ;;  %7010 = vmatprep.subr.bf16.mxu0 %v7485_v33  ;;  %v9078_v58 = vpop.f32.mrf.mxu1  ;;  %v9083_v26 = vpop.f32.mrf.mxu0  ;;  %v7511_v33 = vld [vmem:[%s9271_s9 + $0x690] sm:$0xff]  }
0x1269   :  { %6989 = vmatpush3.bf16.msra.mxu1 %v7486_v62  ;;  %7011 = vmatpush3.bf16.msra.mxu0 %v7487_v34  ;;  %v4697_v62 = vpop.f32.mrf.mxu1  ;;  %v4211_v34 = vrot.slane %v8980_v15, %v8139_v48  ;;  %v7517_v48 = vld [vmem:[%s9271_s9 + $0x6c0] sm:$0xff]  }
0x126a   :  { %7018 = vmatprep.subr.bf16.mxu1 %v7488_v31  ;;  %7040 = vmatprep.subr.bf16.mxu0 %v7489_v32  ;;  %v4740_v31 = vpop.f32.mrf.mxu0 }
0x126b   :  { %v4698_v32 = vadd.f32 %v4697_v62, %v4211_v34  ;;  %v4741_v63 = vadd.f32 %v4740_v31, %v4219_v52  ;;  %v4694_v43 = vadd.f32 %v4693_v29, %v4211_v34  ;;  %v7532_v29 = vld [vmem:[%s9271_s9 + $0x760] sm:$0xff]   ;;  %v7544_v62 = vld [vmem:[%s9271_s9 + $0x748] sm:$0xff]   ;;  %v4215_v34 = vrot.slane %v8980_v15, %v8224_v7 }
0x126c   :  { %5680 = vmatmul.mubr.bf16.vlgmr.msra.gmra.mxu1 %v4779_v16  ;;  %5721 = vmatmul.mubr.bf16.vlgmr.msra.gmra.mxu0 %v4781_v11  ;;  %v7521_v16 = vld [vmem:[%s9271_s9 + $0x7f8] sm:$0xff]   ;;  %v4753_v11 = vmax.f32 %v4649_v3, 0.0  ;;  %v7546_v31 = vld [vmem:[%s9271_s9 + $0x708] sm:$0xff]   ;;  %v7549_v7 = vld [vmem:[%s9271_s9 + $0x7c0] sm:$0xff]   ;;  %v4692_v15 = vadd.f32 %v9050_v41, %v4207_v17 }
0x126d   :  { %7019 = vmatpush3.bf16.msra.mxu1 %v7490_v5  ;;  %5761 = vmatprep.mubr.bf16.mxu1 %v4784_v12  ;;  %v4769_v5 = vmax.f32 %v4653_v54, 0.0  ;;  %v4774_v0 = vmax.f32 %v4741_v63, 0.0  ;;  %v4783_v12 = vpack.c.bf16 %v4767_v56, %v4751_v19  ;;  %v4739_v54 = vadd.f32 %v9083_v26, %v4215_v34  ;;  %v7550_v52 = vld [vmem:[%s9271_s9 + $0x700] sm:$0xff]  }
0x126e   :  { %7041 = vmatpush3.bf16.msra.mxu0 %v7491_v9  ;;  %5802 = vmatprep.mubr.bf16.mxu0 %v4786_v23  ;;  %v4772_v9 = vmax.f32 %v4698_v32, 0.0  ;;  %v7523_v23 = vld [vmem:[%s9271_s9 + $0x7b8] sm:$0xff]   ;;  %v7551_v26 = vld [vmem:[%s9271_s9 + $0x780] sm:$0xff]   ;;  %v4755_v32 = vmax.f32 %v4692_v15, 0.0 }
0x126f   :  { %7020 = vmatprep.subr.bf16.mxu1 %v7492_v49  ;;  %7042 = vmatprep.subr.bf16.mxu0 %v7493_v18  ;;  %v7522_v49 = vld [vmem:[%s9271_s9 + $0x738] sm:$0xff]   ;;  %v4756_v18 = vmax.f32 %v4694_v43, 0.0  ;;  %v4773_v21 = vmax.f32 %v4739_v54, 0.0 }
0x1271   :  { %7021 = vmatpush3.bf16.msra.mxu1 %v7494_v24  ;;  %v4785_v24 = vpack.c.bf16 %v4769_v5, %v4753_v11 }
0x1272   :  { %7043 = vmatpush3.bf16.msra.mxu0 %v7495_v38  ;;  %7022 = vmatprep.subr.bf16.mxu1 %v7496_v25  ;;  %v4758_v38 = vmax.f32 %v4737_v22, 0.0  ;;  %v7524_v25 = vld [vmem:[%s9271_s9 + $0x770] sm:$0xff]  }
0x1273   :  { %7044 = vmatprep.subr.bf16.mxu0 %v7497_v28  ;;  %v4788_v28 = vpack.c.bf16 %v4772_v9, %v4756_v18 }
0x1275   :  { %7023 = vmatpush3.bf16.msra.mxu1 %v7498_v30  ;;  %v7525_v30 = vld [vmem:[%s9271_s9 + $0x7f0] sm:$0xff]  }
0x1276   :  { %7045 = vmatpush3.bf16.msra.mxu0 %v7499_v20  ;;  %7024 = vmatprep.subr.bf16.mxu1 %v7500_v39  ;;  %v4790_v20 = vpack.c.bf16 %v4774_v0, %v4758_v38  ;;  %v7526_v39 = vld [vmem:[%s9271_s9 + $0x730] sm:$0xff]  }
0x1277   :  { %7046 = vmatprep.subr.bf16.mxu0 %v7501_v40  ;;  %v7527_v40 = vld [vmem:[%s9271_s9 + $0x7b0] sm:$0xff]  }
0x1279   :  { %7025 = vmatpush3.bf16.msra.mxu1 %v7502_v44  ;;  %v7528_v44 = vld [vmem:[%s9271_s9 + $0x768] sm:$0xff]  }
0x127a   :  { %7047 = vmatpush3.bf16.msra.mxu0 %v7503_v46  ;;  %7026 = vmatprep.subr.bf16.mxu1 %v7504_v47  ;;  %v7529_v46 = vld [vmem:[%s9271_s9 + $0x7e8] sm:$0xff]  }
0x127b   :  { %7048 = vmatprep.subr.bf16.mxu0 %v7505_v60  ;;  %v7530_v47 = vld [vmem:[%s9271_s9 + $0x728] sm:$0xff]  }
0x127c   :  { %v7531_v60 = vld [vmem:[%s9271_s9 + $0x7a8] sm:$0xff]  }
0x127d   :  { %7027 = vmatpush3.bf16.msra.mxu1 %v7506_v51  ;;  %v7533_v51 = vld [vmem:[%s9271_s9 + $0x7e0] sm:$0xff]  }
0x127e   :  { %7049 = vmatpush3.bf16.msra.mxu0 %v7507_v53  ;;  %7028 = vmatprep.subr.bf16.mxu1 %v7508_v35  ;;  %v7535_v53 = vld [vmem:[%s9271_s9 + $0x7a0] sm:$0xff]   ;;  %v7536_v35 = vld [vmem:[%s9271_s9 + $0x758] sm:$0xff]  }
0x127f   :  { %7050 = vmatprep.subr.bf16.mxu0 %v7509_v2  ;;  %v7537_v2 = vld [vmem:[%s9271_s9 + $0x7d8] sm:$0xff]  }
0x1281   :  { %7029 = vmatpush3.bf16.msra.mxu1 %v7510_v59  ;;  %v7538_v59 = vld [vmem:[%s9271_s9 + $0x718] sm:$0xff]  }
0x1282   :  { %7051 = vmatpush3.bf16.msra.mxu0 %v7511_v33  ;;  %7030 = vmatprep.subr.bf16.mxu1 %v7512_v57  ;;  %v7539_v33 = vld [vmem:[%s9271_s9 + $0x798] sm:$0xff]   ;;  %v7540_v57 = vld [vmem:[%s9271_s9 + $0x750] sm:$0xff]  }
0x1283   :  { %7052 = vmatprep.subr.bf16.mxu0 %v7513_v10  ;;  %v7541_v10 = vld [vmem:[%s9271_s9 + $0x7d0] sm:$0xff]  }
0x1285   :  { %7031 = vmatpush3.bf16.msra.mxu1 %v7514_v55  ;;  %v7545_v55 = vld [vmem:[%s9271_s9 + $0x7c8] sm:$0xff]  }
0x1286   :  { %7053 = vmatpush3.bf16.msra.mxu0 %v7515_v36  ;;  %7032 = vmatprep.subr.bf16.mxu1 %v7516_v37  ;;  %v4696_v36 = vadd.f32 %v9078_v58, %v4207_v17  ;;  %v7547_v37 = vld [vmem:[%s9271_s9 + $0x788] sm:$0xff]   ;;  %v4735_v58 = vadd.f32 %v9055_v45, %v4215_v34 }
0x1287   :  { %7054 = vmatprep.subr.bf16.mxu0 %v7517_v48 }
0x1288   :  { %v4771_v48 = vmax.f32 %v4696_v36, 0.0  ;;  %v4757_v3 = vmax.f32 %v4735_v58, 0.0 }
0x1289   :  { %7033 = vmatpush3.bf16.msra.mxu1 %v7518_v4 }
0x128a   :  { %7055 = vmatpush3.bf16.msra.mxu0 %v7519_v27  ;;  %7062 = vmatprep.subr.bf16.mxu1 %v7520_v13  ;;  %v4787_v41 = vpack.c.bf16 %v4771_v48, %v4755_v32  ;;  %v4789_v45 = vpack.c.bf16 %v4773_v21, %v4757_v3 }
0x128b   :  { %7084 = vmatprep.subr.bf16.mxu0 %v7521_v16 }
0x128c   :  { %5762 = vmatmul.mubr.bf16.vlgmr.msra.gmra.mxu1 %v4783_v12 }
0x128d   :  { %5803 = vmatmul.mubr.bf16.vlgmr.msra.gmra.mxu0 %v4785_v24  ;;  %7063 = vmatpush3.bf16.msra.mxu1 %v7522_v49 }
0x128e   :  { %5843 = vmatprep.mubr.bf16.mxu1 %v4788_v28  ;;  %7085 = vmatpush3.bf16.msra.mxu0 %v7523_v23  ;;  %v6575_v23 = vld [vmem:[%s9272_s10 + $0x1] ss:$0 sm:$0xff] }
0x128f   :  { %5884 = vmatprep.mubr.bf16.mxu0 %v4790_v20  ;;  %7064 = vmatprep.subr.bf16.mxu1 %v7524_v25 }
0x1290   :  { %7086 = vmatprep.subr.bf16.mxu0 %v7525_v30 }
0x1291   :  { %7065 = vmatpush3.bf16.msra.mxu1 %v7526_v39 }
0x1292   :  { %7087 = vmatpush3.bf16.msra.mxu0 %v7527_v40  ;;  %7066 = vmatprep.subr.bf16.mxu1 %v7528_v44 }
0x1293   :  { %7088 = vmatprep.subr.bf16.mxu0 %v7529_v46 }
0x1295   :  { %7067 = vmatpush3.bf16.msra.mxu1 %v7530_v47 }
0x1296   :  { %7089 = vmatpush3.bf16.msra.mxu0 %v7531_v60  ;;  %7068 = vmatprep.subr.bf16.mxu1 %v7532_v29 }
0x1297   :  { %7090 = vmatprep.subr.bf16.mxu0 %v7533_v51 }
0x1299   :  { %7069 = vmatpush3.bf16.msra.mxu1 %v7534_v8 }
0x129a   :  { %7091 = vmatpush3.bf16.msra.mxu0 %v7535_v53  ;;  %7070 = vmatprep.subr.bf16.mxu1 %v7536_v35 }
0x129b   :  { %7092 = vmatprep.subr.bf16.mxu0 %v7537_v2 }
0x129d   :  { %7071 = vmatpush3.bf16.msra.mxu1 %v7538_v59 }
0x129e   :  { %7093 = vmatpush3.bf16.msra.mxu0 %v7539_v33  ;;  %7072 = vmatprep.subr.bf16.mxu1 %v7540_v57 }
0x129f   :  { %7094 = vmatprep.subr.bf16.mxu0 %v7541_v10 }
0x12a1   :  { %7073 = vmatpush3.bf16.msra.mxu1 %v7542_v42 }
0x12a2   :  { %7095 = vmatpush3.bf16.msra.mxu0 %v7543_v61  ;;  %7074 = vmatprep.subr.bf16.mxu1 %v7544_v62 }
0x12a3   :  { %7096 = vmatprep.subr.bf16.mxu0 %v7545_v55 }
0x12a5   :  { %7075 = vmatpush3.bf16.msra.mxu1 %v7546_v31 }
0x12a6   :  { %7097 = vmatpush3.bf16.msra.mxu0 %v7547_v37  ;;  %7076 = vmatprep.subr.bf16.mxu1 %v7548_v6 }
0x12a7   :  { %7098 = vmatprep.subr.bf16.mxu0 %v7549_v7 }
0x12a9   :  { %7077 = vmatpush3.bf16.msra.mxu1 %v7550_v52 }
0x12aa   :  { %7099 = vmatpush3.bf16.msra.mxu0 %v7551_v26  ;;  %7237 = vmatprep.subr.bf16.mxu1 %v7658_v1 }
0x12ac   :  { %5844 = vmatmul.mubr.bf16.vlgmr.msra.gmra.mxu1 %v4787_v41 }
0x12ad   :  { %5885 = vmatmul.mubr.bf16.vlgmr.msra.gmra.mxu0 %v4789_v45  ;;  %7241 = vmatprep.mubr.msk.bf16.mxu1 %vm7659_vm0, %v7658_v1 }
0x130c   :  { %v6946_v63 = vpop.f32.mrf.mxu1  ;;  %v6968_v4 = vpop.f32.mrf.mxu0 }
0x130e   :  { %v6947_v56 = vpop.f32.mrf.mxu1  ;;  %v6969_v43 = vpop.f32.mrf.mxu0 }
0x130f   :  { %v6948_v18 = vadd.f32 %v6947_v56, %v6946_v63  ;;  %v6970_v39 = vadd.f32 %v6969_v43, %v6968_v4 }
0x1310   :  { %v6949_v27 = vpop.f32.mrf.mxu1  ;;  %v6971_v13 = vpop.f32.mrf.mxu0 }
0x1311   :  { %v5600_v25 = vadd.f32 %v6948_v18, %v6575_v23 }
0x1312   :  { %v6950_v5 = vpop.f32.mrf.mxu1  ;;  %v6972_v16 = vpop.f32.mrf.mxu0 }
0x1313   :  { %v6951_v28 = vadd.f32 %v6950_v5, %v6949_v27  ;;  %v5641_v44 = vadd.f32 %v6970_v39, %v5600_v25  ;;  %v6973_v29 = vadd.f32 %v6972_v16, %v6971_v13 }
0x1315   :  { %v5603_v46 = vadd.f32 %v6951_v28, %v6575_v23 }
0x1317   :  { %v5644_v53 = vadd.f32 %v6973_v29, %v5603_v46  ;;  %v6704_v46 = vld [vmem:[%s9273_s11 + $0x1] ss:$0 sm:$0xff]  ;;  %s7662_s11 = smov [#allocation2]  }
0x1318   :  { %s6012_s0 = sshll.u32 %s7662_s11, 4  ;;  %s6013_s0 = int_to_ptr.vmem [resolvable:$true] %s6012_s0 }
0x1319   :  { %p7641_p1 = scmp.lt.s32.totalorder %s6013_s0, %s6013_s0 }
0x132c   :  { %v6990_v22 = vpop.f32.mrf.mxu1  ;;  %v7012_v19 = vpop.f32.mrf.mxu0 }
0x132e   :  { %v6991_v9 = vpop.f32.mrf.mxu1  ;;  %v7013_v11 = vpop.f32.mrf.mxu0 }
0x132f   :  { %v6992_v40 = vadd.f32 %v6991_v9, %v6990_v22  ;;  %v7014_v35 = vadd.f32 %v7013_v11, %v7012_v19 }
0x1330   :  { %v6993_v0 = vpop.f32.mrf.mxu1  ;;  %v7015_v49 = vpop.f32.mrf.mxu0 }
0x1331   :  { %v5682_v51 = vadd.f32 %v6992_v40, %v5641_v44 }
0x1332   :  { %v6994_v12 = vpop.f32.mrf.mxu1  ;;  %v7016_v38 = vpop.f32.mrf.mxu0 }
0x1333   :  { %v6995_v8 = vadd.f32 %v6994_v12, %v6993_v0  ;;  %v5723_v57 = vadd.f32 %v7014_v35, %v5682_v51  ;;  %v7017_v42 = vadd.f32 %v7016_v38, %v7015_v49 }
0x1335   :  { %v5685_v10 = vadd.f32 %v6995_v8, %v5644_v53 }
0x1337   :  { %v5726_v34 = vadd.f32 %v7017_v42, %v5685_v10 }
0x134c   :  { %v7034_v24 = vpop.f32.mrf.mxu1 }
0x134d   :  { %v7056_v30 = vpop.f32.mrf.mxu0 }
0x134e   :  { %v7035_v20 = vpop.f32.mrf.mxu1 }
0x134f   :  { %v7057_v47 = vpop.f32.mrf.mxu0  ;;  %v7036_v2 = vadd.f32 %v7035_v20, %v7034_v24  ;;  %v7553_v24 = vld [vmem:[%s9275_s13] sm:$0xff]  }
0x1350   :  { %v7037_v60 = vpop.f32.mrf.mxu1  ;;  %v7058_v31 = vadd.f32 %v7057_v47, %v7056_v30 }
0x1351   :  { %v7059_v59 = vpop.f32.mrf.mxu0  ;;  %v5764_v61 = vadd.f32 %v7036_v2, %v5723_v57  ;;  %v6706_v2 = vld [vmem:[%s9276_s14] ss:$0 sm:$0xff] }
0x1352   :  { %v7038_v33 = vpop.f32.mrf.mxu1 }
0x1353   :  { %v7039_v62 = vadd.f32 %v7038_v33, %v7037_v60  ;;  %v7060_v55 = vpop.f32.mrf.mxu0  ;;  %v5805_v6 = vadd.f32 %v7058_v31, %v5764_v61 }
0x1354   :  { %v7061_v52 = vadd.f32 %v7060_v55, %v7059_v59 }
0x1355   :  { %v5767_v54 = vadd.f32 %v7039_v62, %v5726_v34 }
0x1357   :  { %v5808_v3 = vadd.f32 %v7061_v52, %v5767_v54 }
0x136c   :  { %v7078_v17 = vpop.f32.mrf.mxu1 }
0x136d   :  { %v7100_v36 = vpop.f32.mrf.mxu0 }
0x136e   :  { %v7079_v37 = vpop.f32.mrf.mxu1 }
0x136f   :  { %v7080_v7 = vadd.f32 %v7079_v37, %v7078_v17  ;;  %v7101_v15 = vpop.f32.mrf.mxu0 }
0x1370   :  { %v7081_v58 = vpop.f32.mrf.mxu1  ;;  %v7102_v26 = vadd.f32 %v7101_v15, %v7100_v36 }
0x1371   :  { %v5846_v48 = vadd.f32 %v7080_v7, %v5805_v6  ;;  %v7103_v21 = vpop.f32.mrf.mxu0 }
0x1372   :  { %v7082_v32 = vpop.f32.mrf.mxu1 }
0x1373   :  { %v5887_v41 = vadd.f32 %v7102_v26, %v5846_v48  ;;  %v7083_v45 = vadd.f32 %v7082_v32, %v7081_v58  ;;  %v7104_v63 = vpop.f32.mrf.mxu0 }
0x1374   :  { %v7105_v56 = vadd.f32 %v7104_v63, %v7103_v21 }
0x1375   :  { %v5849_v4 = vadd.f32 %v7083_v45, %v5808_v3  ;;  %v5893_v43 = vadd.f32 %v5887_v41, %v8688_v14 }
0x1377   :  { %v5890_v27 = vadd.f32 %v7105_v56, %v5849_v4  ;;  %v5895_v13 = vsel %vm390_vm1, %v5893_v43, 0.0 }
0x1378   :  { %5896 = vadd.xlane.f32.xlu0 %v5895_v13 }
0x1379   :  { %v5894_v5 = vadd.f32 %v5890_v27, %v8690_v50  ;;  %v7552_v50 = vld [vmem:[%s9275_s13 + $0x8] sm:$0xff]  }
0x137a   :  { %7238 = vmatpush3.bf16.msra.mxu1 %v7552_v50 }
0x137b   :  { %v5898_v22 = vsel %vm390_vm1, %v5894_v5, 0.0  ;;  %7239 = vmatprep.subr.bf16.mxu1 %v7658_v1  ;;  %v6705_v1 = vld [vmem:[%s9274_s12 + $0x1] ss:$0 sm:$0xff]  ;;  %s7636_s12 = scalar_lea.vmem %s6013_s0, 256 }
0x137c   :  { %5899 = vadd.xlane.f32.xlu0 %v5898_v22  ;;  %p7637_p0 = scmp.ne.s32.totalorder %s6013_s0, %s7636_s12  ;;  %p7642_p2 = scmp.lt.s32.totalorder %s7636_s12, %s7636_s12 }
0x137e   :  { %7240 = vmatpush3.bf16.msra.mxu1 %v7553_v24  ;;  %p7643_p3 = por %p7642_p2, %p7641_p1 }
0x1380   :  { %p7644_p4 = pnand %p7643_p3, %p7637_p0 }
0x1401   :  { %v5897_v16 = vpop.xlane.xlu0 %5896 }
0x1402   :  { %v5901_v19 = vmul.f32 0.03125, %v5897_v16 }
0x1404   :  { %v5903_v9 = vsub.f32 %v5893_v43, %v5901_v19 }
0x1405   :  { %v5900_v11 = vpop.xlane.xlu0 %5899 }
0x1406   :  { %v5902_v0 = vmul.f32 0.03125, %v5900_v11  ;;  %v5905_v49 = vmul.f32 %v5903_v9, %v5903_v9 }
0x1408   :  { %v5904_v12 = vsub.f32 %v5894_v5, %v5902_v0  ;;  %v5907_v18 = vsel %vm390_vm1, %v5905_v49, 0.0 }
0x1409   :  { %5908 = vadd.xlane.f32.xlu0 %v5907_v18 }
0x140a   :  { %v5906_v14 = vmul.f32 %v5904_v12, %v5904_v12 }
0x140c   :  { %v5910_v23 = vsel %vm390_vm1, %v5906_v14, 0.0 }
0x140d   :  { %5911 = vadd.xlane.f32.xlu0 %v5910_v23 }
0x1492   :  { %v5909_v38 = vpop.xlane.xlu0 %5908 }
0x1493   :  { %v5913_v25 = vmul.f32 0.03125, %v5909_v38 }
0x1495   :  { %v5915_v28 = vadd.f32 1e-05, %v5913_v25 }
0x1496   :  { %v5912_v30 = vpop.xlane.xlu0 %5911 }
0x1497   :  { %7630 = vrsqrt.f32 %v5915_v28  ;;  %v5914_v20 = vmul.f32 0.03125, %v5912_v30 }
0x1499   :  { %v5916_v39 = vadd.f32 1e-05, %v5914_v20 }
0x149b   :  { %7632 = vrsqrt.f32 %v5916_v39 }
0x14a4   :  { %v7631_v40 = vpop.eup %7630 }
0x14a5   :  { %v5919_v44 = vmul.f32 %v7631_v40, %v5903_v9 }
0x14a7   :  { %v5927_v29 = vmul.f32 %v6704_v46, %v5919_v44 }
0x14a8   :  { %v7633_v47 = vpop.eup %7632 }
0x14a9   :  { %v5920_v60 = vmul.f32 %v7633_v47, %v5904_v12  ;;  %v5935_v8 = vadd.f32 %v6705_v1, %v5927_v29 }
0x14ab   :  { %v5928_v51 = vmul.f32 %v6704_v46, %v5920_v60 }
0x14ad   :  { %v5936_v53 = vadd.f32 %v6705_v1, %v5928_v51 }
0x14af   :  { %v5937_v35 = vpack.c.bf16 %v5936_v53, %v5935_v8 }
0x14b1   :  { %7242 = vmatmul.mubr.msk.bf16.vlgmr.msra.gmra.mxu1 %vm390_vm1, %v5937_v35 }
0x1571   :  { %v5998_v59 = vpop.f32.mrf.mxu1 }
0x1572   :  { %v5999_v33 = vadd.f32 %v6706_v2, %v5998_v59 }
0x1573   :  { %v7243_v57 = vpop.f32.mrf.mxu1 }
0x1574   :  { %6005 = vst.msk [vmem:[#allocation2] sm:$0xff] %vm390_vm1, %v5999_v33 }
0x1575   :  { %v6001_v10 = vpop.f32.mrf.mxu1 }
0x1576   :  { %v6002_v42 = vadd.f32 %v6706_v2, %v6001_v10 }
0x1577   :  { %v7244_v61 = vpop.f32.mrf.mxu1 }
0x1578   :  { %6006 = vst.msk [vmem:[#allocation2 + $0x8] sm:$0xff] %vm390_vm1, %v6002_v42 }
0x1579   :  { %7647 = shalt.err (!%p7644_p4)
}
0x157a   :  { %s7663_s14 = smov 128   ;;  %s7664_s24 = smov 8  }
0x157b   :  { %6018 = dma.vmem_to_hbm [thread:$0]  %s6013_s0, 256, %s9277_s15, [#allocation3], %s7663_s14, %s7663_s14, %s7664_s24  }
0x157c   :  { %7656 = dma.done.wait [#allocation3], 256  }
0x157d   :  { %7657 = vsyncadd [#allocation3], 4294967040 }
0x157e   :  { %6022 = vsyncpa [#allocation3], 1 }

</bundles_post_ra>
